<compile_context>
chip_gen: v7x
topology: tpu7x:2x2x1
jax: 0.10.0
libtpu: 0.0.40
codegen_flags: <defaults>
</compile_context>

<pallas_src>
import jax
import jax.numpy as jnp
from jax.experimental import pallas as pl
from jax.experimental.pallas import tpu as pltpu

LANES = 128


# ----------------------------- Pallas kernels ------------------------------

def _conv_relu_pool_kernel(x_ref, w_ref, b_ref, o_ref, acc_ref, m_ref):
    """Fused im2col-matmul + bias + ReLU + 2x2/2 max-pool for one image.

    Row order of x_ref / acc_ref is (ph, pw, dy, dx) -- the four cells of each pooling
    window are consecutive rows -- so both pooling reductions are pure stride-2 reads.

    x_ref  : (1, HW, Kp)     bf16   im2col patches, HW = Hp*Wp*4
    w_ref  : (Kp, Cp)        bf16   reshaped conv weight (Cp = Cout zero-padded to 128)
    b_ref  : (1, Cp)         f32
    o_ref  : (1, HW//4, Cp)  bf16   pooled output, row = ph*Wp + pw
    acc_ref: (HW, Cp)   f32 scratch; m_ref: (HW//2, Cp) f32 scratch
    """
    HW = acc_ref.shape[0]
    acc = jnp.dot(x_ref[0], w_ref[...], preferred_element_type=jnp.float32)
    acc_ref[...] = jnp.maximum(acc + b_ref[...], 0.0)
    # max over dx: pairs of adjacent rows -> (HW//2, Cp)
    m_ref[...] = jnp.maximum(acc_ref[pl.ds(0, HW // 2, 2), :],
                             acc_ref[pl.ds(1, HW // 2, 2), :])
    # max over dy: pairs of adjacent rows -> (HW//4, Cp); cast to bf16 at the store
    o_ref[0, :, :] = jnp.maximum(m_ref[pl.ds(0, HW // 4, 2), :],
                                 m_ref[pl.ds(1, HW // 4, 2), :]).astype(o_ref.dtype)


def conv_relu_pool(cols, w_k, b_k):
    """cols: (B, HW, Kp) bf16 (HW = Hp*Wp*4); w_k: (Kp, Cp) bf16; b_k: (1, Cp) f32
    -> (B, Hp*Wp, Cp) bf16."""
    B, HW, Kp = cols.shape
    Cp = w_k.shape[1]
    assert HW % 4 == 0, "im2col rows must come in (ph, pw, dy, dx) pooling order"
    return pl.pallas_call(
        _conv_relu_pool_kernel,
        out_shape=jax.ShapeDtypeStruct((B, HW // 4, Cp), jnp.bfloat16),
        grid=(B,),
        in_specs=[
            pl.BlockSpec((1, HW, Kp), lambda b: (b, 0, 0)),
            pl.BlockSpec((Kp, Cp), lambda b: (0, 0)),
            pl.BlockSpec((1, Cp), lambda b: (0, 0)),
        ],
        out_specs=pl.BlockSpec((1, HW // 4, Cp), lambda b: (b, 0, 0)),
        scratch_shapes=[
            pltpu.VMEM((HW, Cp), jnp.float32),
            pltpu.VMEM((HW // 2, Cp), jnp.float32),
        ],
        compiler_params=pltpu.CompilerParams(dimension_semantics=("parallel",)),
    )(cols, w_k, b_k)


def _fc_head_kernel(x_ref, w1_ref, b1_ref, w2_ref, b2_ref, o_ref):
    h = jnp.dot(x_ref[...], w1_ref[...], preferred_element_type=jnp.float32)
    h = jnp.maximum(h + b1_ref[...], 0.0)                        # fc1 + ReLU (f32 epilogue)
    o = jnp.dot(h.astype(jnp.bfloat16), w2_ref[...], preferred_element_type=jnp.float32)
    o_ref[...] = o + b2_ref[...]                                 # fc2


def fc_head(x, w1, b1, w2, b2):
    """x: (B, K1) bf16; w1: (K1, H) bf16; w2: (H, O) bf16 -> (B, O) f32 in one fused call."""
    B, K1 = x.shape
    H = w1.shape[1]
    O = w2.shape[1]
    return pl.pallas_call(
        _fc_head_kernel,
        out_shape=jax.ShapeDtypeStruct((B, O), jnp.float32),
        grid=(1,),
        in_specs=[
            pl.BlockSpec((B, K1), lambda i: (0, 0)),
            pl.BlockSpec((K1, H), lambda i: (0, 0)),
            pl.BlockSpec((1, H), lambda i: (0, 0)),
            pl.BlockSpec((H, O), lambda i: (0, 0)),
            pl.BlockSpec((1, O), lambda i: (0, 0)),
        ],
        out_specs=pl.BlockSpec((B, O), lambda i: (0, 0)),
        compiler_params=pltpu.CompilerParams(dimension_semantics=("arbitrary",)),
    )(x, w1, b1, w2, b2)


# ------------------------------ JAX glue ops -------------------------------

def im2col_pool_order(x, kh, kw):
    """x: (B, H, W, C) -> (B, Hp*Wp*4, kh*kw*C).

    Row order is (ph, pw, dy, dx) with oh = 2*ph + dy, ow = 2*pw + dx, so the four cells
    of each 2x2 pooling window are consecutive rows.  Feature order is (i, j, c), c fastest.
    """
    B, H, W, C = x.shape
    Ho, Wo = H - kh + 1, W - kw + 1
    assert Ho % 2 == 0 and Wo % 2 == 0, "2x2/2 pooling needs even conv output size"
    Hp, Wp = Ho // 2, Wo // 2
    slabs = [x[:, i:i + Ho, j:j + Wo, :] for i in range(kh) for j in range(kw)]
    patches = jnp.stack(slabs, axis=3)                       # (B, Ho, Wo, kh*kw, C)
    patches = patches.reshape(B, Hp, 2, Wp, 2, kh * kw * C)
    patches = jnp.transpose(patches, (0, 1, 3, 2, 4, 5))     # (B, Hp, Wp, 2, 2, K)
    return patches.reshape(B, Hp * Wp * 4, kh * kw * C)


# ------------------------------- parameters --------------------------------

def init_params(key):
    # Deterministic PyTorch-style uniform(-1/sqrt(fan_in), 1/sqrt(fan_in)) init.
    def uniform(k, shape, fan_in):
        bound = 1.0 / float(fan_in) ** 0.5
        return jax.random.uniform(k, shape, jnp.float32, -bound, bound)

    ks = jax.random.split(key, 8)
    return {
        "conv1_w": uniform(ks[0], (20, 3, 5, 5), 3 * 5 * 5),
        "conv1_b": uniform(ks[1], (20,), 3 * 5 * 5),
        "conv2_w": uniform(ks[2], (50, 20, 5, 5), 20 * 5 * 5),
        "conv2_b": uniform(ks[3], (50,), 20 * 5 * 5),
        "fc1_w": uniform(ks[4], (500, 50 * 5 * 5), 50 * 5 * 5),
        "fc1_b": uniform(ks[5], (500,), 50 * 5 * 5),
        "fc2_w": uniform(ks[6], (4, 500), 500),
        "fc2_b": uniform(ks[7], (4,), 500),
    }


def _prep_conv(w, b, *, cout_pad, k_pad):
    """(Cout, Cin, kh, kw) -> (k_pad, cout_pad) bf16 with feature order (i, j, c), plus bias."""
    cout, cin, kh, kw = w.shape
    wt = jnp.transpose(w, (0, 2, 3, 1)).reshape(cout, kh * kw * cin)   # (Cout, K), c fastest
    wt = jnp.pad(wt, ((0, cout_pad - cout), (0, k_pad - kh * kw * cin)))
    wk = wt.T                                                          # (Kp, Cout_pad)
    bk = jnp.pad(b, (0, cout_pad - cout)).reshape(1, cout_pad)
    return wk.astype(jnp.bfloat16), bk.astype(jnp.float32)


def prepare_params(p):
    """One-time layout pass: compact contraction dims to the real channels, pad to x128,
    permute fc columns to the NHWC flatten order, transpose, cast to bf16."""
    # conv1: K = 5*5*3 = 75 -> 128 lanes.
    c1_w, c1_b = _prep_conv(p["conv1_w"], p["conv1_b"], cout_pad=LANES, k_pad=LANES)
    # conv2: only the 20 real input channels; K = 5*5*20 = 500 -> 512 (4x128).
    c2_w, c2_b = _prep_conv(p["conv2_w"], p["conv2_b"], cout_pad=LANES, k_pad=4 * LANES)
    # fc1: PyTorch columns ordered (c, h, w); our compacted activation is (h, w, c), c in [0,50).
    w1 = p["fc1_w"].reshape(500, 50, 5, 5)
    w1 = jnp.transpose(w1, (0, 2, 3, 1)).reshape(500, 5 * 5 * 50)      # (500, 1250)
    w1 = jnp.pad(w1, ((0, 512 - 500), (0, 1280 - 1250)))               # (512, 1280)
    fc1_w = w1.T.astype(jnp.bfloat16)                                  # (1280, 512)
    fc1_b = jnp.pad(p["fc1_b"], (0, 512 - 500)).reshape(1, 512).astype(jnp.float32)
    # fc2: (4, 500) -> (512, 128)
    fc2_w = jnp.pad(p["fc2_w"], ((0, LANES - 4), (0, 512 - 500))).T.astype(jnp.bfloat16)
    fc2_b = jnp.pad(p["fc2_b"], (0, LANES - 4)).reshape(1, LANES).astype(jnp.float32)
    return {"c1_w": c1_w, "c1_b": c1_b, "c2_w": c2_w, "c2_b": c2_b,
            "fc1_w": fc1_w, "fc1_b": fc1_b, "fc2_w": fc2_w, "fc2_b": fc2_b}


# -------------------------------- forward ----------------------------------

@jax.jit
def net_forward(kp, x):
    """x: (B, 3, 32, 32) NCHW float32 -> logits (B, 4) float32."""
    B = x.shape[0]
    # NHWC + bf16 BEFORE im2col so the 25x patch expansion materializes in bf16.
    x = jnp.transpose(x, (0, 2, 3, 1)).astype(jnp.bfloat16)                 # (B, 32, 32, 3)

    # conv1 (5x5) + ReLU + 2x2 pool -> (B, 14*14, 128) bf16  [channels >= 20 are zero]
    cols1 = im2col_pool_order(x, 5, 5)                                      # (B, 784, 75)
    cols1 = jnp.pad(cols1, ((0, 0), (0, 0), (0, LANES - 75)))               # (B, 784, 128)
    y1 = conv_relu_pool(cols1, kp["c1_w"], kp["c1_b"])

    # conv2 (5x5) + ReLU + 2x2 pool: only the 20 real channels enter the contraction.
    y1 = y1.reshape(B, 14, 14, LANES)[..., :20]                             # (B, 14, 14, 20)
    cols2 = im2col_pool_order(y1, 5, 5)                                     # (B, 100, 500)
    cols2 = jnp.pad(cols2, ((0, 0), (0, 0), (0, 4 * LANES - 500)))          # (B, 100, 512)
    y2 = conv_relu_pool(cols2, kp["c2_w"], kp["c2_b"])                      # (B, 25, 128) bf16

    # fc head: compact to the 50 real channels -> K = 1250 -> 1280 (10x128).
    x_fc = y2.reshape(B, 5, 5, LANES)[..., :50].reshape(B, 5 * 5 * 50)
    x_fc = jnp.pad(x_fc, ((0, 0), (0, 1280 - 1250)))                        # (B, 1280) bf16
    out = fc_head(x_fc, kp["fc1_w"], kp["fc1_b"], kp["fc2_w"], kp["fc2_b"])  # (B, 128) f32
    return out[:, :4]


if __name__ == "__main__":
    key = jax.random.PRNGKey(0)
    pkey, xkey = jax.random.split(key)
    params = init_params(pkey)
    kparams = prepare_params(params)
    # Input NCHW, 3x32x32: after two (conv5 -> pool2) stages spatial is 5x5,
    # matching fc1's 50*5*5 input features.
    x = jax.random.normal(xkey, (2, 3, 32, 32), jnp.float32)
    out = net_forward(kparams, x)
    out = jax.block_until_ready(out)
    assert out.shape == (2, 4) and out.dtype == jnp.float32
    print("KERNEL_OK")
</pallas_src>

<mosaic_0001>
module attributes {stable_mosaic.version = 11 : i64} {
  func.func @_conv_relu_pool_kernel(%arg0: i32, %arg1: memref<1x784x128xbf16, #tpu.memory_space<vmem>>, %arg2: memref<128x128xbf16, #tpu.memory_space<vmem>>, %arg3: memref<1x128xf32, #tpu.memory_space<vmem>>, %arg4: memref<1x196x128xbf16, #tpu.memory_space<vmem>>, %arg5: memref<784x128xf32, #tpu.memory_space<vmem>>, %arg6: memref<392x128xf32, #tpu.memory_space<vmem>>) attributes {dimension_semantics = [#tpu.dimension_semantics<parallel>], iteration_bounds = array<i64: 2>, scalar_prefetch = 0 : i64, scratch_operands = 2 : i64, tpu.core_type = #tpu.core_type<tc>, window_params = [{transform_indices = @transform_0, window_bounds = array<i64: 1, 784, 128>}, {pipeline_mode = #tpu.pipeline_mode<synchronous>, transform_indices = @transform_1, window_bounds = array<i64: 128, 128>}, {pipeline_mode = #tpu.pipeline_mode<synchronous>, transform_indices = @transform_2, window_bounds = array<i64: 1, 128>}, {transform_indices = @transform_3, window_bounds = array<i64: 1, 196, 128>}]} {
    %c0 = arith.constant 0 : index
    %c0_0 = arith.constant 0 : index
    %c0_1 = arith.constant 0 : index
    %0 = vector.load %arg1[%c0, %c0_0, %c0_1] : memref<1x784x128xbf16, #tpu.memory_space<vmem>>, vector<1x784x128xbf16>
    %1 = vector.shape_cast %0 : vector<1x784x128xbf16> to vector<784x128xbf16>
    %c0_2 = arith.constant 0 : index
    %c0_3 = arith.constant 0 : index
    %2 = vector.load %arg2[%c0_2, %c0_3] : memref<128x128xbf16, #tpu.memory_space<vmem>>, vector<128x128xbf16>
    %cst = arith.constant dense<0.000000e+00> : vector<784x128xf32>
    %3 = tpu.matmul %1, %2, %cst {dimension_numbers = #tpu.dot_dimension_numbers<[1], [0], [0], [1], [0, 0, 1, 1], [], []>} : vector<784x128xbf16>, vector<128x128xbf16>, vector<784x128xf32> -> vector<784x128xf32>
    %c0_4 = arith.constant 0 : index
    %c0_5 = arith.constant 0 : index
    %4 = vector.load %arg3[%c0_4, %c0_5] : memref<1x128xf32, #tpu.memory_space<vmem>>, vector<1x128xf32>
    %5 = vector.broadcast %4 : vector<1x128xf32> to vector<784x128xf32>
    %6 = arith.addf %3, %5 : vector<784x128xf32>
    %cst_6 = arith.constant 0.000000e+00 : f32
    %7 = vector.broadcast %cst_6 : f32 to vector<784x128xf32>
    %8 = arith.maximumf %6, %7 : vector<784x128xf32>
    %c0_7 = arith.constant 0 : index
    %c0_8 = arith.constant 0 : index
    %9 = vector.load %arg5[%c0_7, %c0_8] : memref<784x128xf32, #tpu.memory_space<vmem>>, vector<784x128xf32>
    tpu.vector_store %arg5[%c0_7, %c0_8], %8 {strides = array<i32>} : memref<784x128xf32, #tpu.memory_space<vmem>>, vector<784x128xf32>,
    %c0_9 = arith.constant 0 : index
    %c0_10 = arith.constant 0 : index
    %10 = tpu.strided_load %arg5[%c0_9, %c0_10] {strides = array<i32: 2, 1>} : memref<784x128xf32, #tpu.memory_space<vmem>>, vector<392x128xf32>
    %c1 = arith.constant 1 : index
    %c0_11 = arith.constant 0 : index
    %11 = tpu.strided_load %arg5[%c1, %c0_11] {strides = array<i32: 2, 1>} : memref<784x128xf32, #tpu.memory_space<vmem>>, vector<392x128xf32>
    %12 = arith.maximumf %10, %11 : vector<392x128xf32>
    %c0_12 = arith.constant 0 : index
    %c0_13 = arith.constant 0 : index
    %13 = vector.load %arg6[%c0_12, %c0_13] : memref<392x128xf32, #tpu.memory_space<vmem>>, vector<392x128xf32>
    tpu.vector_store %arg6[%c0_12, %c0_13], %12 {strides = array<i32>} : memref<392x128xf32, #tpu.memory_space<vmem>>, vector<392x128xf32>,
    %c0_14 = arith.constant 0 : index
    %c0_15 = arith.constant 0 : index
    %14 = tpu.strided_load %arg6[%c0_14, %c0_15] {strides = array<i32: 2, 1>} : memref<392x128xf32, #tpu.memory_space<vmem>>, vector<196x128xf32>
    %c1_16 = arith.constant 1 : index
    %c0_17 = arith.constant 0 : index
    %15 = tpu.strided_load %arg6[%c1_16, %c0_17] {strides = array<i32: 2, 1>} : memref<392x128xf32, #tpu.memory_space<vmem>>, vector<196x128xf32>
    %16 = arith.maximumf %14, %15 : vector<196x128xf32>
    %17 = arith.truncf %16 : vector<196x128xf32> to vector<196x128xbf16>
    %c0_18 = arith.constant 0 : index
    %c0_19 = arith.constant 0 : index
    %c0_20 = arith.constant 0 : index
    %18 = vector.load %arg4[%c0_18, %c0_19, %c0_20] : memref<1x196x128xbf16, #tpu.memory_space<vmem>>, vector<1x196x128xbf16>
    %19 = vector.shape_cast %18 : vector<1x196x128xbf16> to vector<196x128xbf16>
    %20 = vector.shape_cast %17 : vector<196x128xbf16> to vector<1x196x128xbf16>
    tpu.vector_store %arg4[%c0_18, %c0_19, %c0_20], %20 {strides = array<i32>} : memref<1x196x128xbf16, #tpu.memory_space<vmem>>, vector<1x196x128xbf16>,
    return
  }
  func.func @transform_0(%arg0: i32) -> (i32, i32, i32) {
    %c0_i32 = arith.constant 0 : i32
    %c0_i32_0 = arith.constant 0 : i32
    %c0_i32_1 = arith.constant 0 : i32
    return %arg0, %c0_i32, %c0_i32_0 : i32, i32, i32
  }
  func.func @transform_1(%arg0: i32) -> (i32, i32) {
    %c0_i32 = arith.constant 0 : i32
    %c0_i32_0 = arith.constant 0 : i32
    %c0_i32_1 = arith.constant 0 : i32
    return %c0_i32, %c0_i32_0 : i32, i32
  }
  func.func @transform_2(%arg0: i32) -> (i32, i32) {
    %c0_i32 = arith.constant 0 : i32
    %c0_i32_0 = arith.constant 0 : i32
    %c0_i32_1 = arith.constant 0 : i32
    return %c0_i32, %c0_i32_0 : i32, i32
  }
  func.func @transform_3(%arg0: i32) -> (i32, i32, i32) {
    %c0_i32 = arith.constant 0 : i32
    %c0_i32_0 = arith.constant 0 : i32
    %c0_i32_1 = arith.constant 0 : i32
    return %arg0, %c0_i32, %c0_i32_0 : i32, i32, i32
  }
}

module attributes {stable_mosaic.version = 11 : i64} {
  func.func @_conv_relu_pool_kernel(%arg0: i32, %arg1: memref<1x100x512xbf16, #tpu.memory_space<vmem>>, %arg2: memref<512x128xbf16, #tpu.memory_space<vmem>>, %arg3: memref<1x128xf32, #tpu.memory_space<vmem>>, %arg4: memref<1x25x128xbf16, #tpu.memory_space<vmem>>, %arg5: memref<100x128xf32, #tpu.memory_space<vmem>>, %arg6: memref<50x128xf32, #tpu.memory_space<vmem>>) attributes {dimension_semantics = [#tpu.dimension_semantics<parallel>], iteration_bounds = array<i64: 2>, scalar_prefetch = 0 : i64, scratch_operands = 2 : i64, tpu.core_type = #tpu.core_type<tc>, window_params = [{transform_indices = @transform_0, window_bounds = array<i64: 1, 100, 512>}, {pipeline_mode = #tpu.pipeline_mode<synchronous>, transform_indices = @transform_1, window_bounds = array<i64: 512, 128>}, {pipeline_mode = #tpu.pipeline_mode<synchronous>, transform_indices = @transform_2, window_bounds = array<i64: 1, 128>}, {transform_indices = @transform_3, window_bounds = array<i64: 1, 25, 128>}]} {
    %c0 = arith.constant 0 : index
    %c0_0 = arith.constant 0 : index
    %c0_1 = arith.constant 0 : index
    %0 = vector.load %arg1[%c0, %c0_0, %c0_1] : memref<1x100x512xbf16, #tpu.memory_space<vmem>>, vector<1x100x512xbf16>
    %1 = vector.shape_cast %0 : vector<1x100x512xbf16> to vector<100x512xbf16>
    %c0_2 = arith.constant 0 : index
    %c0_3 = arith.constant 0 : index
    %2 = vector.load %arg2[%c0_2, %c0_3] : memref<512x128xbf16, #tpu.memory_space<vmem>>, vector<512x128xbf16>
    %cst = arith.constant dense<0.000000e+00> : vector<100x128xf32>
    %3 = tpu.matmul %1, %2, %cst {dimension_numbers = #tpu.dot_dimension_numbers<[1], [0], [0], [1], [0, 0, 1, 1], [], []>} : vector<100x512xbf16>, vector<512x128xbf16>, vector<100x128xf32> -> vector<100x128xf32>
    %c0_4 = arith.constant 0 : index
    %c0_5 = arith.constant 0 : index
    %4 = vector.load %arg3[%c0_4, %c0_5] : memref<1x128xf32, #tpu.memory_space<vmem>>, vector<1x128xf32>
    %5 = vector.broadcast %4 : vector<1x128xf32> to vector<100x128xf32>
    %6 = arith.addf %3, %5 : vector<100x128xf32>
    %cst_6 = arith.constant 0.000000e+00 : f32
    %7 = vector.broadcast %cst_6 : f32 to vector<100x128xf32>
    %8 = arith.maximumf %6, %7 : vector<100x128xf32>
    %c0_7 = arith.constant 0 : index
    %c0_8 = arith.constant 0 : index
    %9 = vector.load %arg5[%c0_7, %c0_8] : memref<100x128xf32, #tpu.memory_space<vmem>>, vector<100x128xf32>
    tpu.vector_store %arg5[%c0_7, %c0_8], %8 {strides = array<i32>} : memref<100x128xf32, #tpu.memory_space<vmem>>, vector<100x128xf32>,
    %c0_9 = arith.constant 0 : index
    %c0_10 = arith.constant 0 : index
    %10 = tpu.strided_load %arg5[%c0_9, %c0_10] {strides = array<i32: 2, 1>} : memref<100x128xf32, #tpu.memory_space<vmem>>, vector<50x128xf32>
    %c1 = arith.constant 1 : index
    %c0_11 = arith.constant 0 : index
    %11 = tpu.strided_load %arg5[%c1, %c0_11] {strides = array<i32: 2, 1>} : memref<100x128xf32, #tpu.memory_space<vmem>>, vector<50x128xf32>
    %12 = arith.maximumf %10, %11 : vector<50x128xf32>
    %c0_12 = arith.constant 0 : index
    %c0_13 = arith.constant 0 : index
    %13 = vector.load %arg6[%c0_12, %c0_13] : memref<50x128xf32, #tpu.memory_space<vmem>>, vector<50x128xf32>
    tpu.vector_store %arg6[%c0_12, %c0_13], %12 {strides = array<i32>} : memref<50x128xf32, #tpu.memory_space<vmem>>, vector<50x128xf32>,
    %c0_14 = arith.constant 0 : index
    %c0_15 = arith.constant 0 : index
    %14 = tpu.strided_load %arg6[%c0_14, %c0_15] {strides = array<i32: 2, 1>} : memref<50x128xf32, #tpu.memory_space<vmem>>, vector<25x128xf32>
    %c1_16 = arith.constant 1 : index
    %c0_17 = arith.constant 0 : index
    %15 = tpu.strided_load %arg6[%c1_16, %c0_17] {strides = array<i32: 2, 1>} : memref<50x128xf32, #tpu.memory_space<vmem>>, vector<25x128xf32>
    %16 = arith.maximumf %14, %15 : vector<25x128xf32>
    %17 = arith.truncf %16 : vector<25x128xf32> to vector<25x128xbf16>
    %c0_18 = arith.constant 0 : index
    %c0_19 = arith.constant 0 : index
    %c0_20 = arith.constant 0 : index
    %18 = vector.load %arg4[%c0_18, %c0_19, %c0_20] : memref<1x25x128xbf16, #tpu.memory_space<vmem>>, vector<1x25x128xbf16>
    %19 = vector.shape_cast %18 : vector<1x25x128xbf16> to vector<25x128xbf16>
    %20 = vector.shape_cast %17 : vector<25x128xbf16> to vector<1x25x128xbf16>
    tpu.vector_store %arg4[%c0_18, %c0_19, %c0_20], %20 {strides = array<i32>} : memref<1x25x128xbf16, #tpu.memory_space<vmem>>, vector<1x25x128xbf16>,
    return
  }
  func.func @transform_0(%arg0: i32) -> (i32, i32, i32) {
    %c0_i32 = arith.constant 0 : i32
    %c0_i32_0 = arith.constant 0 : i32
    %c0_i32_1 = arith.constant 0 : i32
    return %arg0, %c0_i32, %c0_i32_0 : i32, i32, i32
  }
  func.func @transform_1(%arg0: i32) -> (i32, i32) {
    %c0_i32 = arith.constant 0 : i32
    %c0_i32_0 = arith.constant 0 : i32
    %c0_i32_1 = arith.constant 0 : i32
    return %c0_i32, %c0_i32_0 : i32, i32
  }
  func.func @transform_2(%arg0: i32) -> (i32, i32) {
    %c0_i32 = arith.constant 0 : i32
    %c0_i32_0 = arith.constant 0 : i32
    %c0_i32_1 = arith.constant 0 : i32
    return %c0_i32, %c0_i32_0 : i32, i32
  }
  func.func @transform_3(%arg0: i32) -> (i32, i32, i32) {
    %c0_i32 = arith.constant 0 : i32
    %c0_i32_0 = arith.constant 0 : i32
    %c0_i32_1 = arith.constant 0 : i32
    return %arg0, %c0_i32, %c0_i32_0 : i32, i32, i32
  }
}

module attributes {stable_mosaic.version = 11 : i64} {
  func.func @_fc_head_kernel(%arg0: i32, %arg1: memref<2x1280xbf16, #tpu.memory_space<vmem>>, %arg2: memref<1280x512xbf16, #tpu.memory_space<vmem>>, %arg3: memref<1x512xf32, #tpu.memory_space<vmem>>, %arg4: memref<512x128xbf16, #tpu.memory_space<vmem>>, %arg5: memref<1x128xf32, #tpu.memory_space<vmem>>, %arg6: memref<2x128xf32, #tpu.memory_space<vmem>>) attributes {dimension_semantics = [#tpu.dimension_semantics<arbitrary>], iteration_bounds = array<i64: 1>, scalar_prefetch = 0 : i64, scratch_operands = 0 : i64, tpu.core_type = #tpu.core_type<tc>, window_params = [{pipeline_mode = #tpu.pipeline_mode<synchronous>, transform_indices = @transform_0, window_bounds = array<i64: 2, 1280>}, {pipeline_mode = #tpu.pipeline_mode<synchronous>, transform_indices = @transform_1, window_bounds = array<i64: 1280, 512>}, {pipeline_mode = #tpu.pipeline_mode<synchronous>, transform_indices = @transform_2, window_bounds = array<i64: 1, 512>}, {pipeline_mode = #tpu.pipeline_mode<synchronous>, transform_indices = @transform_3, window_bounds = array<i64: 512, 128>}, {pipeline_mode = #tpu.pipeline_mode<synchronous>, transform_indices = @transform_4, window_bounds = array<i64: 1, 128>}, {pipeline_mode = #tpu.pipeline_mode<synchronous>, transform_indices = @transform_5, window_bounds = array<i64: 2, 128>}]} {
    %c0 = arith.constant 0 : index
    %c0_0 = arith.constant 0 : index
    %0 = vector.load %arg1[%c0, %c0_0] : memref<2x1280xbf16, #tpu.memory_space<vmem>>, vector<2x1280xbf16>
    %c0_1 = arith.constant 0 : index
    %c0_2 = arith.constant 0 : index
    %1 = vector.load %arg2[%c0_1, %c0_2] : memref<1280x512xbf16, #tpu.memory_space<vmem>>, vector<1280x512xbf16>
    %cst = arith.constant dense<0.000000e+00> : vector<2x512xf32>
    %2 = tpu.matmul %0, %1, %cst {dimension_numbers = #tpu.dot_dimension_numbers<[1], [0], [0], [1], [0, 0, 1, 1], [], []>} : vector<2x1280xbf16>, vector<1280x512xbf16>, vector<2x512xf32> -> vector<2x512xf32>
    %c0_3 = arith.constant 0 : index
    %c0_4 = arith.constant 0 : index
    %3 = vector.load %arg3[%c0_3, %c0_4] : memref<1x512xf32, #tpu.memory_space<vmem>>, vector<1x512xf32>
    %4 = vector.broadcast %3 : vector<1x512xf32> to vector<2x512xf32>
    %5 = arith.addf %2, %4 : vector<2x512xf32>
    %cst_5 = arith.constant 0.000000e+00 : f32
    %6 = vector.broadcast %cst_5 : f32 to vector<2x512xf32>
    %7 = arith.maximumf %5, %6 : vector<2x512xf32>
    %8 = arith.truncf %7 : vector<2x512xf32> to vector<2x512xbf16>
    %c0_6 = arith.constant 0 : index
    %c0_7 = arith.constant 0 : index
    %9 = vector.load %arg4[%c0_6, %c0_7] : memref<512x128xbf16, #tpu.memory_space<vmem>>, vector<512x128xbf16>
    %cst_8 = arith.constant dense<0.000000e+00> : vector<2x128xf32>
    %10 = tpu.matmul %8, %9, %cst_8 {dimension_numbers = #tpu.dot_dimension_numbers<[1], [0], [0], [1], [0, 0, 1, 1], [], []>} : vector<2x512xbf16>, vector<512x128xbf16>, vector<2x128xf32> -> vector<2x128xf32>
    %c0_9 = arith.constant 0 : index
    %c0_10 = arith.constant 0 : index
    %11 = vector.load %arg5[%c0_9, %c0_10] : memref<1x128xf32, #tpu.memory_space<vmem>>, vector<1x128xf32>
    %12 = vector.broadcast %11 : vector<1x128xf32> to vector<2x128xf32>
    %13 = arith.addf %10, %12 : vector<2x128xf32>
    %c0_11 = arith.constant 0 : index
    %c0_12 = arith.constant 0 : index
    %14 = vector.load %arg6[%c0_11, %c0_12] : memref<2x128xf32, #tpu.memory_space<vmem>>, vector<2x128xf32>
    tpu.vector_store %arg6[%c0_11, %c0_12], %13 {strides = array<i32>} : memref<2x128xf32, #tpu.memory_space<vmem>>, vector<2x128xf32>,
    return
  }
  func.func @transform_0(%arg0: i32) -> (i32, i32) {
    %c0_i32 = arith.constant 0 : i32
    %c0_i32_0 = arith.constant 0 : i32
    %c0_i32_1 = arith.constant 0 : i32
    return %c0_i32, %c0_i32_0 : i32, i32
  }
  func.func @transform_1(%arg0: i32) -> (i32, i32) {
    %c0_i32 = arith.constant 0 : i32
    %c0_i32_0 = arith.constant 0 : i32
    %c0_i32_1 = arith.constant 0 : i32
    return %c0_i32, %c0_i32_0 : i32, i32
  }
  func.func @transform_2(%arg0: i32) -> (i32, i32) {
    %c0_i32 = arith.constant 0 : i32
    %c0_i32_0 = arith.constant 0 : i32
    %c0_i32_1 = arith.constant 0 : i32
    return %c0_i32, %c0_i32_0 : i32, i32
  }
  func.func @transform_3(%arg0: i32) -> (i32, i32) {
    %c0_i32 = arith.constant 0 : i32
    %c0_i32_0 = arith.constant 0 : i32
    %c0_i32_1 = arith.constant 0 : i32
    return %c0_i32, %c0_i32_0 : i32, i32
  }
  func.func @transform_4(%arg0: i32) -> (i32, i32) {
    %c0_i32 = arith.constant 0 : i32
    %c0_i32_0 = arith.constant 0 : i32
    %c0_i32_1 = arith.constant 0 : i32
    return %c0_i32, %c0_i32_0 : i32, i32
  }
  func.func @transform_5(%arg0: i32) -> (i32, i32) {
    %c0_i32 = arith.constant 0 : i32
    %c0_i32_0 = arith.constant 0 : i32
    %c0_i32_1 = arith.constant 0 : i32
    return %c0_i32, %c0_i32_0 : i32, i32
  }
}

</mosaic_0001>

<bundles_post_ra>
// kernel: net_forward.3
= control target key start
LH: loop header
LB: loop body
LE: loop exit
PB: predicated region body
PF: predicated region fallthrough
CT: control target
= control target key end

     0   :  { %s2427_s12 = smov 0   ;;  %s2760_s0 = inlined_call_operand.vmem [shape: bf16[2,784,128], index: 0, kind: input, shape index: {}]   ;;  %s2761_s1 = inlined_call_operand.vmem [shape: bf16[128,128], index: 1, kind: input, shape index: {}]   ;;  %s2762_s2 = inlined_call_operand.vmem [shape: f32[1,128], index: 2, kind: input, shape index: {}]   ;;  %s2763_s3 = inlined_call_operand.vmem [shape: bf16[2,196,128], index: 3, kind: output, shape index: {}]  }
   0x1 LB: > { %s1854_s13 = sadd.s32 4294967295, %s2403_s12   ;;  %p1858_p0 = scmp.ge.s32.totalorder %s2403_s12, 1  ;;  %s2403_s12 = sphi %s2427_s12, %s13_s12  }
   0x2   : > { %p137_p1 = scmp.lt.s32.totalorder %s2403_s12, 3 }
   0x4   : > { %p138_p2 = pnand %p1858_p0, %p137_p1 }
   0x5   : > { %v2339_v0 = vld [vmem:[%s2761_s1] sm:$0xff] (!%p138_p2)   ;;  %v2405_v1 = vmov (!%p138_p2), 0.0   ;;  %v2340_v2 = vld [vmem:[%s2761_s1 + $0x8] sm:$0xff] (!%p138_p2)   ;;  %p161_p3 = scmp.lt.s32.totalorder (!%p138_p2), %s1854_s13, 1  ;;  %vm2406_vm0 = vmmov (!%p138_p2), 0   ;;  %v2341_v3 = vld [vmem:[%s2761_s1 + $0x10] sm:$0xff] (!%p138_p2)  }
   0x6   : > { %141 = sbr.rel (%p138_p2) target bundleno = 472 (0x1d8), region = 32  ;;  %2099 = vmatprep.subr.bf16.mxu0 (!%p138_p2), %v2405_v1  ;;  %2311 = vmatprep.subr.bf16.mxu1 (!%p138_p2), %v2405_v1  ;;  %v2342_v4 = vld [vmem:[%s2761_s1 + $0x18] sm:$0xff] (!%p138_p2)   ;;  %v2343_v5 = vld [vmem:[%s2761_s1 + $0x20] sm:$0xff] (!%p138_p2)   ;;  %v2344_v6 = vld [vmem:[%s2761_s1 + $0x28] sm:$0xff] (!%p138_p2)  }
   0x7   : > { %2100 = vmatpush3.bf16.msra.mxu0 (!%p138_p2), %v2339_v0  ;;  %2319 = vmatpush3.bf16.msra.mxu1 (!%p138_p2), %v2339_v0  ;;  %v2345_v7 = vld [vmem:[%s2761_s1 + $0x30] sm:$0xff] (!%p138_p2)   ;;  %v2346_v8 = vld [vmem:[%s2761_s1 + $0x38] sm:$0xff] (!%p138_p2)   ;;  %v2633_v58 = vld [vmem:[%s2762_s2] ss:$0 sm:$0xff] (!%p138_p2) }
   0x8   : > { %2101 = vmatprep.subr.bf16.mxu0 (!%p138_p2), %v2405_v1  ;;  %2312 = vmatprep.subr.bf16.mxu1 (!%p138_p2), %v2405_v1 }
   0x9   : > { %2115 = vmatprep.mubr.msk.bf16.mxu0 (!%p138_p2), %vm2406_vm0, %v2405_v1  ;;  %2215 = vmatprep.mubr.msk.bf16.mxu1 (!%p138_p2), %vm2406_vm0, %v2405_v1 }
   0xb   : > { %2102 = vmatpush3.bf16.msra.mxu0 (!%p138_p2), %v2340_v2  ;;  %2320 = vmatpush3.bf16.msra.mxu1 (!%p138_p2), %v2340_v2 }
   0xc   : > { %2103 = vmatprep.subr.bf16.mxu0 (!%p138_p2), %v2405_v1  ;;  %2313 = vmatprep.subr.bf16.mxu1 (!%p138_p2), %v2405_v1 }
   0xd   : > { %s2765_s13 = smov (!%p161_p3, %s1854_s13), 1 }
   0xe   : > { %s2327_s20 = smul.u32 392, %s2765_s13 }
   0xf   : > { %2104 = vmatpush3.bf16.msra.mxu0 %v2341_v3  ;;  %2321 = vmatpush3.bf16.msra.mxu1 %v2341_v3  ;;  %s2328_s9 = smul.u32 100, %s2765_s13 }
  0x10   : > { %s2460_s23 = scalar_lea.vmem %s2760_s0, %s2327_s20  ;;  %2105 = vmatprep.subr.bf16.mxu0 %v2405_v1  ;;  %2314 = vmatprep.subr.bf16.mxu1 %v2405_v1 }
  0x11   : > { %v2347_v9 = vld [vmem:[%s2460_s23] sm:$0xff]   ;;  %v2348_v10 = vld [vmem:[%s2460_s23 + $0xc8] sm:$0xff]   ;;  %v2350_v12 = vld [vmem:[%s2460_s23 + $0xd0] sm:$0xff]   ;;  %s2665_s13 = scalar_lea.vmem %s2763_s3, %s2328_s9 }
  0x12   : > { %v2349_v11 = vld [vmem:[%s2460_s23 + $0x8] sm:$0xff]   ;;  %v2351_v13 = vld [vmem:[%s2460_s23 + $0x10] sm:$0xff]   ;;  %v2352_v14 = vld [vmem:[%s2460_s23 + $0xd8] sm:$0xff]  }
  0x13   : > { %2106 = vmatpush3.bf16.msra.mxu0 %v2342_v4  ;;  %2322 = vmatpush3.bf16.msra.mxu1 %v2342_v4  ;;  %v2353_v15 = vld [vmem:[%s2460_s23 + $0x18] sm:$0xff]   ;;  %v2354_v16 = vld [vmem:[%s2460_s23 + $0xe0] sm:$0xff]   ;;  %v2356_v18 = vld [vmem:[%s2460_s23 + $0xe8] sm:$0xff]  }
  0x14   : > { %2107 = vmatprep.subr.bf16.mxu0 %v2405_v1  ;;  %2315 = vmatprep.subr.bf16.mxu1 %v2405_v1  ;;  %v2355_v17 = vld [vmem:[%s2460_s23 + $0x20] sm:$0xff]   ;;  %v2357_v19 = vld [vmem:[%s2460_s23 + $0x28] sm:$0xff]   ;;  %v2358_v20 = vld [vmem:[%s2460_s23 + $0xf0] sm:$0xff]  }
  0x15   : > { %v2359_v21 = vld [vmem:[%s2460_s23 + $0x30] sm:$0xff]   ;;  %v2360_v22 = vld [vmem:[%s2460_s23 + $0xf8] sm:$0xff]   ;;  %v2362_v24 = vld [vmem:[%s2460_s23 + $0x100] sm:$0xff]  }
  0x16   : > { %v2361_v23 = vld [vmem:[%s2460_s23 + $0x38] sm:$0xff]   ;;  %v2363_v25 = vld [vmem:[%s2460_s23 + $0x40] sm:$0xff]   ;;  %v2364_v26 = vld [vmem:[%s2460_s23 + $0x108] sm:$0xff]  }
  0x17   : > { %2108 = vmatpush3.bf16.msra.mxu0 %v2343_v5  ;;  %2323 = vmatpush3.bf16.msra.mxu1 %v2343_v5  ;;  %v2365_v27 = vld [vmem:[%s2460_s23 + $0x48] sm:$0xff]   ;;  %v2366_v28 = vld [vmem:[%s2460_s23 + $0x110] sm:$0xff]   ;;  %v2368_v30 = vld [vmem:[%s2460_s23 + $0x118] sm:$0xff]  }
  0x18   : > { %2109 = vmatprep.subr.bf16.mxu0 %v2405_v1  ;;  %2316 = vmatprep.subr.bf16.mxu1 %v2405_v1  ;;  %v2367_v29 = vld [vmem:[%s2460_s23 + $0x50] sm:$0xff]   ;;  %v2369_v31 = vld [vmem:[%s2460_s23 + $0x58] sm:$0xff]   ;;  %v2370_v32 = vld [vmem:[%s2460_s23 + $0x120] sm:$0xff]  }
  0x19   : > { %v2371_v33 = vld [vmem:[%s2460_s23 + $0x60] sm:$0xff]   ;;  %v2372_v34 = vld [vmem:[%s2460_s23 + $0x128] sm:$0xff]   ;;  %v2374_v36 = vld [vmem:[%s2460_s23 + $0x130] sm:$0xff]  }
  0x1a   : > { %v2373_v35 = vld [vmem:[%s2460_s23 + $0x68] sm:$0xff]   ;;  %v2375_v37 = vld [vmem:[%s2460_s23 + $0x70] sm:$0xff]   ;;  %v2376_v38 = vld [vmem:[%s2460_s23 + $0x138] sm:$0xff]  }
  0x1b   : > { %2110 = vmatpush3.bf16.msra.mxu0 %v2344_v6  ;;  %2324 = vmatpush3.bf16.msra.mxu1 %v2344_v6  ;;  %v2377_v39 = vld [vmem:[%s2460_s23 + $0x78] sm:$0xff]   ;;  %v2378_v40 = vld [vmem:[%s2460_s23 + $0x140] sm:$0xff]   ;;  %v2380_v42 = vld [vmem:[%s2460_s23 + $0x148] sm:$0xff]  }
  0x1c   : > { %2111 = vmatprep.subr.bf16.mxu0 %v2405_v1  ;;  %2317 = vmatprep.subr.bf16.mxu1 %v2405_v1  ;;  %v2379_v41 = vld [vmem:[%s2460_s23 + $0x80] sm:$0xff]   ;;  %v2381_v43 = vld [vmem:[%s2460_s23 + $0x88] sm:$0xff]   ;;  %v2382_v44 = vld [vmem:[%s2460_s23 + $0x150] sm:$0xff]  }
  0x1d   : > { %v2383_v45 = vld [vmem:[%s2460_s23 + $0x90] sm:$0xff]   ;;  %v2384_v46 = vld [vmem:[%s2460_s23 + $0x158] sm:$0xff]   ;;  %v2386_v48 = vld [vmem:[%s2460_s23 + $0x160] sm:$0xff]  }
  0x1e   : > { %v2385_v47 = vld [vmem:[%s2460_s23 + $0x98] sm:$0xff]   ;;  %v2387_v49 = vld [vmem:[%s2460_s23 + $0xa0] sm:$0xff]   ;;  %v2388_v50 = vld [vmem:[%s2460_s23 + $0x168] sm:$0xff]  }
  0x1f   : > { %2112 = vmatpush3.bf16.msra.mxu0 %v2345_v7  ;;  %2325 = vmatpush3.bf16.msra.mxu1 %v2345_v7  ;;  %v2389_v51 = vld [vmem:[%s2460_s23 + $0xa8] sm:$0xff]   ;;  %v2390_v52 = vld [vmem:[%s2460_s23 + $0x170] sm:$0xff]   ;;  %v2392_v54 = vld [vmem:[%s2460_s23 + $0x178] sm:$0xff]  }
  0x20   : > { %2113 = vmatprep.subr.bf16.mxu0 %v2405_v1  ;;  %2318 = vmatprep.subr.bf16.mxu1 %v2405_v1  ;;  %v2391_v53 = vld [vmem:[%s2460_s23 + $0xb0] sm:$0xff]   ;;  %v2393_v55 = vld [vmem:[%s2460_s23 + $0xb8] sm:$0xff]   ;;  %v2394_v56 = vld [vmem:[%s2460_s23 + $0x180] sm:$0xff]  }
  0x21   : > { %v2395_v57 = vld [vmem:[%s2460_s23 + $0xc0] sm:$0xff]  }
  0x23   : > { %2114 = vmatpush3.bf16.msra.mxu0 %v2346_v8  ;;  %2326 = vmatpush3.bf16.msra.mxu1 %v2346_v8 }
  0x26   : > { %2116 = vmatmul.mubr.bf16.vlgmr.msra.gmra.mrb[0].mxu0 %v2347_v9  ;;  %2216 = vmatmul.mubr.bf16.vlgmr.msra.gmra.mrb[0].mxu1 %v2348_v10 }
  0x27   : > { %2119 = vmatprep.mubr.msk.bf16.mxu0 %vm2406_vm0, %v2405_v1  ;;  %2219 = vmatprep.mubr.msk.bf16.mxu1 %vm2406_vm0, %v2405_v1 }
  0x2e   : > { %2120 = vmatmul.mubr.bf16.gmra.mrb[4].mxu0 %v2349_v11  ;;  %2220 = vmatmul.mubr.bf16.gmra.mrb[4].mxu1 %v2350_v12 }
  0x2f   : > { %2123 = vmatprep.mubr.msk.bf16.mxu0 %vm2406_vm0, %v2405_v1  ;;  %2223 = vmatprep.mubr.msk.bf16.mxu1 %vm2406_vm0, %v2405_v1 }
  0x36   : > { %2124 = vmatmul.mubr.bf16.gmra.mrb[8].mxu0 %v2351_v13  ;;  %2224 = vmatmul.mubr.bf16.gmra.mrb[8].mxu1 %v2352_v14 }
  0x37   : > { %2127 = vmatprep.mubr.msk.bf16.mxu0 %vm2406_vm0, %v2405_v1  ;;  %2227 = vmatprep.mubr.msk.bf16.mxu1 %vm2406_vm0, %v2405_v1 }
  0x3e   : > { %2128 = vmatmul.mubr.bf16.gmra.mrb[12].mxu0 %v2353_v15  ;;  %2228 = vmatmul.mubr.bf16.gmra.mrb[12].mxu1 %v2354_v16 }
  0x3f   : > { %2131 = vmatprep.mubr.msk.bf16.mxu0 %vm2406_vm0, %v2405_v1  ;;  %2231 = vmatprep.mubr.msk.bf16.mxu1 %vm2406_vm0, %v2405_v1 }
  0x46   : > { %2132 = vmatmul.mubr.bf16.gmra.mrb[16].mxu0 %v2355_v17  ;;  %2232 = vmatmul.mubr.bf16.gmra.mrb[16].mxu1 %v2356_v18 }
  0x47   : > { %2135 = vmatprep.mubr.msk.bf16.mxu0 %vm2406_vm0, %v2405_v1  ;;  %2235 = vmatprep.mubr.msk.bf16.mxu1 %vm2406_vm0, %v2405_v1 }
  0x4e   : > { %2136 = vmatmul.mubr.bf16.gmra.mrb[20].mxu0 %v2357_v19  ;;  %2236 = vmatmul.mubr.bf16.gmra.mrb[20].mxu1 %v2358_v20 }
  0x4f   : > { %2139 = vmatprep.mubr.msk.bf16.mxu0 %vm2406_vm0, %v2405_v1  ;;  %2239 = vmatprep.mubr.msk.bf16.mxu1 %vm2406_vm0, %v2405_v1 }
  0x56   : > { %2140 = vmatmul.mubr.bf16.gmra.mrb[24].mxu0 %v2359_v21  ;;  %2240 = vmatmul.mubr.bf16.gmra.mrb[24].mxu1 %v2360_v22 }
  0x57   : > { %2143 = vmatprep.mubr.msk.bf16.mxu0 %vm2406_vm0, %v2405_v1  ;;  %2243 = vmatprep.mubr.msk.bf16.mxu1 %vm2406_vm0, %v2405_v1 }
  0x5e   : > { %2144 = vmatmul.mubr.bf16.gmra.mrb[28].mxu0 %v2361_v23  ;;  %2244 = vmatmul.mubr.bf16.gmra.mrb[28].mxu1 %v2362_v24 }
  0x5f   : > { %2147 = vmatprep.mubr.msk.bf16.mxu0 %vm2406_vm0, %v2405_v1  ;;  %2247 = vmatprep.mubr.msk.bf16.mxu1 %vm2406_vm0, %v2405_v1 }
  0x66   : > { %2148 = vmatmul.mubr.bf16.gmra.mrb[32].mxu0 %v2363_v25  ;;  %2248 = vmatmul.mubr.bf16.gmra.mrb[32].mxu1 %v2364_v26 }
  0x67   : > { %2151 = vmatprep.mubr.msk.bf16.mxu0 %vm2406_vm0, %v2405_v1  ;;  %2251 = vmatprep.mubr.msk.bf16.mxu1 %vm2406_vm0, %v2405_v1 }
  0x6e   : > { %2152 = vmatmul.mubr.bf16.gmra.mrb[36].mxu0 %v2365_v27  ;;  %2252 = vmatmul.mubr.bf16.gmra.mrb[36].mxu1 %v2366_v28 }
  0x6f   : > { %2155 = vmatprep.mubr.msk.bf16.mxu0 %vm2406_vm0, %v2405_v1  ;;  %2255 = vmatprep.mubr.msk.bf16.mxu1 %vm2406_vm0, %v2405_v1 }
  0x76   : > { %2156 = vmatmul.mubr.bf16.gmra.mrb[40].mxu0 %v2367_v29  ;;  %2256 = vmatmul.mubr.bf16.gmra.mrb[40].mxu1 %v2368_v30 }
  0x77   : > { %2159 = vmatprep.mubr.msk.bf16.mxu0 %vm2406_vm0, %v2405_v1  ;;  %2259 = vmatprep.mubr.msk.bf16.mxu1 %vm2406_vm0, %v2405_v1 }
  0x7e   : > { %2160 = vmatmul.mubr.bf16.gmra.mrb[44].mxu0 %v2369_v31  ;;  %2260 = vmatmul.mubr.bf16.gmra.mrb[44].mxu1 %v2370_v32 }
  0x7f   : > { %2163 = vmatprep.mubr.msk.bf16.mxu0 %vm2406_vm0, %v2405_v1  ;;  %2263 = vmatprep.mubr.msk.bf16.mxu1 %vm2406_vm0, %v2405_v1 }
  0x86   : > { %2164 = vmatmul.mubr.bf16.gmra.mrb[48].mxu0 %v2371_v33  ;;  %2264 = vmatmul.mubr.bf16.gmra.mrb[48].mxu1 %v2372_v34 }
  0x87   : > { %2167 = vmatprep.mubr.msk.bf16.mxu0 %vm2406_vm0, %v2405_v1  ;;  %2267 = vmatprep.mubr.msk.bf16.mxu1 %vm2406_vm0, %v2405_v1 }
  0x8e   : > { %2168 = vmatmul.mubr.bf16.gmra.mrb[52].mxu0 %v2373_v35  ;;  %2268 = vmatmul.mubr.bf16.gmra.mrb[52].mxu1 %v2374_v36 }
  0x8f   : > { %2171 = vmatprep.mubr.msk.bf16.mxu0 %vm2406_vm0, %v2405_v1  ;;  %2271 = vmatprep.mubr.msk.bf16.mxu1 %vm2406_vm0, %v2405_v1 }
  0x96   : > { %2172 = vmatmul.mubr.bf16.gmra.mrb[56].mxu0 %v2375_v37  ;;  %2272 = vmatmul.mubr.bf16.gmra.mrb[56].mxu1 %v2376_v38 }
  0x97   : > { %2175 = vmatprep.mubr.msk.bf16.mxu0 %vm2406_vm0, %v2405_v1  ;;  %2275 = vmatprep.mubr.msk.bf16.mxu1 %vm2406_vm0, %v2405_v1 }
  0x9e   : > { %2176 = vmatmul.mubr.bf16.gmra.mrb[60].mxu0 %v2377_v39  ;;  %2276 = vmatmul.mubr.bf16.gmra.mrb[60].mxu1 %v2378_v40 }
  0x9f   : > { %2179 = vmatprep.mubr.msk.bf16.mxu0 %vm2406_vm0, %v2405_v1  ;;  %2279 = vmatprep.mubr.msk.bf16.mxu1 %vm2406_vm0, %v2405_v1 }
  0xa6   : > { %2180 = vmatmul.mubr.bf16.gmra.mrb[64].mxu0 %v2379_v41  ;;  %2280 = vmatmul.mubr.bf16.gmra.mrb[64].mxu1 %v2380_v42 }
  0xa7   : > { %2183 = vmatprep.mubr.msk.bf16.mxu0 %vm2406_vm0, %v2405_v1  ;;  %2283 = vmatprep.mubr.msk.bf16.mxu1 %vm2406_vm0, %v2405_v1 }
  0xae   : > { %2184 = vmatmul.mubr.bf16.gmra.mrb[68].mxu0 %v2381_v43  ;;  %2284 = vmatmul.mubr.bf16.gmra.mrb[68].mxu1 %v2382_v44 }
  0xaf   : > { %2187 = vmatprep.mubr.msk.bf16.mxu0 %vm2406_vm0, %v2405_v1  ;;  %2287 = vmatprep.mubr.msk.bf16.mxu1 %vm2406_vm0, %v2405_v1 }
  0xb6   : > { %2188 = vmatmul.mubr.bf16.gmra.mrb[72].mxu0 %v2383_v45  ;;  %2288 = vmatmul.mubr.bf16.gmra.mrb[72].mxu1 %v2384_v46 }
  0xb7   : > { %2191 = vmatprep.mubr.msk.bf16.mxu0 %vm2406_vm0, %v2405_v1  ;;  %2291 = vmatprep.mubr.msk.bf16.mxu1 %vm2406_vm0, %v2405_v1 }
  0xbe   : > { %2192 = vmatmul.mubr.bf16.gmra.mrb[76].mxu0 %v2385_v47  ;;  %2292 = vmatmul.mubr.bf16.gmra.mrb[76].mxu1 %v2386_v48 }
  0xbf   : > { %2195 = vmatprep.mubr.msk.bf16.mxu0 %vm2406_vm0, %v2405_v1  ;;  %2295 = vmatprep.mubr.msk.bf16.mxu1 %vm2406_vm0, %v2405_v1 }
  0xc6   : > { %2196 = vmatmul.mubr.bf16.gmra.mrb[80].mxu0 %v2387_v49  ;;  %2296 = vmatmul.mubr.bf16.gmra.mrb[80].mxu1 %v2388_v50 }
  0xc7   : > { %2199 = vmatprep.mubr.msk.bf16.mxu0 %vm2406_vm0, %v2405_v1  ;;  %2299 = vmatprep.mubr.msk.bf16.mxu1 %vm2406_vm0, %v2405_v1 }
  0xce   : > { %2200 = vmatmul.mubr.bf16.gmra.mrb[84].mxu0 %v2389_v51  ;;  %2300 = vmatmul.mubr.bf16.gmra.mrb[84].mxu1 %v2390_v52 }
  0xcf   : > { %2203 = vmatprep.mubr.msk.bf16.mxu0 %vm2406_vm0, %v2405_v1  ;;  %2303 = vmatprep.mubr.msk.bf16.mxu1 %vm2406_vm0, %v2405_v1 }
  0xd6   : > { %2204 = vmatmul.mubr.bf16.gmra.mrb[88].mxu0 %v2391_v53  ;;  %2304 = vmatmul.mubr.bf16.gmra.mrb[88].mxu1 %v2392_v54 }
  0xd7   : > { %2207 = vmatprep.mubr.msk.bf16.mxu0 %vm2406_vm0, %v2405_v1  ;;  %2307 = vmatprep.mubr.msk.bf16.mxu1 %vm2406_vm0, %v2405_v1 }
  0xde   : > { %2208 = vmatmul.mubr.bf16.gmra.mrb[92].mxu0 %v2393_v55  ;;  %2308 = vmatmul.mubr.bf16.gmra.mrb[92].mxu1 %v2394_v56 }
  0xdf   : > { %2211 = vmatprep.mubr.msk.bf16.mxu0 %vm2406_vm0, %v2405_v1 }
  0xe6   : > { %2212 = vmatmul.mubr.bf16.gmra.mrb[96].mxu0 %v2395_v57 }
  0xf9   : > { %v669_v59 = vpop.f32.mrb[0].mxu0  ;;  %v869_v60 = vpop.f32.mrb[0].mxu1 }
  0xfa   : > { %v670_v61 = vadd.f32 %v2633_v58, %v669_v59  ;;  %v2117_v62 = vpop.f32.mrb[1].mxu0  ;;  %v870_v63 = vadd.f32 %v2633_v58, %v869_v60  ;;  %v2217_v0 = vpop.f32.mrb[1].mxu1 }
  0xfb   : > { %v672_v2 = vpop.f32.mrb[2].mxu0  ;;  %v872_v3 = vpop.f32.mrb[2].mxu1 }
  0xfc   : > { %v1060_v4 = vmax.f32 %v670_v61, 0.0  ;;  %v673_v1 = vadd.f32 %v2633_v58, %v672_v2  ;;  %v2118_v5 = vpop.f32.mrb[3].mxu0  ;;  %v1110_v6 = vmax.f32 %v870_v63, 0.0  ;;  %v873_v7 = vadd.f32 %v2633_v58, %v872_v3  ;;  %v2218_v8 = vpop.f32.mrb[3].mxu1 }
  0xfe   : > { %1158 = vst [vmem:[#allocation2] sm:$0xff] %v1060_v4  ;;  %v1061_v9 = vmax.f32 %v673_v1, 0.0  ;;  %1208 = vst [vmem:[#allocation2 + $0x190] sm:$0xff] %v1110_v6  ;;  %v1111_v10 = vmax.f32 %v873_v7, 0.0 }
 0x100   : > { %1159 = vst [vmem:[#allocation2 + $0x8] sm:$0xff] %v1061_v9  ;;  %1209 = vst [vmem:[#allocation2 + $0x198] sm:$0xff] %v1111_v10 }
 0x101   : > { %v677_v11 = vpop.f32.mrb[4].mxu0  ;;  %v877_v12 = vpop.f32.mrb[4].mxu1 }
 0x102   : > { %v678_v13 = vadd.f32 %v2633_v58, %v677_v11  ;;  %v2121_v14 = vpop.f32.mrb[5].mxu0  ;;  %v878_v15 = vadd.f32 %v2633_v58, %v877_v12  ;;  %v2221_v16 = vpop.f32.mrb[5].mxu1 }
 0x103   : > { %v680_v17 = vpop.f32.mrb[6].mxu0  ;;  %v880_v18 = vpop.f32.mrb[6].mxu1 }
 0x104   : > { %v1062_v19 = vmax.f32 %v678_v13, 0.0  ;;  %v681_v20 = vadd.f32 %v2633_v58, %v680_v17  ;;  %v2122_v21 = vpop.f32.mrb[7].mxu0  ;;  %v1112_v22 = vmax.f32 %v878_v15, 0.0  ;;  %v881_v23 = vadd.f32 %v2633_v58, %v880_v18  ;;  %v2222_v24 = vpop.f32.mrb[7].mxu1 }
 0x106   : > { %1160 = vst [vmem:[#allocation2 + $0x10] sm:$0xff] %v1062_v19  ;;  %v1063_v25 = vmax.f32 %v681_v20, 0.0  ;;  %1210 = vst [vmem:[#allocation2 + $0x1a0] sm:$0xff] %v1112_v22  ;;  %v1113_v26 = vmax.f32 %v881_v23, 0.0 }
 0x107   : > { %v1256_v27 = vld [vmem:[#allocation2] ss:$2 sm:$0xff]  ;;  %v1354_v28 = vld [vmem:[#allocation2 + $0x1] ss:$2 sm:$0xff]  ;;  %v1306_v29 = vld [vmem:[#allocation2 + $0x190] ss:$2 sm:$0xff] }
 0x108   : > { %v1451_v30 = vmax.f32 %v1256_v27, %v1354_v28  ;;  %v1404_v31 = vld [vmem:[#allocation2 + $0x191] ss:$2 sm:$0xff]  ;;  %1161 = vst [vmem:[#allocation2 + $0x18] sm:$0xff] %v1063_v25  ;;  %1211 = vst [vmem:[#allocation2 + $0x1a8] sm:$0xff] %v1113_v26 }
 0x109   : > { %v1476_v32 = vmax.f32 %v1306_v29, %v1404_v31  ;;  %v685_v33 = vpop.f32.mrb[8].mxu0  ;;  %v885_v34 = vpop.f32.mrb[8].mxu1 }
 0x10a   : > { %1500 = vst [vmem:[#allocation3] sm:$0xff] %v1451_v30  ;;  %v686_v35 = vadd.f32 %v2633_v58, %v685_v33  ;;  %v886_v36 = vadd.f32 %v2633_v58, %v885_v34  ;;  %v2125_v37 = vpop.f32.mrb[9].mxu0  ;;  %v2225_v38 = vpop.f32.mrb[9].mxu1 }
 0x10b   : > { %1525 = vst [vmem:[#allocation3 + $0xc8] sm:$0xff] %v1476_v32  ;;  %v688_v39 = vpop.f32.mrb[10].mxu0  ;;  %v888_v40 = vpop.f32.mrb[10].mxu1 }
 0x10c   : > { %v1064_v41 = vmax.f32 %v686_v35, 0.0  ;;  %v1114_v42 = vmax.f32 %v886_v36, 0.0  ;;  %v689_v43 = vadd.f32 %v2633_v58, %v688_v39  ;;  %v889_v44 = vadd.f32 %v2633_v58, %v888_v40  ;;  %v2126_v45 = vpop.f32.mrb[11].mxu0  ;;  %v2226_v46 = vpop.f32.mrb[11].mxu1 }
 0x10e   : > { %1162 = vst [vmem:[#allocation2 + $0x20] sm:$0xff] %v1064_v41  ;;  %1212 = vst [vmem:[#allocation2 + $0x1b0] sm:$0xff] %v1114_v42  ;;  %v1065_v47 = vmax.f32 %v689_v43, 0.0  ;;  %v1115_v48 = vmax.f32 %v889_v44, 0.0 }
 0x10f   : > { %v1258_v49 = vld [vmem:[#allocation2 + $0x10] ss:$2 sm:$0xff]  ;;  %v1356_v50 = vld [vmem:[#allocation2 + $0x11] ss:$2 sm:$0xff]  ;;  %v1308_v51 = vld [vmem:[#allocation2 + $0x1a0] ss:$2 sm:$0xff] }
 0x110   : > { %v1452_v52 = vmax.f32 %v1258_v49, %v1356_v50  ;;  %v1406_v53 = vld [vmem:[#allocation2 + $0x1a1] ss:$2 sm:$0xff]  ;;  %1163 = vst [vmem:[#allocation2 + $0x28] sm:$0xff] %v1065_v47  ;;  %1213 = vst [vmem:[#allocation2 + $0x1b8] sm:$0xff] %v1115_v48 }
 0x111   : > { %v1477_v54 = vmax.f32 %v1308_v51, %v1406_v53  ;;  %v693_v55 = vpop.f32.mrb[12].mxu0  ;;  %v893_v56 = vpop.f32.mrb[12].mxu1 }
 0x112   : > { %1501 = vst [vmem:[#allocation3 + $0x8] sm:$0xff] %v1452_v52  ;;  %v694_v57 = vadd.f32 %v2633_v58, %v693_v55  ;;  %v2129_v59 = vpop.f32.mrb[13].mxu0  ;;  %v894_v60 = vadd.f32 %v2633_v58, %v893_v56  ;;  %v2229_v61 = vpop.f32.mrb[13].mxu1 }
 0x113   : > { %1526 = vst [vmem:[#allocation3 + $0xd0] sm:$0xff] %v1477_v54  ;;  %v696_v62 = vpop.f32.mrb[14].mxu0  ;;  %v896_v63 = vpop.f32.mrb[14].mxu1 }
 0x114   : > { %v1066_v0 = vmax.f32 %v694_v57, 0.0  ;;  %v697_v2 = vadd.f32 %v2633_v58, %v696_v62  ;;  %v2130_v3 = vpop.f32.mrb[15].mxu0  ;;  %v1116_v4 = vmax.f32 %v894_v60, 0.0  ;;  %v897_v1 = vadd.f32 %v2633_v58, %v896_v63  ;;  %v2230_v5 = vpop.f32.mrb[15].mxu1 }
 0x116   : > { %1164 = vst [vmem:[#allocation2 + $0x30] sm:$0xff] %v1066_v0  ;;  %v1067_v6 = vmax.f32 %v697_v2, 0.0  ;;  %1214 = vst [vmem:[#allocation2 + $0x1c0] sm:$0xff] %v1116_v4  ;;  %v1117_v7 = vmax.f32 %v897_v1, 0.0 }
 0x117   : > { %v1260_v8 = vld [vmem:[#allocation2 + $0x20] ss:$2 sm:$0xff]  ;;  %v1358_v9 = vld [vmem:[#allocation2 + $0x21] ss:$2 sm:$0xff]  ;;  %v1310_v10 = vld [vmem:[#allocation2 + $0x1b0] ss:$2 sm:$0xff] }
 0x118   : > { %v1453_v11 = vmax.f32 %v1260_v8, %v1358_v9  ;;  %v1408_v12 = vld [vmem:[#allocation2 + $0x1b1] ss:$2 sm:$0xff]  ;;  %1165 = vst [vmem:[#allocation2 + $0x38] sm:$0xff] %v1067_v6  ;;  %1215 = vst [vmem:[#allocation2 + $0x1c8] sm:$0xff] %v1117_v7 }
 0x119   : > { %v1478_v13 = vmax.f32 %v1310_v10, %v1408_v12  ;;  %v701_v14 = vpop.f32.mrb[16].mxu0  ;;  %v901_v15 = vpop.f32.mrb[16].mxu1  ;;  %v1549_v50 = vld [vmem:[#allocation3] ss:$2 sm:$0xff]  ;;  %v1599_v51 = vld [vmem:[#allocation3 + $0x1] ss:$2 sm:$0xff] }
 0x11a   : > { %1502 = vst [vmem:[#allocation3 + $0x10] sm:$0xff] %v1453_v11  ;;  %v702_v16 = vadd.f32 %v2633_v58, %v701_v14  ;;  %v902_v17 = vadd.f32 %v2633_v58, %v901_v15  ;;  %v2133_v18 = vpop.f32.mrb[17].mxu0  ;;  %v2233_v19 = vpop.f32.mrb[17].mxu1  ;;  %v1648_v2 = vmax.f32 %v1549_v50, %v1599_v51 }
 0x11b   : > { %1527 = vst [vmem:[#allocation3 + $0xd8] sm:$0xff] %v1478_v13  ;;  %v704_v20 = vpop.f32.mrb[18].mxu0  ;;  %v904_v21 = vpop.f32.mrb[18].mxu1 }
 0x11c   : > { %v1068_v22 = vmax.f32 %v702_v16, 0.0  ;;  %v1118_v23 = vmax.f32 %v902_v17, 0.0  ;;  %v705_v24 = vadd.f32 %v2633_v58, %v704_v20  ;;  %v905_v25 = vadd.f32 %v2633_v58, %v904_v21  ;;  %v2134_v26 = vpop.f32.mrb[19].mxu0  ;;  %v2234_v27 = vpop.f32.mrb[19].mxu1 }
 0x11e   : > { %1166 = vst [vmem:[#allocation2 + $0x40] sm:$0xff] %v1068_v22  ;;  %1216 = vst [vmem:[#allocation2 + $0x1d0] sm:$0xff] %v1118_v23  ;;  %v1069_v28 = vmax.f32 %v705_v24, 0.0  ;;  %v1119_v29 = vmax.f32 %v905_v25, 0.0 }
 0x11f   : > { %v1262_v30 = vld [vmem:[#allocation2 + $0x30] ss:$2 sm:$0xff]  ;;  %v1360_v31 = vld [vmem:[#allocation2 + $0x31] ss:$2 sm:$0xff]  ;;  %v1312_v32 = vld [vmem:[#allocation2 + $0x1c0] ss:$2 sm:$0xff] }
 0x120   : > { %v1454_v33 = vmax.f32 %v1262_v30, %v1360_v31  ;;  %v1410_v34 = vld [vmem:[#allocation2 + $0x1c1] ss:$2 sm:$0xff]  ;;  %1167 = vst [vmem:[#allocation2 + $0x48] sm:$0xff] %v1069_v28  ;;  %1217 = vst [vmem:[#allocation2 + $0x1d8] sm:$0xff] %v1119_v29 }
 0x121   : > { %v1479_v35 = vmax.f32 %v1312_v32, %v1410_v34  ;;  %v709_v36 = vpop.f32.mrb[20].mxu0  ;;  %v909_v37 = vpop.f32.mrb[20].mxu1 }
 0x122   : > { %1503 = vst [vmem:[#allocation3 + $0x18] sm:$0xff] %v1454_v33  ;;  %v710_v38 = vadd.f32 %v2633_v58, %v709_v36  ;;  %v2137_v39 = vpop.f32.mrb[21].mxu0  ;;  %v910_v40 = vadd.f32 %v2633_v58, %v909_v37  ;;  %v2237_v41 = vpop.f32.mrb[21].mxu1 }
 0x123   : > { %1528 = vst [vmem:[#allocation3 + $0xe0] sm:$0xff] %v1479_v35  ;;  %v712_v42 = vpop.f32.mrb[22].mxu0  ;;  %v912_v43 = vpop.f32.mrb[22].mxu1 }
 0x124   : > { %v1070_v44 = vmax.f32 %v710_v38, 0.0  ;;  %v713_v45 = vadd.f32 %v2633_v58, %v712_v42  ;;  %v2138_v46 = vpop.f32.mrb[23].mxu0  ;;  %v1120_v47 = vmax.f32 %v910_v40, 0.0  ;;  %v913_v48 = vadd.f32 %v2633_v58, %v912_v43  ;;  %v2238_v49 = vpop.f32.mrb[23].mxu1 }
 0x126   : > { %1168 = vst [vmem:[#allocation2 + $0x50] sm:$0xff] %v1070_v44  ;;  %v1071_v52 = vmax.f32 %v713_v45, 0.0  ;;  %1218 = vst [vmem:[#allocation2 + $0x1e0] sm:$0xff] %v1120_v47  ;;  %v1121_v53 = vmax.f32 %v913_v48, 0.0 }
 0x127   : > { %v1264_v54 = vld [vmem:[#allocation2 + $0x40] ss:$2 sm:$0xff]  ;;  %v1362_v55 = vld [vmem:[#allocation2 + $0x41] ss:$2 sm:$0xff]  ;;  %v1314_v56 = vld [vmem:[#allocation2 + $0x1d0] ss:$2 sm:$0xff] }
 0x128   : > { %v1455_v57 = vmax.f32 %v1264_v54, %v1362_v55  ;;  %v1412_v59 = vld [vmem:[#allocation2 + $0x1d1] ss:$2 sm:$0xff]  ;;  %1169 = vst [vmem:[#allocation2 + $0x58] sm:$0xff] %v1071_v52  ;;  %1219 = vst [vmem:[#allocation2 + $0x1e8] sm:$0xff] %v1121_v53 }
 0x129   : > { %v1551_v60 = vld [vmem:[#allocation3 + $0x10] ss:$2 sm:$0xff]  ;;  %v1601_v61 = vld [vmem:[#allocation3 + $0x11] ss:$2 sm:$0xff]  ;;  %v1480_v62 = vmax.f32 %v1314_v56, %v1412_v59  ;;  %v717_v63 = vpop.f32.mrb[24].mxu0  ;;  %v917_v0 = vpop.f32.mrb[24].mxu1 }
 0x12a   : > { %v1649_v3 = vmax.f32 %v1551_v60, %v1601_v61  ;;  %1504 = vst [vmem:[#allocation3 + $0x20] sm:$0xff] %v1455_v57  ;;  %v718_v4 = vadd.f32 %v2633_v58, %v717_v63  ;;  %v918_v1 = vadd.f32 %v2633_v58, %v917_v0  ;;  %v2141_v5 = vpop.f32.mrb[25].mxu0  ;;  %v2241_v6 = vpop.f32.mrb[25].mxu1 }
 0x12b   : > { %1529 = vst [vmem:[#allocation3 + $0xe8] sm:$0xff] %v1480_v62  ;;  %v720_v7 = vpop.f32.mrb[26].mxu0  ;;  %v920_v8 = vpop.f32.mrb[26].mxu1 }
 0x12c   : > { %v1974_v9 = vpack.c.bf16 %v1649_v3, %v1648_v2  ;;  %v1072_v10 = vmax.f32 %v718_v4, 0.0  ;;  %v1122_v11 = vmax.f32 %v918_v1, 0.0  ;;  %v721_v12 = vadd.f32 %v2633_v58, %v720_v7  ;;  %v2142_v13 = vpop.f32.mrb[27].mxu0  ;;  %v2242_v14 = vpop.f32.mrb[27].mxu1 }
 0x12d   : > { %v921_v15 = vadd.f32 %v2633_v58, %v920_v8 }
 0x12e   : > { %1975 = vst [vmem:[%s2665_s13] sm:$0xff] %v1974_v9   ;;  %1170 = vst [vmem:[#allocation2 + $0x60] sm:$0xff] %v1072_v10  ;;  %v1073_v16 = vmax.f32 %v721_v12, 0.0 }
 0x12f   : > { %1220 = vst [vmem:[#allocation2 + $0x1f0] sm:$0xff] %v1122_v11  ;;  %v1266_v17 = vld [vmem:[#allocation2 + $0x50] ss:$2 sm:$0xff]  ;;  %v1364_v18 = vld [vmem:[#allocation2 + $0x51] ss:$2 sm:$0xff]  ;;  %v1123_v22 = vmax.f32 %v921_v15, 0.0 }
 0x130   : > { %v1316_v19 = vld [vmem:[#allocation2 + $0x1e0] ss:$2 sm:$0xff]  ;;  %v1456_v20 = vmax.f32 %v1266_v17, %v1364_v18  ;;  %v1414_v21 = vld [vmem:[#allocation2 + $0x1e1] ss:$2 sm:$0xff]  ;;  %1171 = vst [vmem:[#allocation2 + $0x68] sm:$0xff] %v1073_v16 }
 0x131   : > { %v1481_v23 = vmax.f32 %v1316_v19, %v1414_v21  ;;  %v725_v24 = vpop.f32.mrb[28].mxu0  ;;  %v925_v25 = vpop.f32.mrb[28].mxu1  ;;  %1221 = vst [vmem:[#allocation2 + $0x1f8] sm:$0xff] %v1123_v22 }
 0x132   : > { %1505 = vst [vmem:[#allocation3 + $0x28] sm:$0xff] %v1456_v20  ;;  %v726_v26 = vadd.f32 %v2633_v58, %v725_v24  ;;  %v2145_v27 = vpop.f32.mrb[29].mxu0  ;;  %v926_v28 = vadd.f32 %v2633_v58, %v925_v25  ;;  %v2245_v29 = vpop.f32.mrb[29].mxu1  ;;  %v1577_v7 = vld [vmem:[#allocation3 + $0xe0] ss:$2 sm:$0xff] }
 0x133   : > { %1530 = vst [vmem:[#allocation3 + $0xf0] sm:$0xff] %v1481_v23  ;;  %v728_v30 = vpop.f32.mrb[30].mxu0  ;;  %v928_v31 = vpop.f32.mrb[30].mxu1  ;;  %v1627_v8 = vld [vmem:[#allocation3 + $0xe1] ss:$2 sm:$0xff] }
 0x134   : > { %v1074_v32 = vmax.f32 %v726_v26, 0.0  ;;  %v729_v33 = vadd.f32 %v2633_v58, %v728_v30  ;;  %v2146_v34 = vpop.f32.mrb[31].mxu0  ;;  %v1124_v35 = vmax.f32 %v926_v28, 0.0  ;;  %v929_v36 = vadd.f32 %v2633_v58, %v928_v31  ;;  %v2246_v37 = vpop.f32.mrb[31].mxu1 }
 0x135   : > { %v1662_v21 = vmax.f32 %v1577_v7, %v1627_v8 }
 0x136   : > { %1172 = vst [vmem:[#allocation2 + $0x70] sm:$0xff] %v1074_v32  ;;  %v1075_v38 = vmax.f32 %v729_v33, 0.0  ;;  %1222 = vst [vmem:[#allocation2 + $0x200] sm:$0xff] %v1124_v35  ;;  %v1125_v39 = vmax.f32 %v929_v36, 0.0 }
 0x137   : > { %v1268_v40 = vld [vmem:[#allocation2 + $0x60] ss:$2 sm:$0xff]  ;;  %v1366_v41 = vld [vmem:[#allocation2 + $0x61] ss:$2 sm:$0xff] }
 0x138   : > { %v1457_v42 = vmax.f32 %v1268_v40, %v1366_v41  ;;  %1173 = vst [vmem:[#allocation2 + $0x78] sm:$0xff] %v1075_v38  ;;  %1223 = vst [vmem:[#allocation2 + $0x208] sm:$0xff] %v1125_v39  ;;  %v1318_v43 = vld [vmem:[#allocation2 + $0x1f0] ss:$2 sm:$0xff]  ;;  %v1416_v44 = vld [vmem:[#allocation2 + $0x1f1] ss:$2 sm:$0xff] }
 0x139   : > { %v733_v45 = vpop.f32.mrb[32].mxu0  ;;  %v933_v46 = vpop.f32.mrb[32].mxu1  ;;  %v1482_v47 = vmax.f32 %v1318_v43, %v1416_v44  ;;  %v1553_v27 = vld [vmem:[#allocation3 + $0x20] ss:$2 sm:$0xff]  ;;  %v1603_v28 = vld [vmem:[#allocation3 + $0x21] ss:$2 sm:$0xff] }
 0x13a   : > { %1506 = vst [vmem:[#allocation3 + $0x30] sm:$0xff] %v1457_v42  ;;  %v734_v48 = vadd.f32 %v2633_v58, %v733_v45  ;;  %v934_v49 = vadd.f32 %v2633_v58, %v933_v46  ;;  %v2149_v50 = vpop.f32.mrb[33].mxu0  ;;  %v2249_v51 = vpop.f32.mrb[33].mxu1  ;;  %v1650_v33 = vmax.f32 %v1553_v27, %v1603_v28 }
 0x13b   : > { %v736_v52 = vpop.f32.mrb[34].mxu0  ;;  %v936_v53 = vpop.f32.mrb[34].mxu1  ;;  %1531 = vst [vmem:[#allocation3 + $0xf8] sm:$0xff] %v1482_v47 }
 0x13c   : > { %v1076_v54 = vmax.f32 %v734_v48, 0.0  ;;  %v1126_v55 = vmax.f32 %v934_v49, 0.0  ;;  %v737_v56 = vadd.f32 %v2633_v58, %v736_v52  ;;  %v937_v57 = vadd.f32 %v2633_v58, %v936_v53  ;;  %v2150_v59 = vpop.f32.mrb[35].mxu0  ;;  %v2250_v60 = vpop.f32.mrb[35].mxu1 }
 0x13e   : > { %1174 = vst [vmem:[#allocation2 + $0x80] sm:$0xff] %v1076_v54  ;;  %1224 = vst [vmem:[#allocation2 + $0x210] sm:$0xff] %v1126_v55  ;;  %v1077_v3 = vmax.f32 %v737_v56, 0.0  ;;  %v1127_v4 = vmax.f32 %v937_v57, 0.0 }
 0x13f   : > { %v1270_v61 = vld [vmem:[#allocation2 + $0x70] ss:$2 sm:$0xff]  ;;  %v1368_v62 = vld [vmem:[#allocation2 + $0x71] ss:$2 sm:$0xff]  ;;  %v1320_v63 = vld [vmem:[#allocation2 + $0x200] ss:$2 sm:$0xff] }
 0x140   : > { %v1458_v0 = vmax.f32 %v1270_v61, %v1368_v62  ;;  %v1418_v2 = vld [vmem:[#allocation2 + $0x201] ss:$2 sm:$0xff]  ;;  %1175 = vst [vmem:[#allocation2 + $0x88] sm:$0xff] %v1077_v3  ;;  %1225 = vst [vmem:[#allocation2 + $0x218] sm:$0xff] %v1127_v4 }
 0x141   : > { %v1483_v1 = vmax.f32 %v1320_v63, %v1418_v2  ;;  %v741_v5 = vpop.f32.mrb[36].mxu0  ;;  %v941_v6 = vpop.f32.mrb[36].mxu1 }
 0x142   : > { %1507 = vst [vmem:[#allocation3 + $0x38] sm:$0xff] %v1458_v0  ;;  %v742_v9 = vadd.f32 %v2633_v58, %v741_v5  ;;  %v2153_v10 = vpop.f32.mrb[37].mxu0  ;;  %v942_v11 = vadd.f32 %v2633_v58, %v941_v6  ;;  %v2253_v12 = vpop.f32.mrb[37].mxu1  ;;  %v1579_v15 = vld [vmem:[#allocation3 + $0xf0] ss:$2 sm:$0xff] }
 0x143   : > { %1532 = vst [vmem:[#allocation3 + $0x100] sm:$0xff] %v1483_v1  ;;  %v744_v13 = vpop.f32.mrb[38].mxu0  ;;  %v944_v14 = vpop.f32.mrb[38].mxu1  ;;  %v1629_v16 = vld [vmem:[#allocation3 + $0xf1] ss:$2 sm:$0xff] }
 0x144   : > { %v1078_v17 = vmax.f32 %v742_v9, 0.0  ;;  %v745_v18 = vadd.f32 %v2633_v58, %v744_v13  ;;  %v2154_v19 = vpop.f32.mrb[39].mxu0  ;;  %v945_v20 = vadd.f32 %v2633_v58, %v944_v14  ;;  %v1663_v22 = vmax.f32 %v1579_v15, %v1629_v16  ;;  %v2254_v24 = vpop.f32.mrb[39].mxu1 }
 0x145   : > { %v1128_v23 = vmax.f32 %v942_v11, 0.0 }
 0x146   : > { %1176 = vst [vmem:[#allocation2 + $0x90] sm:$0xff] %v1078_v17  ;;  %v1079_v25 = vmax.f32 %v745_v18, 0.0  ;;  %v1129_v26 = vmax.f32 %v945_v20, 0.0  ;;  %v2009_v29 = vpack.c.bf16 %v1663_v22, %v1662_v21 }
 0x147   : > { %1226 = vst [vmem:[#allocation2 + $0x220] sm:$0xff] %v1128_v23  ;;  %v1272_v32 = vld [vmem:[#allocation2 + $0x80] ss:$2 sm:$0xff]  ;;  %v1370_v35 = vld [vmem:[#allocation2 + $0x81] ss:$2 sm:$0xff] }
 0x148   : > { %1177 = vst [vmem:[#allocation2 + $0x98] sm:$0xff] %v1079_v25  ;;  %1227 = vst [vmem:[#allocation2 + $0x228] sm:$0xff] %v1129_v26  ;;  %v1322_v36 = vld [vmem:[#allocation2 + $0x210] ss:$2 sm:$0xff]  ;;  %v1420_v37 = vld [vmem:[#allocation2 + $0x211] ss:$2 sm:$0xff]  ;;  %v1459_v38 = vmax.f32 %v1272_v32, %v1370_v35 }
 0x149   : > { %2037 = vst [vmem:[%s2665_s13 + $0x38] sm:$0xff] %v2009_v29   ;;  %v1555_v30 = vld [vmem:[#allocation3 + $0x30] ss:$2 sm:$0xff]  ;;  %v1605_v31 = vld [vmem:[#allocation3 + $0x31] ss:$2 sm:$0xff]  ;;  %v1484_v39 = vmax.f32 %v1322_v36, %v1420_v37  ;;  %v749_v40 = vpop.f32.mrb[40].mxu0 }
 0x14a   : > { %v1651_v34 = vmax.f32 %v1555_v30, %v1605_v31  ;;  %v949_v41 = vpop.f32.mrb[40].mxu1  ;;  %v750_v43 = vadd.f32 %v2633_v58, %v749_v40  ;;  %v2157_v45 = vpop.f32.mrb[41].mxu0  ;;  %1508 = vst [vmem:[#allocation3 + $0x40] sm:$0xff] %v1459_v38 }
 0x14b   : > { %v950_v44 = vadd.f32 %v2633_v58, %v949_v41  ;;  %v2257_v46 = vpop.f32.mrb[41].mxu1  ;;  %1533 = vst [vmem:[#allocation3 + $0x108] sm:$0xff] %v1484_v39  ;;  %v752_v47 = vpop.f32.mrb[42].mxu0 }
 0x14c   : > { %v1979_v42 = vpack.c.bf16 %v1651_v34, %v1650_v33  ;;  %v952_v48 = vpop.f32.mrb[42].mxu1  ;;  %v1080_v49 = vmax.f32 %v750_v43, 0.0  ;;  %v753_v51 = vadd.f32 %v2633_v58, %v752_v47  ;;  %v2158_v53 = vpop.f32.mrb[43].mxu0 }
 0x14d   : > { %v1130_v50 = vmax.f32 %v950_v44, 0.0  ;;  %v953_v52 = vadd.f32 %v2633_v58, %v952_v48  ;;  %v2258_v54 = vpop.f32.mrb[43].mxu1 }
 0x14e   : > { %2031 = vst [vmem:[%s2665_s13 + $0x8] sm:$0xff] %v1979_v42   ;;  %1178 = vst [vmem:[#allocation2 + $0xa0] sm:$0xff] %v1080_v49  ;;  %v1081_v61 = vmax.f32 %v753_v51, 0.0 }
 0x14f   : > { %v1274_v55 = vld [vmem:[#allocation2 + $0x90] ss:$2 sm:$0xff]  ;;  %v1372_v56 = vld [vmem:[#allocation2 + $0x91] ss:$2 sm:$0xff]  ;;  %v1324_v57 = vld [vmem:[#allocation2 + $0x220] ss:$2 sm:$0xff] }
 0x150   : > { %v1460_v59 = vmax.f32 %v1274_v55, %v1372_v56  ;;  %v1422_v60 = vld [vmem:[#allocation2 + $0x221] ss:$2 sm:$0xff]  ;;  %1228 = vst [vmem:[#allocation2 + $0x230] sm:$0xff] %v1130_v50  ;;  %v1131_v62 = vmax.f32 %v953_v52, 0.0  ;;  %1179 = vst [vmem:[#allocation2 + $0xa8] sm:$0xff] %v1081_v61 }
 0x151   : > { %v1485_v63 = vmax.f32 %v1324_v57, %v1422_v60  ;;  %v757_v0 = vpop.f32.mrb[44].mxu0  ;;  %v957_v2 = vpop.f32.mrb[44].mxu1 }
 0x152   : > { %1509 = vst [vmem:[#allocation3 + $0x48] sm:$0xff] %v1460_v59  ;;  %1229 = vst [vmem:[#allocation2 + $0x238] sm:$0xff] %v1131_v62  ;;  %v758_v3 = vadd.f32 %v2633_v58, %v757_v0  ;;  %v2161_v4 = vpop.f32.mrb[45].mxu0  ;;  %v958_v1 = vadd.f32 %v2633_v58, %v957_v2  ;;  %v2261_v5 = vpop.f32.mrb[45].mxu1  ;;  %v1581_v46 = vld [vmem:[#allocation3 + $0x100] ss:$2 sm:$0xff] }
 0x153   : > { %1534 = vst [vmem:[#allocation3 + $0x110] sm:$0xff] %v1485_v63  ;;  %v760_v6 = vpop.f32.mrb[46].mxu0  ;;  %v960_v7 = vpop.f32.mrb[46].mxu1  ;;  %v1631_v47 = vld [vmem:[#allocation3 + $0x101] ss:$2 sm:$0xff] }
 0x154   : > { %v1082_v8 = vmax.f32 %v758_v3, 0.0  ;;  %v761_v9 = vadd.f32 %v2633_v58, %v760_v6  ;;  %v2162_v10 = vpop.f32.mrb[47].mxu0  ;;  %v961_v11 = vadd.f32 %v2633_v58, %v960_v7  ;;  %v1132_v12 = vmax.f32 %v958_v1, 0.0  ;;  %v2262_v13 = vpop.f32.mrb[47].mxu1 }
 0x155   : > { %v1664_v61 = vmax.f32 %v1581_v46, %v1631_v47 }
 0x156   : > { %1180 = vst [vmem:[#allocation2 + $0xb0] sm:$0xff] %v1082_v8  ;;  %v1083_v14 = vmax.f32 %v761_v9, 0.0  ;;  %v1133_v15 = vmax.f32 %v961_v11, 0.0  ;;  %1230 = vst [vmem:[#allocation2 + $0x240] sm:$0xff] %v1132_v12 }
 0x157   : > { %v1276_v16 = vld [vmem:[#allocation2 + $0xa0] ss:$2 sm:$0xff]  ;;  %v1374_v17 = vld [vmem:[#allocation2 + $0xa1] ss:$2 sm:$0xff] }
 0x158   : > { %1181 = vst [vmem:[#allocation2 + $0xb8] sm:$0xff] %v1083_v14  ;;  %1231 = vst [vmem:[#allocation2 + $0x248] sm:$0xff] %v1133_v15  ;;  %v1461_v20 = vmax.f32 %v1276_v16, %v1374_v17 }
 0x159   : > { %v1326_v18 = vld [vmem:[#allocation2 + $0x230] ss:$2 sm:$0xff]  ;;  %v1424_v19 = vld [vmem:[#allocation2 + $0x231] ss:$2 sm:$0xff]  ;;  %v765_v22 = vpop.f32.mrb[48].mxu0  ;;  %v965_v23 = vpop.f32.mrb[48].mxu1 }
 0x15a   : > { %v1486_v21 = vmax.f32 %v1326_v18, %v1424_v19  ;;  %v766_v24 = vadd.f32 %v2633_v58, %v765_v22  ;;  %v966_v25 = vadd.f32 %v2633_v58, %v965_v23  ;;  %v2165_v26 = vpop.f32.mrb[49].mxu0  ;;  %v2265_v27 = vpop.f32.mrb[49].mxu1  ;;  %1510 = vst [vmem:[#allocation3 + $0x50] sm:$0xff] %v1461_v20  ;;  %v1557_v4 = vld [vmem:[#allocation3 + $0x40] ss:$2 sm:$0xff] }
 0x15b   : > { %v768_v28 = vpop.f32.mrb[50].mxu0  ;;  %v968_v29 = vpop.f32.mrb[50].mxu1  ;;  %v1607_v1 = vld [vmem:[#allocation3 + $0x41] ss:$2 sm:$0xff] }
 0x15c   : > { %1535 = vst [vmem:[#allocation3 + $0x118] sm:$0xff] %v1486_v21  ;;  %v1084_v30 = vmax.f32 %v766_v24, 0.0  ;;  %v1134_v31 = vmax.f32 %v966_v25, 0.0  ;;  %v769_v32 = vadd.f32 %v2633_v58, %v768_v28  ;;  %v969_v33 = vadd.f32 %v2633_v58, %v968_v29  ;;  %v2166_v34 = vpop.f32.mrb[51].mxu0  ;;  %v2266_v35 = vpop.f32.mrb[51].mxu1 }
 0x15d   : > { %v1652_v9 = vmax.f32 %v1557_v4, %v1607_v1 }
 0x15e   : > { %1182 = vst [vmem:[#allocation2 + $0xc0] sm:$0xff] %v1084_v30  ;;  %1232 = vst [vmem:[#allocation2 + $0x250] sm:$0xff] %v1134_v31  ;;  %v1085_v41 = vmax.f32 %v769_v32, 0.0  ;;  %v1135_v42 = vmax.f32 %v969_v33, 0.0 }
 0x15f   : > { %v1278_v36 = vld [vmem:[#allocation2 + $0xb0] ss:$2 sm:$0xff]  ;;  %v1376_v37 = vld [vmem:[#allocation2 + $0xb1] ss:$2 sm:$0xff]  ;;  %v1328_v38 = vld [vmem:[#allocation2 + $0x240] ss:$2 sm:$0xff] }
 0x160   : > { %v1462_v39 = vmax.f32 %v1278_v36, %v1376_v37  ;;  %v1426_v40 = vld [vmem:[#allocation2 + $0x241] ss:$2 sm:$0xff]  ;;  %1183 = vst [vmem:[#allocation2 + $0xc8] sm:$0xff] %v1085_v41  ;;  %1233 = vst [vmem:[#allocation2 + $0x258] sm:$0xff] %v1135_v42 }
 0x161   : > { %v1487_v43 = vmax.f32 %v1328_v38, %v1426_v40  ;;  %v773_v44 = vpop.f32.mrb[52].mxu0  ;;  %v973_v45 = vpop.f32.mrb[52].mxu1 }
 0x162   : > { %1511 = vst [vmem:[#allocation3 + $0x58] sm:$0xff] %v1462_v39  ;;  %v774_v48 = vadd.f32 %v2633_v58, %v773_v44  ;;  %v2169_v49 = vpop.f32.mrb[53].mxu0  ;;  %v974_v50 = vadd.f32 %v2633_v58, %v973_v45  ;;  %v2269_v51 = vpop.f32.mrb[53].mxu1 }
 0x163   : > { %1536 = vst [vmem:[#allocation3 + $0x120] sm:$0xff] %v1487_v43  ;;  %v776_v52 = vpop.f32.mrb[54].mxu0  ;;  %v976_v53 = vpop.f32.mrb[54].mxu1  ;;  %v1583_v54 = vld [vmem:[#allocation3 + $0x110] ss:$2 sm:$0xff] }
 0x164   : > { %v1633_v55 = vld [vmem:[#allocation3 + $0x111] ss:$2 sm:$0xff]  ;;  %v1086_v56 = vmax.f32 %v774_v48, 0.0  ;;  %v777_v57 = vadd.f32 %v2633_v58, %v776_v52  ;;  %v2170_v59 = vpop.f32.mrb[55].mxu0  ;;  %v977_v60 = vadd.f32 %v2633_v58, %v976_v53  ;;  %v1136_v63 = vmax.f32 %v974_v50, 0.0  ;;  %v2270_v0 = vpop.f32.mrb[55].mxu1 }
 0x165   : > { %v1665_v62 = vmax.f32 %v1583_v54, %v1633_v55 }
 0x166   : > { %1184 = vst [vmem:[#allocation2 + $0xd0] sm:$0xff] %v1086_v56  ;;  %v1087_v2 = vmax.f32 %v777_v57, 0.0  ;;  %v1137_v3 = vmax.f32 %v977_v60, 0.0  ;;  %1234 = vst [vmem:[#allocation2 + $0x260] sm:$0xff] %v1136_v63 }
 0x167   : > { %v2014_v5 = vpack.c.bf16 %v1665_v62, %v1664_v61  ;;  %v1280_v8 = vld [vmem:[#allocation2 + $0xc0] ss:$2 sm:$0xff]  ;;  %v1378_v11 = vld [vmem:[#allocation2 + $0xc1] ss:$2 sm:$0xff]  ;;  %v1330_v12 = vld [vmem:[#allocation2 + $0x250] ss:$2 sm:$0xff] }
 0x168   : > { %1185 = vst [vmem:[#allocation2 + $0xd8] sm:$0xff] %v1087_v2  ;;  %1235 = vst [vmem:[#allocation2 + $0x268] sm:$0xff] %v1137_v3  ;;  %v1428_v13 = vld [vmem:[#allocation2 + $0x251] ss:$2 sm:$0xff]  ;;  %v1463_v14 = vmax.f32 %v1280_v8, %v1378_v11 }
 0x169   : > { %2038 = vst [vmem:[%s2665_s13 + $0x40] sm:$0xff] %v2014_v5   ;;  %v1559_v6 = vld [vmem:[#allocation3 + $0x50] ss:$2 sm:$0xff]  ;;  %v1609_v7 = vld [vmem:[#allocation3 + $0x51] ss:$2 sm:$0xff]  ;;  %v1488_v15 = vmax.f32 %v1330_v12, %v1428_v13  ;;  %v781_v16 = vpop.f32.mrb[56].mxu0 }
 0x16a   : > { %v1653_v10 = vmax.f32 %v1559_v6, %v1609_v7  ;;  %v981_v17 = vpop.f32.mrb[56].mxu1  ;;  %v782_v19 = vadd.f32 %v2633_v58, %v781_v16  ;;  %v2173_v21 = vpop.f32.mrb[57].mxu0  ;;  %1512 = vst [vmem:[#allocation3 + $0x60] sm:$0xff] %v1463_v14 }
 0x16b   : > { %v982_v20 = vadd.f32 %v2633_v58, %v981_v17  ;;  %v2273_v22 = vpop.f32.mrb[57].mxu1  ;;  %1537 = vst [vmem:[#allocation3 + $0x128] sm:$0xff] %v1488_v15  ;;  %v784_v23 = vpop.f32.mrb[58].mxu0 }
 0x16c   : > { %v1984_v18 = vpack.c.bf16 %v1653_v10, %v1652_v9  ;;  %v984_v24 = vpop.f32.mrb[58].mxu1  ;;  %v1088_v25 = vmax.f32 %v782_v19, 0.0  ;;  %v785_v27 = vadd.f32 %v2633_v58, %v784_v23  ;;  %v2174_v29 = vpop.f32.mrb[59].mxu0 }
 0x16d   : > { %v1138_v26 = vmax.f32 %v982_v20, 0.0  ;;  %v985_v28 = vadd.f32 %v2633_v58, %v984_v24  ;;  %v2274_v30 = vpop.f32.mrb[59].mxu1 }
 0x16e   : > { %2032 = vst [vmem:[%s2665_s13 + $0x10] sm:$0xff] %v1984_v18   ;;  %1186 = vst [vmem:[#allocation2 + $0xe0] sm:$0xff] %v1088_v25  ;;  %v1089_v36 = vmax.f32 %v785_v27, 0.0 }
 0x16f   : > { %v1282_v31 = vld [vmem:[#allocation2 + $0xd0] ss:$2 sm:$0xff]  ;;  %v1380_v32 = vld [vmem:[#allocation2 + $0xd1] ss:$2 sm:$0xff]  ;;  %v1332_v33 = vld [vmem:[#allocation2 + $0x260] ss:$2 sm:$0xff] }
 0x170   : > { %v1464_v34 = vmax.f32 %v1282_v31, %v1380_v32  ;;  %v1430_v35 = vld [vmem:[#allocation2 + $0x261] ss:$2 sm:$0xff]  ;;  %1236 = vst [vmem:[#allocation2 + $0x270] sm:$0xff] %v1138_v26  ;;  %v1139_v37 = vmax.f32 %v985_v28, 0.0  ;;  %1187 = vst [vmem:[#allocation2 + $0xe8] sm:$0xff] %v1089_v36 }
 0x171   : > { %v1489_v38 = vmax.f32 %v1332_v33, %v1430_v35  ;;  %v789_v39 = vpop.f32.mrb[60].mxu0  ;;  %v989_v40 = vpop.f32.mrb[60].mxu1 }
 0x172   : > { %1513 = vst [vmem:[#allocation3 + $0x68] sm:$0xff] %v1464_v34  ;;  %1237 = vst [vmem:[#allocation2 + $0x278] sm:$0xff] %v1139_v37  ;;  %v790_v41 = vadd.f32 %v2633_v58, %v789_v39  ;;  %v2177_v42 = vpop.f32.mrb[61].mxu0  ;;  %v990_v43 = vadd.f32 %v2633_v58, %v989_v40  ;;  %v2277_v44 = vpop.f32.mrb[61].mxu1  ;;  %v1585_v22 = vld [vmem:[#allocation3 + $0x120] ss:$2 sm:$0xff] }
 0x173   : > { %1538 = vst [vmem:[#allocation3 + $0x130] sm:$0xff] %v1489_v38  ;;  %v792_v45 = vpop.f32.mrb[62].mxu0  ;;  %v992_v46 = vpop.f32.mrb[62].mxu1  ;;  %v1635_v23 = vld [vmem:[#allocation3 + $0x121] ss:$2 sm:$0xff] }
 0x174   : > { %v1090_v47 = vmax.f32 %v790_v41, 0.0  ;;  %v793_v48 = vadd.f32 %v2633_v58, %v792_v45  ;;  %v2178_v49 = vpop.f32.mrb[63].mxu0  ;;  %v993_v50 = vadd.f32 %v2633_v58, %v992_v46  ;;  %v1140_v51 = vmax.f32 %v990_v43, 0.0  ;;  %v2278_v52 = vpop.f32.mrb[63].mxu1 }
 0x175   : > { %v1666_v36 = vmax.f32 %v1585_v22, %v1635_v23 }
 0x176   : > { %1188 = vst [vmem:[#allocation2 + $0xf0] sm:$0xff] %v1090_v47  ;;  %v1091_v53 = vmax.f32 %v793_v48, 0.0  ;;  %v1141_v54 = vmax.f32 %v993_v50, 0.0  ;;  %1238 = vst [vmem:[#allocation2 + $0x280] sm:$0xff] %v1140_v51 }
 0x177   : > { %v1284_v55 = vld [vmem:[#allocation2 + $0xe0] ss:$2 sm:$0xff]  ;;  %v1382_v56 = vld [vmem:[#allocation2 + $0xe1] ss:$2 sm:$0xff] }
 0x178   : > { %1189 = vst [vmem:[#allocation2 + $0xf8] sm:$0xff] %v1091_v53  ;;  %1239 = vst [vmem:[#allocation2 + $0x288] sm:$0xff] %v1141_v54  ;;  %v1465_v60 = vmax.f32 %v1284_v55, %v1382_v56 }
 0x179   : > { %v1334_v57 = vld [vmem:[#allocation2 + $0x270] ss:$2 sm:$0xff]  ;;  %v1432_v59 = vld [vmem:[#allocation2 + $0x271] ss:$2 sm:$0xff]  ;;  %v797_v62 = vpop.f32.mrb[64].mxu0  ;;  %v997_v63 = vpop.f32.mrb[64].mxu1 }
 0x17a   : > { %v1490_v61 = vmax.f32 %v1334_v57, %v1432_v59  ;;  %v798_v0 = vadd.f32 %v2633_v58, %v797_v62  ;;  %v998_v2 = vadd.f32 %v2633_v58, %v997_v63  ;;  %v2181_v3 = vpop.f32.mrb[65].mxu0  ;;  %v2281_v4 = vpop.f32.mrb[65].mxu1  ;;  %1514 = vst [vmem:[#allocation3 + $0x70] sm:$0xff] %v1465_v60  ;;  %v1561_v42 = vld [vmem:[#allocation3 + $0x60] ss:$2 sm:$0xff] }
 0x17b   : > { %v800_v1 = vpop.f32.mrb[66].mxu0  ;;  %v1000_v5 = vpop.f32.mrb[66].mxu1  ;;  %v1611_v43 = vld [vmem:[#allocation3 + $0x61] ss:$2 sm:$0xff] }
 0x17c   : > { %1539 = vst [vmem:[#allocation3 + $0x138] sm:$0xff] %v1490_v61  ;;  %v1092_v6 = vmax.f32 %v798_v0, 0.0  ;;  %v1142_v7 = vmax.f32 %v998_v2, 0.0  ;;  %v801_v8 = vadd.f32 %v2633_v58, %v800_v1  ;;  %v1001_v9 = vadd.f32 %v2633_v58, %v1000_v5  ;;  %v2182_v10 = vpop.f32.mrb[67].mxu0  ;;  %v2282_v11 = vpop.f32.mrb[67].mxu1 }
 0x17d   : > { %v2717_v58 = vld [vmem:[%s2762_s2] ss:$0 sm:$0xff]  ;;  %v1654_v48 = vmax.f32 %v1561_v42, %v1611_v43 }
 0x17e   : > { %1190 = vst [vmem:[#allocation2 + $0x100] sm:$0xff] %v1092_v6  ;;  %1240 = vst [vmem:[#allocation2 + $0x290] sm:$0xff] %v1142_v7  ;;  %v1093_v17 = vmax.f32 %v801_v8, 0.0  ;;  %v1143_v18 = vmax.f32 %v1001_v9, 0.0 }
 0x17f   : > { %v1286_v12 = vld [vmem:[#allocation2 + $0xf0] ss:$2 sm:$0xff]  ;;  %v1384_v13 = vld [vmem:[#allocation2 + $0xf1] ss:$2 sm:$0xff]  ;;  %v1336_v14 = vld [vmem:[#allocation2 + $0x280] ss:$2 sm:$0xff] }
 0x180   : > { %v1466_v15 = vmax.f32 %v1286_v12, %v1384_v13  ;;  %v1434_v16 = vld [vmem:[#allocation2 + $0x281] ss:$2 sm:$0xff]  ;;  %1191 = vst [vmem:[#allocation2 + $0x108] sm:$0xff] %v1093_v17  ;;  %1241 = vst [vmem:[#allocation2 + $0x298] sm:$0xff] %v1143_v18 }
 0x181   : > { %v1491_v19 = vmax.f32 %v1336_v14, %v1434_v16  ;;  %v805_v20 = vpop.f32.mrb[68].mxu0  ;;  %v1005_v21 = vpop.f32.mrb[68].mxu1 }
 0x182   : > { %1515 = vst [vmem:[#allocation3 + $0x78] sm:$0xff] %v1466_v15  ;;  %v806_v24 = vadd.f32 %v2717_v58, %v805_v20  ;;  %v2185_v25 = vpop.f32.mrb[69].mxu0  ;;  %v1006_v26 = vadd.f32 %v2717_v58, %v1005_v21  ;;  %v2285_v27 = vpop.f32.mrb[69].mxu1 }
 0x183   : > { %1540 = vst [vmem:[#allocation3 + $0x140] sm:$0xff] %v1491_v19  ;;  %v808_v28 = vpop.f32.mrb[70].mxu0  ;;  %v1008_v29 = vpop.f32.mrb[70].mxu1  ;;  %v1587_v30 = vld [vmem:[#allocation3 + $0x130] ss:$2 sm:$0xff] }
 0x184   : > { %v1637_v31 = vld [vmem:[#allocation3 + $0x131] ss:$2 sm:$0xff]  ;;  %v1094_v32 = vmax.f32 %v806_v24, 0.0  ;;  %v809_v33 = vadd.f32 %v2717_v58, %v808_v28  ;;  %v2186_v34 = vpop.f32.mrb[71].mxu0  ;;  %v1009_v35 = vadd.f32 %v2717_v58, %v1008_v29  ;;  %v1144_v38 = vmax.f32 %v1006_v26, 0.0  ;;  %v2286_v39 = vpop.f32.mrb[71].mxu1 }
 0x185   : > { %v1667_v37 = vmax.f32 %v1587_v30, %v1637_v31 }
 0x186   : > { %1192 = vst [vmem:[#allocation2 + $0x110] sm:$0xff] %v1094_v32  ;;  %v1095_v40 = vmax.f32 %v809_v33, 0.0  ;;  %v1145_v41 = vmax.f32 %v1009_v35, 0.0  ;;  %1242 = vst [vmem:[#allocation2 + $0x2a0] sm:$0xff] %v1144_v38 }
 0x187   : > { %v2019_v44 = vpack.c.bf16 %v1667_v37, %v1666_v36  ;;  %v1288_v47 = vld [vmem:[#allocation2 + $0x100] ss:$2 sm:$0xff]  ;;  %v1386_v50 = vld [vmem:[#allocation2 + $0x101] ss:$2 sm:$0xff]  ;;  %v1338_v51 = vld [vmem:[#allocation2 + $0x290] ss:$2 sm:$0xff] }
 0x188   : > { %1193 = vst [vmem:[#allocation2 + $0x118] sm:$0xff] %v1095_v40  ;;  %1243 = vst [vmem:[#allocation2 + $0x2a8] sm:$0xff] %v1145_v41  ;;  %v1436_v52 = vld [vmem:[#allocation2 + $0x291] ss:$2 sm:$0xff]  ;;  %v1467_v53 = vmax.f32 %v1288_v47, %v1386_v50 }
 0x189   : > { %2039 = vst [vmem:[%s2665_s13 + $0x48] sm:$0xff] %v2019_v44   ;;  %v1563_v45 = vld [vmem:[#allocation3 + $0x70] ss:$2 sm:$0xff]  ;;  %v1613_v46 = vld [vmem:[#allocation3 + $0x71] ss:$2 sm:$0xff]  ;;  %v1492_v54 = vmax.f32 %v1338_v51, %v1436_v52  ;;  %v813_v55 = vpop.f32.mrb[72].mxu0 }
 0x18a   : > { %v1655_v49 = vmax.f32 %v1563_v45, %v1613_v46  ;;  %v1013_v56 = vpop.f32.mrb[72].mxu1  ;;  %v814_v59 = vadd.f32 %v2717_v58, %v813_v55  ;;  %v2189_v61 = vpop.f32.mrb[73].mxu0  ;;  %1516 = vst [vmem:[#allocation3 + $0x80] sm:$0xff] %v1467_v53 }
 0x18b   : > { %v1014_v60 = vadd.f32 %v2717_v58, %v1013_v56  ;;  %v2289_v62 = vpop.f32.mrb[73].mxu1  ;;  %1541 = vst [vmem:[#allocation3 + $0x148] sm:$0xff] %v1492_v54  ;;  %v816_v63 = vpop.f32.mrb[74].mxu0 }
 0x18c   : > { %v1989_v57 = vpack.c.bf16 %v1655_v49, %v1654_v48  ;;  %v1016_v0 = vpop.f32.mrb[74].mxu1  ;;  %v1096_v2 = vmax.f32 %v814_v59, 0.0  ;;  %v817_v4 = vadd.f32 %v2717_v58, %v816_v63  ;;  %v2190_v5 = vpop.f32.mrb[75].mxu0 }
 0x18d   : > { %v1146_v3 = vmax.f32 %v1014_v60, 0.0  ;;  %v1017_v1 = vadd.f32 %v2717_v58, %v1016_v0  ;;  %v2290_v6 = vpop.f32.mrb[75].mxu1 }
 0x18e   : > { %2033 = vst [vmem:[%s2665_s13 + $0x18] sm:$0xff] %v1989_v57   ;;  %1194 = vst [vmem:[#allocation2 + $0x120] sm:$0xff] %v1096_v2  ;;  %v1097_v12 = vmax.f32 %v817_v4, 0.0 }
 0x18f   : > { %v1290_v7 = vld [vmem:[#allocation2 + $0x110] ss:$2 sm:$0xff]  ;;  %v1388_v8 = vld [vmem:[#allocation2 + $0x111] ss:$2 sm:$0xff]  ;;  %v1340_v9 = vld [vmem:[#allocation2 + $0x2a0] ss:$2 sm:$0xff] }
 0x190   : > { %v1468_v10 = vmax.f32 %v1290_v7, %v1388_v8  ;;  %v1438_v11 = vld [vmem:[#allocation2 + $0x2a1] ss:$2 sm:$0xff]  ;;  %1244 = vst [vmem:[#allocation2 + $0x2b0] sm:$0xff] %v1146_v3  ;;  %v1147_v13 = vmax.f32 %v1017_v1, 0.0  ;;  %1195 = vst [vmem:[#allocation2 + $0x128] sm:$0xff] %v1097_v12 }
 0x191   : > { %v1493_v14 = vmax.f32 %v1340_v9, %v1438_v11  ;;  %v821_v15 = vpop.f32.mrb[76].mxu0  ;;  %v1021_v16 = vpop.f32.mrb[76].mxu1 }
 0x192   : > { %1517 = vst [vmem:[#allocation3 + $0x88] sm:$0xff] %v1468_v10  ;;  %1245 = vst [vmem:[#allocation2 + $0x2b8] sm:$0xff] %v1147_v13  ;;  %v822_v17 = vadd.f32 %v2717_v58, %v821_v15  ;;  %v2193_v18 = vpop.f32.mrb[77].mxu0  ;;  %v1022_v19 = vadd.f32 %v2717_v58, %v1021_v16  ;;  %v2293_v20 = vpop.f32.mrb[77].mxu1  ;;  %v1589_v62 = vld [vmem:[#allocation3 + $0x140] ss:$2 sm:$0xff] }
 0x193   : > { %1542 = vst [vmem:[#allocation3 + $0x150] sm:$0xff] %v1493_v14  ;;  %v824_v21 = vpop.f32.mrb[78].mxu0  ;;  %v1024_v22 = vpop.f32.mrb[78].mxu1  ;;  %v1639_v63 = vld [vmem:[#allocation3 + $0x141] ss:$2 sm:$0xff] }
 0x194   : > { %v1098_v23 = vmax.f32 %v822_v17, 0.0  ;;  %v825_v24 = vadd.f32 %v2717_v58, %v824_v21  ;;  %v2194_v25 = vpop.f32.mrb[79].mxu0  ;;  %v1025_v26 = vadd.f32 %v2717_v58, %v1024_v22  ;;  %v1148_v27 = vmax.f32 %v1022_v19, 0.0  ;;  %v2294_v28 = vpop.f32.mrb[79].mxu1 }
 0x195   : > { %v1668_v12 = vmax.f32 %v1589_v62, %v1639_v63 }
 0x196   : > { %1196 = vst [vmem:[#allocation2 + $0x130] sm:$0xff] %v1098_v23  ;;  %v1099_v29 = vmax.f32 %v825_v24, 0.0  ;;  %v1149_v30 = vmax.f32 %v1025_v26, 0.0  ;;  %1246 = vst [vmem:[#allocation2 + $0x2c0] sm:$0xff] %v1148_v27 }
 0x197   : > { %v1292_v31 = vld [vmem:[#allocation2 + $0x120] ss:$2 sm:$0xff]  ;;  %v1390_v32 = vld [vmem:[#allocation2 + $0x121] ss:$2 sm:$0xff] }
 0x198   : > { %1197 = vst [vmem:[#allocation2 + $0x138] sm:$0xff] %v1099_v29  ;;  %1247 = vst [vmem:[#allocation2 + $0x2c8] sm:$0xff] %v1149_v30  ;;  %v1469_v35 = vmax.f32 %v1292_v31, %v1390_v32 }
 0x199   : > { %v1342_v33 = vld [vmem:[#allocation2 + $0x2b0] ss:$2 sm:$0xff]  ;;  %v1440_v34 = vld [vmem:[#allocation2 + $0x2b1] ss:$2 sm:$0xff]  ;;  %v829_v37 = vpop.f32.mrb[80].mxu0  ;;  %v1029_v38 = vpop.f32.mrb[80].mxu1 }
 0x19a   : > { %v1494_v36 = vmax.f32 %v1342_v33, %v1440_v34  ;;  %v830_v39 = vadd.f32 %v2717_v58, %v829_v37  ;;  %v1030_v40 = vadd.f32 %v2717_v58, %v1029_v38  ;;  %v2197_v41 = vpop.f32.mrb[81].mxu0  ;;  %v2297_v42 = vpop.f32.mrb[81].mxu1  ;;  %1518 = vst [vmem:[#allocation3 + $0x90] sm:$0xff] %v1469_v35  ;;  %v1565_v18 = vld [vmem:[#allocation3 + $0x80] ss:$2 sm:$0xff] }
 0x19b   : > { %v832_v43 = vpop.f32.mrb[82].mxu0  ;;  %v1032_v44 = vpop.f32.mrb[82].mxu1  ;;  %v1615_v19 = vld [vmem:[#allocation3 + $0x81] ss:$2 sm:$0xff] }
 0x19c   : > { %1543 = vst [vmem:[#allocation3 + $0x158] sm:$0xff] %v1494_v36  ;;  %v1100_v45 = vmax.f32 %v830_v39, 0.0  ;;  %v1150_v46 = vmax.f32 %v1030_v40, 0.0  ;;  %v833_v47 = vadd.f32 %v2717_v58, %v832_v43  ;;  %v1033_v48 = vadd.f32 %v2717_v58, %v1032_v44  ;;  %v2198_v49 = vpop.f32.mrb[83].mxu0  ;;  %v2298_v50 = vpop.f32.mrb[83].mxu1 }
 0x19d   : > { %v1656_v24 = vmax.f32 %v1565_v18, %v1615_v19 }
 0x19e   : > { %1198 = vst [vmem:[#allocation2 + $0x140] sm:$0xff] %v1100_v45  ;;  %1248 = vst [vmem:[#allocation2 + $0x2d0] sm:$0xff] %v1150_v46  ;;  %v1101_v56 = vmax.f32 %v833_v47, 0.0  ;;  %v1151_v57 = vmax.f32 %v1033_v48, 0.0 }
 0x19f   : > { %v1294_v51 = vld [vmem:[#allocation2 + $0x130] ss:$2 sm:$0xff]  ;;  %v1392_v52 = vld [vmem:[#allocation2 + $0x131] ss:$2 sm:$0xff]  ;;  %v1344_v53 = vld [vmem:[#allocation2 + $0x2c0] ss:$2 sm:$0xff] }
 0x1a0   : > { %v1470_v54 = vmax.f32 %v1294_v51, %v1392_v52  ;;  %v1442_v55 = vld [vmem:[#allocation2 + $0x2c1] ss:$2 sm:$0xff]  ;;  %1199 = vst [vmem:[#allocation2 + $0x148] sm:$0xff] %v1101_v56  ;;  %1249 = vst [vmem:[#allocation2 + $0x2d8] sm:$0xff] %v1151_v57 }
 0x1a1   : > { %v1495_v59 = vmax.f32 %v1344_v53, %v1442_v55  ;;  %v837_v60 = vpop.f32.mrb[84].mxu0  ;;  %v1037_v61 = vpop.f32.mrb[84].mxu1 }
 0x1a2   : > { %1519 = vst [vmem:[#allocation3 + $0x98] sm:$0xff] %v1470_v54  ;;  %v838_v0 = vadd.f32 %v2717_v58, %v837_v60  ;;  %v2201_v2 = vpop.f32.mrb[85].mxu0  ;;  %v1038_v3 = vadd.f32 %v2717_v58, %v1037_v61  ;;  %v2301_v4 = vpop.f32.mrb[85].mxu1 }
 0x1a3   : > { %1544 = vst [vmem:[#allocation3 + $0x160] sm:$0xff] %v1495_v59  ;;  %v840_v1 = vpop.f32.mrb[86].mxu0  ;;  %v1040_v5 = vpop.f32.mrb[86].mxu1  ;;  %v1591_v6 = vld [vmem:[#allocation3 + $0x150] ss:$2 sm:$0xff] }
 0x1a4   : > { %v1641_v7 = vld [vmem:[#allocation3 + $0x151] ss:$2 sm:$0xff]  ;;  %v1102_v8 = vmax.f32 %v838_v0, 0.0  ;;  %v841_v9 = vadd.f32 %v2717_v58, %v840_v1  ;;  %v2202_v10 = vpop.f32.mrb[87].mxu0  ;;  %v1041_v11 = vadd.f32 %v2717_v58, %v1040_v5  ;;  %v1152_v14 = vmax.f32 %v1038_v3, 0.0  ;;  %v2302_v15 = vpop.f32.mrb[87].mxu1 }
 0x1a5   : > { %v1669_v13 = vmax.f32 %v1591_v6, %v1641_v7 }
 0x1a6   : > { %1200 = vst [vmem:[#allocation2 + $0x150] sm:$0xff] %v1102_v8  ;;  %v1103_v16 = vmax.f32 %v841_v9, 0.0  ;;  %v1153_v17 = vmax.f32 %v1041_v11, 0.0  ;;  %1250 = vst [vmem:[#allocation2 + $0x2e0] sm:$0xff] %v1152_v14 }
 0x1a7   : > { %v2024_v20 = vpack.c.bf16 %v1669_v13, %v1668_v12  ;;  %v1296_v23 = vld [vmem:[#allocation2 + $0x140] ss:$2 sm:$0xff]  ;;  %v1394_v26 = vld [vmem:[#allocation2 + $0x141] ss:$2 sm:$0xff]  ;;  %v1346_v27 = vld [vmem:[#allocation2 + $0x2d0] ss:$2 sm:$0xff] }
 0x1a8   : > { %1201 = vst [vmem:[#allocation2 + $0x158] sm:$0xff] %v1103_v16  ;;  %1251 = vst [vmem:[#allocation2 + $0x2e8] sm:$0xff] %v1153_v17  ;;  %v1444_v28 = vld [vmem:[#allocation2 + $0x2d1] ss:$2 sm:$0xff]  ;;  %v1471_v29 = vmax.f32 %v1296_v23, %v1394_v26 }
 0x1a9   : > { %2040 = vst [vmem:[%s2665_s13 + $0x50] sm:$0xff] %v2024_v20   ;;  %v1567_v21 = vld [vmem:[#allocation3 + $0x90] ss:$2 sm:$0xff]  ;;  %v1617_v22 = vld [vmem:[#allocation3 + $0x91] ss:$2 sm:$0xff]  ;;  %v1496_v30 = vmax.f32 %v1346_v27, %v1444_v28  ;;  %v845_v31 = vpop.f32.mrb[88].mxu0 }
 0x1aa   : > { %v1657_v25 = vmax.f32 %v1567_v21, %v1617_v22  ;;  %v1045_v32 = vpop.f32.mrb[88].mxu1  ;;  %v846_v34 = vadd.f32 %v2717_v58, %v845_v31  ;;  %v2205_v36 = vpop.f32.mrb[89].mxu0  ;;  %1520 = vst [vmem:[#allocation3 + $0xa0] sm:$0xff] %v1471_v29 }
 0x1ab   : > { %v1046_v35 = vadd.f32 %v2717_v58, %v1045_v32  ;;  %v2305_v37 = vpop.f32.mrb[89].mxu1  ;;  %1545 = vst [vmem:[#allocation3 + $0x168] sm:$0xff] %v1496_v30  ;;  %v848_v38 = vpop.f32.mrb[90].mxu0 }
 0x1ac   : > { %v1994_v33 = vpack.c.bf16 %v1657_v25, %v1656_v24  ;;  %v1048_v39 = vpop.f32.mrb[90].mxu1  ;;  %v1104_v40 = vmax.f32 %v846_v34, 0.0  ;;  %v849_v42 = vadd.f32 %v2717_v58, %v848_v38  ;;  %v2206_v44 = vpop.f32.mrb[91].mxu0 }
 0x1ad   : > { %v1154_v41 = vmax.f32 %v1046_v35, 0.0  ;;  %v1049_v43 = vadd.f32 %v2717_v58, %v1048_v39  ;;  %v2306_v45 = vpop.f32.mrb[91].mxu1 }
 0x1ae   : > { %2034 = vst [vmem:[%s2665_s13 + $0x20] sm:$0xff] %v1994_v33   ;;  %1202 = vst [vmem:[#allocation2 + $0x160] sm:$0xff] %v1104_v40  ;;  %v1105_v51 = vmax.f32 %v849_v42, 0.0 }
 0x1af   : > { %v1298_v46 = vld [vmem:[#allocation2 + $0x150] ss:$2 sm:$0xff]  ;;  %v1396_v47 = vld [vmem:[#allocation2 + $0x151] ss:$2 sm:$0xff]  ;;  %v1348_v48 = vld [vmem:[#allocation2 + $0x2e0] ss:$2 sm:$0xff] }
 0x1b0   : > { %v1472_v49 = vmax.f32 %v1298_v46, %v1396_v47  ;;  %v1446_v50 = vld [vmem:[#allocation2 + $0x2e1] ss:$2 sm:$0xff]  ;;  %1252 = vst [vmem:[#allocation2 + $0x2f0] sm:$0xff] %v1154_v41  ;;  %v1155_v52 = vmax.f32 %v1049_v43, 0.0  ;;  %1203 = vst [vmem:[#allocation2 + $0x168] sm:$0xff] %v1105_v51 }
 0x1b1   : > { %v1497_v53 = vmax.f32 %v1348_v48, %v1446_v50  ;;  %v853_v54 = vpop.f32.mrb[92].mxu0  ;;  %v1053_v55 = vpop.f32.mrb[92].mxu1  ;;  %v1575_v47 = vld [vmem:[#allocation3 + $0xd0] ss:$2 sm:$0xff]  ;;  %v1625_v48 = vld [vmem:[#allocation3 + $0xd1] ss:$2 sm:$0xff] }
 0x1b2   : > { %1521 = vst [vmem:[#allocation3 + $0xa8] sm:$0xff] %v1472_v49  ;;  %1253 = vst [vmem:[#allocation2 + $0x2f8] sm:$0xff] %v1155_v52  ;;  %v854_v56 = vadd.f32 %v2717_v58, %v853_v54  ;;  %v2209_v57 = vpop.f32.mrb[93].mxu0  ;;  %v1054_v59 = vadd.f32 %v2717_v58, %v1053_v55  ;;  %v2309_v60 = vpop.f32.mrb[93].mxu1  ;;  %v1593_v27 = vld [vmem:[#allocation3 + $0x160] ss:$2 sm:$0xff]  ;;  %v1661_v51 = vmax.f32 %v1575_v47, %v1625_v48 }
 0x1b3   : > { %1546 = vst [vmem:[#allocation3 + $0x170] sm:$0xff] %v1497_v53  ;;  %v856_v61 = vpop.f32.mrb[94].mxu0  ;;  %v1056_v62 = vpop.f32.mrb[94].mxu1  ;;  %v1643_v28 = vld [vmem:[#allocation3 + $0x161] ss:$2 sm:$0xff] }
 0x1b4   : > { %v1106_v63 = vmax.f32 %v854_v56, 0.0  ;;  %v857_v0 = vadd.f32 %v2717_v58, %v856_v61  ;;  %v2210_v2 = vpop.f32.mrb[95].mxu0  ;;  %v1057_v3 = vadd.f32 %v2717_v58, %v1056_v62  ;;  %v1156_v4 = vmax.f32 %v1054_v59, 0.0  ;;  %v2310_v1 = vpop.f32.mrb[95].mxu1 }
 0x1b5   : > { %v1670_v31 = vmax.f32 %v1593_v27, %v1643_v28 }
 0x1b6   : > { %1204 = vst [vmem:[#allocation2 + $0x170] sm:$0xff] %v1106_v63  ;;  %v1107_v5 = vmax.f32 %v857_v0, 0.0  ;;  %v1157_v6 = vmax.f32 %v1057_v3, 0.0  ;;  %1254 = vst [vmem:[#allocation2 + $0x300] sm:$0xff] %v1156_v4 }
 0x1b7   : > { %v1300_v7 = vld [vmem:[#allocation2 + $0x160] ss:$2 sm:$0xff]  ;;  %v1398_v8 = vld [vmem:[#allocation2 + $0x161] ss:$2 sm:$0xff] }
 0x1b8   : > { %1205 = vst [vmem:[#allocation2 + $0x178] sm:$0xff] %v1107_v5  ;;  %1255 = vst [vmem:[#allocation2 + $0x308] sm:$0xff] %v1157_v6  ;;  %v1473_v11 = vmax.f32 %v1300_v7, %v1398_v8 }
 0x1b9   : > { %v1350_v9 = vld [vmem:[#allocation2 + $0x2f0] ss:$2 sm:$0xff]  ;;  %v1448_v10 = vld [vmem:[#allocation2 + $0x2f1] ss:$2 sm:$0xff]  ;;  %v861_v13 = vpop.f32.mrb[96].mxu0 }
 0x1ba   : > { %v1498_v12 = vmax.f32 %v1350_v9, %v1448_v10  ;;  %v862_v14 = vadd.f32 %v2717_v58, %v861_v13  ;;  %v2213_v15 = vpop.f32.mrb[97].mxu0  ;;  %1522 = vst [vmem:[#allocation3 + $0xb0] sm:$0xff] %v1473_v11  ;;  %v1619_v33 = vld [vmem:[#allocation3 + $0xa1] ss:$2 sm:$0xff] }
 0x1bb   : > { %v864_v16 = vpop.f32.mrb[98].mxu0 }
 0x1bc   : > { %1547 = vst [vmem:[#allocation3 + $0x178] sm:$0xff] %v1498_v12  ;;  %v1108_v17 = vmax.f32 %v862_v14, 0.0  ;;  %v865_v18 = vadd.f32 %v2717_v58, %v864_v16  ;;  %v2214_v19 = vpop.f32.mrb[99].mxu0  ;;  %v1569_v58 = vld [vmem:[#allocation3 + $0xa0] ss:$2 sm:$0xff] }
 0x1bd   : > { %v1658_v38 = vmax.f32 %v1569_v58, %v1619_v33 }
 0x1be   : > { %1206 = vst [vmem:[#allocation2 + $0x180] sm:$0xff] %v1108_v17  ;;  %v1109_v25 = vmax.f32 %v865_v18, 0.0 }
 0x1bf   : > { %v1302_v20 = vld [vmem:[#allocation2 + $0x170] ss:$2 sm:$0xff]  ;;  %v1400_v21 = vld [vmem:[#allocation2 + $0x171] ss:$2 sm:$0xff]  ;;  %v1352_v22 = vld [vmem:[#allocation2 + $0x300] ss:$2 sm:$0xff] }
 0x1c0   : > { %v1474_v23 = vmax.f32 %v1302_v20, %v1400_v21  ;;  %v1450_v24 = vld [vmem:[#allocation2 + $0x301] ss:$2 sm:$0xff]  ;;  %1207 = vst [vmem:[#allocation2 + $0x188] sm:$0xff] %v1109_v25 }
 0x1c1   : > { %v1499_v26 = vmax.f32 %v1352_v22, %v1450_v24 }
 0x1c2   : > { %1523 = vst [vmem:[#allocation3 + $0xb8] sm:$0xff] %v1474_v23 }
 0x1c3   : > { %1548 = vst [vmem:[#allocation3 + $0x180] sm:$0xff] %v1499_v26  ;;  %v1595_v29 = vld [vmem:[#allocation3 + $0x170] ss:$2 sm:$0xff]  ;;  %v1645_v30 = vld [vmem:[#allocation3 + $0x171] ss:$2 sm:$0xff] }
 0x1c4   : > { %v1671_v32 = vmax.f32 %v1595_v29, %v1645_v30 }
 0x1c6   : > { %v2029_v34 = vpack.c.bf16 %v1671_v32, %v1670_v31 }
 0x1c7   : > { %v1304_v37 = vld [vmem:[#allocation2 + $0x180] ss:$2 sm:$0xff]  ;;  %v1402_v43 = vld [vmem:[#allocation2 + $0x181] ss:$2 sm:$0xff] }
 0x1c8   : > { %2041 = vst [vmem:[%s2665_s13 + $0x58] sm:$0xff] %v2029_v34   ;;  %v1475_v45 = vmax.f32 %v1304_v37, %v1402_v43 }
 0x1c9   : > { %v1571_v35 = vld [vmem:[#allocation3 + $0xb0] ss:$2 sm:$0xff]  ;;  %v1621_v36 = vld [vmem:[#allocation3 + $0xb1] ss:$2 sm:$0xff] }
 0x1ca   : > { %v1659_v39 = vmax.f32 %v1571_v35, %v1621_v36  ;;  %v1597_v40 = vld [vmem:[#allocation3 + $0x180] ss:$2 sm:$0xf]  ;;  %v1647_v41 = vld [vmem:[#allocation3 + $0x181] ss:$2 sm:$0xf] }
 0x1cb   : > { %v1672_v42 = vmax.f32 %v1597_v40, %v1647_v41  ;;  %1524 = vst [vmem:[#allocation3 + $0xc0] sm:$0xff] %v1475_v45 }
 0x1cc   : > { %v1999_v44 = vpack.c.bf16 %v1659_v39, %v1658_v38 }
 0x1cd   : > { %v1970_v46 = vpack.c.bf16 %v1672_v42, %v1672_v42 }
 0x1ce   : > { %2035 = vst [vmem:[%s2665_s13 + $0x28] sm:$0xff] %v1999_v44  }
 0x1cf   : > { %1798 = vst [vmem:[%s2665_s13 + $0x60] sm:$0x3] %v1970_v46 }
 0x1d2   : > { %v1573_v49 = vld [vmem:[#allocation3 + $0xc0] ss:$2 sm:$0xff]  ;;  %v1623_v50 = vld [vmem:[#allocation3 + $0xc1] ss:$2 sm:$0xff] }
 0x1d3   : > { %v1660_v52 = vmax.f32 %v1573_v49, %v1623_v50 }
 0x1d5   : > { %v2004_v53 = vpack.c.bf16 %v1661_v51, %v1660_v52 }
 0x1d7   : > { %2036 = vst [vmem:[%s2665_s13 + $0x30] sm:$0xff] %v2004_v53  }
 0x1d8 PF: > { %s13_s12 = sadd.s32 1, %s2403_s12  }
 0x1d9   : > { %p10_p4 = scmp.ge.s32.totalorder %s13_s12, 4  }
 0x1db   :  { %12 = sbr.rel (!%p10_p4) target bundleno = 1 (0x1), region = 208 }

// kernel: net_forward.4
= control target key start
LH: loop header
LB: loop body
LE: loop exit
PB: predicated region body
PF: predicated region fallthrough
CT: control target
= control target key end

     0   :  { %s1247_s12 = smov 0   ;;  %s1414_s0 = inlined_call_operand.vmem [shape: bf16[2,100,512], index: 0, kind: input, shape index: {}]   ;;  %s1415_s1 = inlined_call_operand.vmem [shape: bf16[512,128], index: 1, kind: input, shape index: {}]   ;;  %s1416_s2 = inlined_call_operand.vmem [shape: f32[1,128], index: 2, kind: input, shape index: {}]   ;;  %s1417_s3 = inlined_call_operand.vmem [shape: bf16[2,25,128], index: 3, kind: output, shape index: {}]  }
   0x1 LB: > { %s937_s13 = sadd.s32 4294967295, %s1225_s12   ;;  %p941_p0 = scmp.ge.s32.totalorder %s1225_s12, 1  ;;  %s1225_s12 = sphi %s1247_s12, %s13_s12  }
   0x2   : > { %p137_p1 = scmp.lt.s32.totalorder %s1225_s12, 3 }
   0x4   : > { %p138_p2 = pnand %p941_p0, %p137_p1 }
   0x5   : > { %v1147_v0 = vld [vmem:[%s1415_s1 + $0x40] sm:$0xff] (!%p138_p2)   ;;  %v1151_v4 = vld [vmem:[%s1415_s1 + $0x48] sm:$0xff] (!%p138_p2)   ;;  %v1155_v8 = vld [vmem:[%s1415_s1 + $0x50] sm:$0xff] (!%p138_p2)   ;;  %p161_p3 = scmp.lt.s32.totalorder (!%p138_p2), %s937_s13, 1  ;;  %vm876_vm0 = vcmask (!%p138_p2), 1040384  }
   0x6   : > { %141 = sbr.rel (%p138_p2) target bundleno = 332 (0x14c), region = 32  ;;  %v1148_v1 = vld [vmem:[%s1415_s1 + $0xc0] sm:$0xff] (!%p138_p2)   ;;  %1022 = vmatprep.subr.bf16.mxu0 (!%p138_p2), %v1147_v0  ;;  %v1152_v5 = vld [vmem:[%s1415_s1 + $0xc8] sm:$0xff] (!%p138_p2)   ;;  %v1156_v9 = vld [vmem:[%s1415_s1 + $0xd0] sm:$0xff] (!%p138_p2)   ;;  %vm877_vm1 = vsmask.f32 (!%p138_p2), 256 }
   0x7   : > { %v1149_v2 = vld [vmem:[%s1415_s1] sm:$0xff] (!%p138_p2)   ;;  %1080 = vmatprep.subr.bf16.mxu1 (!%p138_p2), %v1148_v1  ;;  %v1153_v6 = vld [vmem:[%s1415_s1 + $0x8] sm:$0xff] (!%p138_p2)   ;;  %v1157_v10 = vld [vmem:[%s1415_s1 + $0x10] sm:$0xff] (!%p138_p2)  }
   0x8   : > { %v1150_v3 = vld [vmem:[%s1415_s1 + $0x80] sm:$0xff] (!%p138_p2)   ;;  %1023 = vmatpush3.bf16.msra.mxu0 (!%p138_p2), %v1149_v2  ;;  %v1154_v7 = vld [vmem:[%s1415_s1 + $0x88] sm:$0xff] (!%p138_p2)   ;;  %v1158_v11 = vld [vmem:[%s1415_s1 + $0x90] sm:$0xff] (!%p138_p2)  }
   0x9   : > { %1081 = vmatpush3.bf16.msra.mxu1 (!%p138_p2), %v1150_v3  ;;  %1024 = vmatprep.subr.bf16.mxu0 (!%p138_p2), %v1151_v4  ;;  %v1159_v12 = vld [vmem:[%s1415_s1 + $0x58] sm:$0xff] (!%p138_p2)   ;;  %v1163_v16 = vld [vmem:[%s1415_s1 + $0x60] sm:$0xff] (!%p138_p2)   ;;  %v1167_v20 = vld [vmem:[%s1415_s1 + $0x68] sm:$0xff] (!%p138_p2)  }
   0xa   : > { %1082 = vmatprep.subr.bf16.mxu1 (!%p138_p2), %v1152_v5  ;;  %v1160_v13 = vld [vmem:[%s1415_s1 + $0xd8] sm:$0xff] (!%p138_p2)   ;;  %v1164_v17 = vld [vmem:[%s1415_s1 + $0xe0] sm:$0xff] (!%p138_p2)   ;;  %v1168_v21 = vld [vmem:[%s1415_s1 + $0xe8] sm:$0xff] (!%p138_p2)  }
   0xb   : > { %v1161_v14 = vld [vmem:[%s1415_s1 + $0x18] sm:$0xff] (!%p138_p2)   ;;  %v1165_v18 = vld [vmem:[%s1415_s1 + $0x20] sm:$0xff] (!%p138_p2)   ;;  %v1169_v22 = vld [vmem:[%s1415_s1 + $0x28] sm:$0xff] (!%p138_p2)  }
   0xc   : > { %1025 = vmatpush3.bf16.msra.mxu0 (!%p138_p2), %v1153_v6  ;;  %v1162_v15 = vld [vmem:[%s1415_s1 + $0x98] sm:$0xff] (!%p138_p2)   ;;  %v1166_v19 = vld [vmem:[%s1415_s1 + $0xa0] sm:$0xff] (!%p138_p2)   ;;  %v1170_v23 = vld [vmem:[%s1415_s1 + $0xa8] sm:$0xff] (!%p138_p2)  }
   0xd   : > { %1083 = vmatpush3.bf16.msra.mxu1 %v1154_v7  ;;  %1026 = vmatprep.subr.bf16.mxu0 %v1155_v8  ;;  %s1419_s13 = smov (!%p161_p3, %s937_s13), 1  ;;  %v1171_v24 = vld [vmem:[%s1415_s1 + $0x70] sm:$0xff]   ;;  %v1175_v28 = vld [vmem:[%s1415_s1 + $0x78] sm:$0xff]   ;;  %v1392_v0 = vld [vmem:[%s1416_s2] ss:$0 sm:$0xff] }
   0xe   : > { %1084 = vmatprep.subr.bf16.mxu1 %v1156_v9  ;;  %v1172_v25 = vld [vmem:[%s1415_s1 + $0xf0] sm:$0xff]   ;;  %s1138_s16 = smul.u32 208, %s1419_s13  ;;  %v1176_v29 = vld [vmem:[%s1415_s1 + $0xf8] sm:$0xff]   ;;  %s1012_s7 = sshll.u32 %s1419_s13, 4  ;;  %vm878_vm2 = vmand %vm876_vm0, %vm877_vm1 }
   0xf   : > { %v1173_v26 = vld [vmem:[%s1415_s1 + $0x30] sm:$0xff]   ;;  %v1177_v30 = vld [vmem:[%s1415_s1 + $0x38] sm:$0xff]   ;;  %s170_s10 = scalar_lea.vmem %s1417_s3, %s1012_s7 }
  0x10   : > { %1027 = vmatpush3.bf16.msra.mxu0 %v1157_v10  ;;  %v1174_v27 = vld [vmem:[%s1415_s1 + $0xb0] sm:$0xff]   ;;  %s1355_s27 = scalar_lea.vmem %s1414_s0, %s1138_s16  ;;  %v1178_v31 = vld [vmem:[%s1415_s1 + $0xb8] sm:$0xff]  }
  0x11   : > { %1085 = vmatpush3.bf16.msra.mxu1 %v1158_v11  ;;  %1028 = vmatprep.subr.bf16.mxu0 %v1159_v12  ;;  %v1179_v32 = vld [vmem:[%s1355_s27] ss:$16 sps:$4 sm:$0xff]   ;;  %v1181_v33 = vld [vmem:[%s1355_s27 + $0x4] ss:$16 sps:$4 sm:$0xff]   ;;  %v1182_v34 = vld [vmem:[%s1355_s27 + $0x8] ss:$16 sps:$4 sm:$0xff]  }
  0x12   : > { %1086 = vmatprep.subr.bf16.mxu1 %v1160_v13  ;;  %v1184_v35 = vld [vmem:[%s1355_s27 + $0xc] ss:$16 sps:$4 sm:$0xff]   ;;  %627 = vmatprep.mubr.bf16.mxu0 %v1181_v33  ;;  %v1185_v36 = vld [vmem:[%s1355_s27 + $0x24] ss:$16 sps:$4 sm:$0xff]   ;;  %v1189_v38 = vld [vmem:[%s1355_s27 + $0x20] ss:$16 sps:$4 sm:$0xff]  }
  0x13   : > { %715 = vmatprep.mubr.bf16.mxu1 %v1184_v35  ;;  %v1187_v37 = vld [vmem:[%s1355_s27 + $0x2c] ss:$16 sps:$4 sm:$0xff]   ;;  %v1190_v39 = vld [vmem:[%s1355_s27 + $0x28] ss:$16 sps:$4 sm:$0xff]   ;;  %v1191_v40 = vld [vmem:[%s1355_s27 + $0x44] ss:$16 sps:$4 sm:$0xff]  }
  0x14   : > { %1029 = vmatpush3.bf16.msra.mxu0 %v1161_v14  ;;  %v1193_v41 = vld [vmem:[%s1355_s27 + $0x4c] ss:$16 sps:$4 sm:$0xff]   ;;  %v1195_v42 = vld [vmem:[%s1355_s27 + $0x40] ss:$16 sps:$4 sm:$0xff]   ;;  %v1196_v43 = vld [vmem:[%s1355_s27 + $0x48] ss:$16 sps:$4 sm:$0xff]  }
  0x15   : > { %1087 = vmatpush3.bf16.msra.mxu1 %v1162_v15  ;;  %1030 = vmatprep.subr.bf16.mxu0 %v1163_v16  ;;  %v1197_v44 = vld [vmem:[%s1355_s27 + $0x64] ss:$16 sps:$4 sm:$0xff]   ;;  %v1199_v45 = vld [vmem:[%s1355_s27 + $0x6c] ss:$16 sps:$4 sm:$0xff]   ;;  %v1201_v46 = vld [vmem:[%s1355_s27 + $0x60] ss:$16 sps:$4 sm:$0xff]  }
  0x16   : > { %1088 = vmatprep.subr.bf16.mxu1 %v1164_v17  ;;  %v1202_v47 = vld [vmem:[%s1355_s27 + $0x68] ss:$16 sps:$4 sm:$0xff]   ;;  %v1203_v48 = vld [vmem:[%s1355_s27 + $0x84] ss:$16 sps:$4 sm:$0xff]   ;;  %v1205_v49 = vld [vmem:[%s1355_s27 + $0x8c] ss:$16 sps:$4 sm:$0xff]  }
  0x17   : > { %v1207_v50 = vld [vmem:[%s1355_s27 + $0x80] ss:$16 sps:$4 sm:$0xff]   ;;  %v1208_v51 = vld [vmem:[%s1355_s27 + $0x88] ss:$16 sps:$4 sm:$0xff]   ;;  %v1209_v52 = vld [vmem:[%s1355_s27 + $0xa4] ss:$16 sps:$4 sm:$0xff]  }
  0x18   : > { %1031 = vmatpush3.bf16.msra.mxu0 %v1165_v18  ;;  %v1211_v53 = vld [vmem:[%s1355_s27 + $0xac] ss:$16 sps:$4 sm:$0xff]   ;;  %v196_v54 = vld [vmem:[%s1355_s27 + $0xc0] sm:$0x33]  ;;  %v1214_v57 = vld [vmem:[%s1355_s27 + $0xa8] ss:$16 sps:$4 sm:$0xff]  }
  0x19   : > { %1089 = vmatpush3.bf16.msra.mxu1 %v1166_v19  ;;  %1032 = vmatprep.subr.bf16.mxu0 %v1167_v20  ;;  %v197_v55 = vld [vmem:[%s1355_s27 + $0xc8] sm:$0x33]  ;;  %v1213_v56 = vld [vmem:[%s1355_s27 + $0xa0] ss:$16 sps:$4 sm:$0xff]   ;;  %v971_v58 = vcombine.high %v196_v54, %v196_v54  ;;  %v970_v60 = vcombine.low %v196_v54, %v196_v54 }
  0x1a   : > { %1090 = vmatprep.subr.bf16.mxu1 %v1168_v21  ;;  %v973_v59 = vcombine.high %v197_v55, %v197_v55  ;;  %v972_v61 = vcombine.low %v197_v55, %v197_v55 }
  0x1c   : > { %1033 = vmatpush3.bf16.msra.mxu0 %v1169_v22 }
  0x1d   : > { %1091 = vmatpush3.bf16.msra.mxu1 %v1170_v23  ;;  %1034 = vmatprep.subr.bf16.mxu0 %v1171_v24 }
  0x1e   : > { %1092 = vmatprep.subr.bf16.mxu1 %v1172_v25 }
  0x20   : > { %1035 = vmatpush3.bf16.msra.mxu0 %v1173_v26 }
  0x21   : > { %1093 = vmatpush3.bf16.msra.mxu1 %v1174_v27  ;;  %1036 = vmatprep.subr.bf16.mxu0 %v1175_v28 }
  0x22   : > { %1094 = vmatprep.subr.bf16.mxu1 %v1176_v29 }
  0x24   : > { %1037 = vmatpush3.bf16.msra.mxu0 %v1177_v30 }
  0x25   : > { %1095 = vmatpush3.bf16.msra.mxu1 %v1178_v31 }
  0x27   : > { %628 = vmatmul.mubr.bf16.vlgmr.msra.gmra.mrb[0].mxu0 %v1179_v32 }
  0x28   : > { %716 = vmatmul.mubr.bf16.vlgmr.msra.gmra.mrb[0].mxu1 %v1182_v34  ;;  %635 = vmatprep.mubr.bf16.mxu0 %v1185_v36 }
  0x29   : > { %723 = vmatprep.mubr.bf16.mxu1 %v1187_v37 }
  0x2f   : > { %636 = vmatmul.mubr.bf16.gmra.mrb[4].mxu0 %v1189_v38 }
  0x30   : > { %724 = vmatmul.mubr.bf16.gmra.mrb[4].mxu1 %v1190_v39  ;;  %643 = vmatprep.mubr.bf16.mxu0 %v1191_v40 }
  0x31   : > { %731 = vmatprep.mubr.bf16.mxu1 %v1193_v41 }
  0x37   : > { %644 = vmatmul.mubr.bf16.gmra.mrb[8].mxu0 %v1195_v42 }
  0x38   : > { %732 = vmatmul.mubr.bf16.gmra.mrb[8].mxu1 %v1196_v43  ;;  %651 = vmatprep.mubr.bf16.mxu0 %v1197_v44 }
  0x39   : > { %739 = vmatprep.mubr.bf16.mxu1 %v1199_v45 }
  0x3f   : > { %652 = vmatmul.mubr.bf16.gmra.mrb[12].mxu0 %v1201_v46 }
  0x40   : > { %740 = vmatmul.mubr.bf16.gmra.mrb[12].mxu1 %v1202_v47  ;;  %659 = vmatprep.mubr.bf16.mxu0 %v1203_v48 }
  0x41   : > { %747 = vmatprep.mubr.bf16.mxu1 %v1205_v49 }
  0x47   : > { %660 = vmatmul.mubr.bf16.gmra.mrb[16].mxu0 %v1207_v50 }
  0x48   : > { %748 = vmatmul.mubr.bf16.gmra.mrb[16].mxu1 %v1208_v51  ;;  %667 = vmatprep.mubr.bf16.mxu0 %v1209_v52 }
  0x49   : > { %755 = vmatprep.mubr.bf16.mxu1 %v1211_v53 }
  0x4f   : > { %668 = vmatmul.mubr.bf16.gmra.mrb[20].mxu0 %v1213_v56 }
  0x50   : > { %756 = vmatmul.mubr.bf16.gmra.mrb[20].mxu1 %v1214_v57  ;;  %675 = vmatprep.mubr.bf16.mxu0 %v971_v58 }
  0x51   : > { %763 = vmatprep.mubr.bf16.mxu1 %v973_v59 }
  0x57   : > { %676 = vmatmul.mubr.bf16.gmra.mrb[24].mxu0 %v970_v60 }
  0x58   : > { %764 = vmatmul.mubr.bf16.gmra.mrb[24].mxu1 %v972_v61 }
  0xfa   : > { %v1038_v62 = vpop.f32.mrb[0].mxu0 }
  0xfb   : > { %v1096_v63 = vpop.f32.mrb[0].mxu1  ;;  %v1039_v1 = vpop.f32.mrb[1].mxu0 }
  0xfc   : > { %v1040_v2 = vadd.f32 %v1039_v1, %v1038_v62  ;;  %v1097_v3 = vpop.f32.mrb[1].mxu1  ;;  %v1041_v4 = vpop.f32.mrb[2].mxu0 }
  0xfd   : > { %v1098_v5 = vadd.f32 %v1097_v3, %v1096_v63  ;;  %v1099_v6 = vpop.f32.mrb[2].mxu1  ;;  %v1042_v7 = vpop.f32.mrb[3].mxu0 }
  0xfe   : > { %v630_v8 = vadd.f32 %v1040_v2, %v1392_v0  ;;  %v1043_v9 = vadd.f32 %v1042_v7, %v1041_v4  ;;  %v1100_v10 = vpop.f32.mrb[3].mxu1 }
  0xff   : > { %v1101_v11 = vadd.f32 %v1100_v10, %v1099_v6 }
 0x100   : > { %v718_v12 = vadd.f32 %v1098_v5, %v630_v8  ;;  %v633_v13 = vadd.f32 %v1043_v9, %v1392_v0 }
 0x102   : > { %v771_v14 = vmax.f32 %v718_v12, 0.0  ;;  %v721_v15 = vadd.f32 %v1101_v11, %v633_v13  ;;  %v1044_v16 = vpop.f32.mrb[4].mxu0 }
 0x103   : > { %v1102_v17 = vpop.f32.mrb[4].mxu1  ;;  %v1045_v18 = vpop.f32.mrb[5].mxu0 }
 0x104   : > { %784 = vst [vmem:[#allocation2] sm:$0xff] %v771_v14  ;;  %v772_v19 = vmax.f32 %v721_v15, 0.0  ;;  %v1046_v20 = vadd.f32 %v1045_v18, %v1044_v16  ;;  %v1103_v21 = vpop.f32.mrb[5].mxu1  ;;  %v1047_v22 = vpop.f32.mrb[6].mxu0 }
 0x105   : > { %v1104_v23 = vadd.f32 %v1103_v21, %v1102_v17  ;;  %v1105_v24 = vpop.f32.mrb[6].mxu1  ;;  %v1048_v25 = vpop.f32.mrb[7].mxu0 }
 0x106   : > { %785 = vst [vmem:[#allocation2 + $0x8] sm:$0xff] %v772_v19  ;;  %v638_v26 = vadd.f32 %v1046_v20, %v1392_v0  ;;  %v1049_v27 = vadd.f32 %v1048_v25, %v1047_v22  ;;  %v1106_v28 = vpop.f32.mrb[7].mxu1 }
 0x107   : > { %v1107_v29 = vadd.f32 %v1106_v28, %v1105_v24 }
 0x108   : > { %v726_v30 = vadd.f32 %v1104_v23, %v638_v26  ;;  %v641_v31 = vadd.f32 %v1049_v27, %v1392_v0 }
 0x10a   : > { %v773_v32 = vmax.f32 %v726_v30, 0.0  ;;  %v729_v33 = vadd.f32 %v1107_v29, %v641_v31  ;;  %v1050_v34 = vpop.f32.mrb[8].mxu0 }
 0x10b   : > { %v1108_v35 = vpop.f32.mrb[8].mxu1  ;;  %v1051_v36 = vpop.f32.mrb[9].mxu0 }
 0x10c   : > { %786 = vst [vmem:[#allocation2 + $0x10] sm:$0xff] %v773_v32  ;;  %v774_v37 = vmax.f32 %v729_v33, 0.0  ;;  %v1052_v38 = vadd.f32 %v1051_v36, %v1050_v34  ;;  %v1109_v39 = vpop.f32.mrb[9].mxu1  ;;  %v1053_v40 = vpop.f32.mrb[10].mxu0 }
 0x10d   : > { %v797_v41 = vld [vmem:[#allocation2] ss:$2 sm:$0xff]  ;;  %v811_v42 = vld [vmem:[#allocation2 + $0x1] ss:$2 sm:$0xff]  ;;  %v1110_v43 = vadd.f32 %v1109_v39, %v1108_v35  ;;  %v1111_v44 = vpop.f32.mrb[10].mxu1  ;;  %v1054_v45 = vpop.f32.mrb[11].mxu0 }
 0x10e   : > { %v824_v46 = vmax.f32 %v797_v41, %v811_v42  ;;  %787 = vst [vmem:[#allocation2 + $0x18] sm:$0xff] %v774_v37  ;;  %v646_v47 = vadd.f32 %v1052_v38, %v1392_v0  ;;  %v1055_v48 = vadd.f32 %v1054_v45, %v1053_v40  ;;  %v1112_v49 = vpop.f32.mrb[11].mxu1 }
 0x10f   : > { %v1113_v50 = vadd.f32 %v1112_v49, %v1111_v44 }
 0x110   : > { %831 = vst [vmem:[#allocation3] sm:$0xff] %v824_v46  ;;  %v734_v51 = vadd.f32 %v1110_v43, %v646_v47  ;;  %v649_v52 = vadd.f32 %v1055_v48, %v1392_v0 }
 0x112   : > { %v775_v53 = vmax.f32 %v734_v51, 0.0  ;;  %v737_v54 = vadd.f32 %v1113_v50, %v649_v52  ;;  %v1056_v55 = vpop.f32.mrb[12].mxu0 }
 0x113   : > { %v1114_v56 = vpop.f32.mrb[12].mxu1  ;;  %v1057_v57 = vpop.f32.mrb[13].mxu0 }
 0x114   : > { %788 = vst [vmem:[#allocation2 + $0x20] sm:$0xff] %v775_v53  ;;  %v776_v58 = vmax.f32 %v737_v54, 0.0  ;;  %v1058_v59 = vadd.f32 %v1057_v57, %v1056_v55  ;;  %v1115_v60 = vpop.f32.mrb[13].mxu1  ;;  %v1059_v61 = vpop.f32.mrb[14].mxu0 }
 0x115   : > { %v799_v62 = vld [vmem:[#allocation2 + $0x10] ss:$2 sm:$0xff]  ;;  %v813_v63 = vld [vmem:[#allocation2 + $0x11] ss:$2 sm:$0xff]  ;;  %v1116_v1 = vadd.f32 %v1115_v60, %v1114_v56  ;;  %v1117_v2 = vpop.f32.mrb[14].mxu1  ;;  %v1060_v3 = vpop.f32.mrb[15].mxu0 }
 0x116   : > { %v825_v4 = vmax.f32 %v799_v62, %v813_v63  ;;  %789 = vst [vmem:[#allocation2 + $0x28] sm:$0xff] %v776_v58  ;;  %v654_v5 = vadd.f32 %v1058_v59, %v1392_v0  ;;  %v1061_v6 = vadd.f32 %v1060_v3, %v1059_v61  ;;  %v1118_v7 = vpop.f32.mrb[15].mxu1 }
 0x117   : > { %v1119_v8 = vadd.f32 %v1118_v7, %v1117_v2 }
 0x118   : > { %832 = vst [vmem:[#allocation3 + $0x8] sm:$0xff] %v825_v4  ;;  %v742_v9 = vadd.f32 %v1116_v1, %v654_v5  ;;  %v657_v10 = vadd.f32 %v1061_v6, %v1392_v0 }
 0x11a   : > { %v777_v11 = vmax.f32 %v742_v9, 0.0  ;;  %v745_v12 = vadd.f32 %v1119_v8, %v657_v10  ;;  %v1062_v13 = vpop.f32.mrb[16].mxu0 }
 0x11b   : > { %v1120_v14 = vpop.f32.mrb[16].mxu1  ;;  %v1063_v15 = vpop.f32.mrb[17].mxu0 }
 0x11c   : > { %790 = vst [vmem:[#allocation2 + $0x30] sm:$0xff] %v777_v11  ;;  %v778_v16 = vmax.f32 %v745_v12, 0.0  ;;  %v1064_v17 = vadd.f32 %v1063_v15, %v1062_v13  ;;  %v1121_v18 = vpop.f32.mrb[17].mxu1  ;;  %v1065_v19 = vpop.f32.mrb[18].mxu0 }
 0x11d   : > { %v801_v20 = vld [vmem:[#allocation2 + $0x20] ss:$2 sm:$0xff]  ;;  %v815_v21 = vld [vmem:[#allocation2 + $0x21] ss:$2 sm:$0xff]  ;;  %v1122_v22 = vadd.f32 %v1121_v18, %v1120_v14  ;;  %v1123_v23 = vpop.f32.mrb[18].mxu1  ;;  %v1066_v24 = vpop.f32.mrb[19].mxu0 }
 0x11e   : > { %v826_v25 = vmax.f32 %v801_v20, %v815_v21  ;;  %791 = vst [vmem:[#allocation2 + $0x38] sm:$0xff] %v778_v16  ;;  %v662_v26 = vadd.f32 %v1064_v17, %v1392_v0  ;;  %v1067_v27 = vadd.f32 %v1066_v24, %v1065_v19  ;;  %v1124_v28 = vpop.f32.mrb[19].mxu1 }
 0x11f   : > { %v1125_v29 = vadd.f32 %v1124_v28, %v1123_v23  ;;  %v838_v56 = vld [vmem:[#allocation3] ss:$2 sm:$0xff]  ;;  %v846_v59 = vld [vmem:[#allocation3 + $0x1] ss:$2 sm:$0xff] }
 0x120   : > { %833 = vst [vmem:[#allocation3 + $0x10] sm:$0xff] %v826_v25  ;;  %v750_v30 = vadd.f32 %v1122_v22, %v662_v26  ;;  %v665_v31 = vadd.f32 %v1067_v27, %v1392_v0  ;;  %v853_v11 = vmax.f32 %v838_v56, %v846_v59  ;;  %v879_v28 = vld [vmem:[%s170_s10 + $0xc] sm:$0x1] }
 0x122   : > { %v779_v32 = vmax.f32 %v750_v30, 0.0  ;;  %v753_v33 = vadd.f32 %v1125_v29, %v665_v31  ;;  %v1068_v34 = vpop.f32.mrb[20].mxu0 }
 0x123   : > { %v1126_v35 = vpop.f32.mrb[20].mxu1  ;;  %v1069_v36 = vpop.f32.mrb[21].mxu0 }
 0x124   : > { %792 = vst [vmem:[#allocation2 + $0x40] sm:$0xff] %v779_v32  ;;  %v780_v37 = vmax.f32 %v753_v33, 0.0  ;;  %v1070_v38 = vadd.f32 %v1069_v36, %v1068_v34  ;;  %v1127_v39 = vpop.f32.mrb[21].mxu1  ;;  %v1071_v40 = vpop.f32.mrb[22].mxu0 }
 0x125   : > { %v803_v41 = vld [vmem:[#allocation2 + $0x30] ss:$2 sm:$0xff]  ;;  %v817_v42 = vld [vmem:[#allocation2 + $0x31] ss:$2 sm:$0xff]  ;;  %v1128_v43 = vadd.f32 %v1127_v39, %v1126_v35  ;;  %v1129_v44 = vpop.f32.mrb[22].mxu1  ;;  %v1072_v45 = vpop.f32.mrb[23].mxu0 }
 0x126   : > { %v827_v46 = vmax.f32 %v803_v41, %v817_v42  ;;  %793 = vst [vmem:[#allocation2 + $0x48] sm:$0xff] %v780_v37  ;;  %v670_v47 = vadd.f32 %v1070_v38, %v1392_v0  ;;  %v1073_v48 = vadd.f32 %v1072_v45, %v1071_v40  ;;  %v1130_v49 = vpop.f32.mrb[23].mxu1 }
 0x127   : > { %v1131_v50 = vadd.f32 %v1130_v49, %v1129_v44 }
 0x128   : > { %834 = vst [vmem:[#allocation3 + $0x18] sm:$0xff] %v827_v46  ;;  %v758_v51 = vadd.f32 %v1128_v43, %v670_v47  ;;  %v673_v52 = vadd.f32 %v1073_v48, %v1392_v0 }
 0x12a   : > { %v781_v53 = vmax.f32 %v758_v51, 0.0  ;;  %v761_v54 = vadd.f32 %v1131_v50, %v673_v52  ;;  %v1074_v55 = vpop.f32.mrb[24].mxu0 }
 0x12b   : > { %v1132_v57 = vpop.f32.mrb[24].mxu1  ;;  %v1075_v58 = vpop.f32.mrb[25].mxu0 }
 0x12c   : > { %794 = vst [vmem:[#allocation2 + $0x50] sm:$0xff] %v781_v53  ;;  %v782_v60 = vmax.f32 %v761_v54, 0.0  ;;  %v1076_v61 = vadd.f32 %v1075_v58, %v1074_v55  ;;  %v1133_v62 = vpop.f32.mrb[25].mxu1  ;;  %v1077_v63 = vpop.f32.mrb[26].mxu0 }
 0x12d   : > { %v805_v1 = vld [vmem:[#allocation2 + $0x40] ss:$2 sm:$0xff]  ;;  %v819_v2 = vld [vmem:[#allocation2 + $0x41] ss:$2 sm:$0xff]  ;;  %v1134_v3 = vadd.f32 %v1133_v62, %v1132_v57  ;;  %v1135_v4 = vpop.f32.mrb[26].mxu1  ;;  %v1078_v5 = vpop.f32.mrb[27].mxu0 }
 0x12e   : > { %v828_v6 = vmax.f32 %v805_v1, %v819_v2  ;;  %795 = vst [vmem:[#allocation2 + $0x58] sm:$0xff] %v782_v60  ;;  %v678_v7 = vadd.f32 %v1076_v61, %v1392_v0  ;;  %v1136_v8 = vpop.f32.mrb[27].mxu1 }
 0x12f   : > { %v840_v9 = vld [vmem:[#allocation3 + $0x10] ss:$2 sm:$0xff]  ;;  %v848_v10 = vld [vmem:[#allocation3 + $0x11] ss:$2 sm:$0xff] }
 0x130   : > { %v854_v12 = vmax.f32 %v840_v9, %v848_v10  ;;  %835 = vst [vmem:[#allocation3 + $0x20] sm:$0xff] %v828_v6  ;;  %v766_v13 = vadd.f32 %v1134_v3, %v678_v7 }
 0x132   : > { %v1020_v14 = vpack.c.bf16 %v854_v12, %v853_v11  ;;  %v783_v15 = vmax.f32 %v766_v13, 0.0 }
 0x134   : > { %1021 = vst [vmem:[%s170_s10] sm:$0xff] %v1020_v14   ;;  %796 = vst [vmem:[#allocation2 + $0x60] sm:$0xf] %v783_v15 }
 0x135   : > { %v807_v16 = vld [vmem:[#allocation2 + $0x50] ss:$2 sm:$0xff]  ;;  %v821_v17 = vld [vmem:[#allocation2 + $0x51] ss:$2 sm:$0xff] }
 0x136   : > { %v829_v18 = vmax.f32 %v807_v16, %v821_v17 }
 0x138   : > { %836 = vst [vmem:[#allocation3 + $0x28] sm:$0xff] %v829_v18 }
 0x13b   : > { %v809_v0 = vld [vmem:[#allocation2 + $0x60] ss:$2 sm:$0x3]  ;;  %v823_v19 = vld [vmem:[#allocation2 + $0x61] ss:$2 sm:$0x3] }
 0x13c   : > { %v830_v20 = vmax.f32 %v809_v0, %v823_v19 }
 0x13e   : > { %837 = vst [vmem:[#allocation3 + $0x30] sm:$0x3] %v830_v20 }
 0x13f   : > { %v842_v21 = vld [vmem:[#allocation3 + $0x20] ss:$2 sm:$0xff]  ;;  %v850_v22 = vld [vmem:[#allocation3 + $0x21] ss:$2 sm:$0xff] }
 0x140   : > { %v855_v23 = vmax.f32 %v842_v21, %v850_v22 }
 0x142   : > { %v1015_v24 = vpack.c.bf16 %v855_v23, %v855_v23 }
 0x144   : > { %875 = vst [vmem:[%s170_s10 + $0x8] sm:$0xf] %v1015_v24 }
 0x145   : > { %v844_v25 = vld [vmem:[#allocation3 + $0x30] ss:$2 sm:$0x1]  ;;  %v852_v26 = vld [vmem:[#allocation3 + $0x31] ss:$2 sm:$0x1] }
 0x146   : > { %v856_v27 = vmax.f32 %v844_v25, %v852_v26 }
 0x148   : > { %v1016_v29 = vpack.c.bf16 %v856_v27, %v856_v27 }
 0x14a   : > { %v880_v30 = vsel %vm878_vm2, %v1016_v29, %v879_v28 }
 0x14b   : > { %881 = vst [vmem:[%s170_s10 + $0xc] sm:$0x1] %v880_v30 }
 0x14c PF: > { %s13_s12 = sadd.s32 1, %s1225_s12  }
 0x14d   : > { %p10_p4 = scmp.ge.s32.totalorder %s13_s12, 4  }
 0x14f   :  { %12 = sbr.rel (!%p10_p4) target bundleno = 1 (0x1), region = 82 }

// kernel: net_forward.5
= control target key start
LH: loop header
LB: loop body
LE: loop exit
PB: predicated region body
PF: predicated region fallthrough
CT: control target
= control target key end

     0   :  { %v346_v36 = vlaneseq  ;;  %v3798_v37 = vmov 1966171168   ;;  %s4960_s0 = inlined_call_operand.vmem [shape: bf16[2,1280], index: 0, kind: input, shape index: {}]   ;;  %s4961_s1 = inlined_call_operand.vmem [shape: bf16[1280,512], index: 1, kind: input, shape index: {}]   ;;  %s4962_s2 = inlined_call_operand.vmem [shape: f32[1,512], index: 2, kind: input, shape index: {}]   ;;  %s4963_s3 = inlined_call_operand.vmem [shape: bf16[512,128], index: 3, kind: input, shape index: {}]   ;;  %s4964_s4 = inlined_call_operand.vmem [shape: f32[1,128], index: 4, kind: input, shape index: {}]   ;;  %s4965_s5 = inlined_call_operand.hbm [shape: f32[2,128], index: 5, kind: output, shape index: {}]  }
   0x1   :  { %v3261_v0 = vld [vmem:[%s4961_s1 + $0x4] ss:$16 sps:$4 sm:$0xff]   ;;  %v3263_v1 = vld [vmem:[%s4961_s1 + $0xc] ss:$16 sps:$4 sm:$0xff]   ;;  %v3265_v2 = vld [vmem:[%s4961_s1] ss:$16 sps:$4 sm:$0xff]   ;;  %v370_v38 = vunpack.c.l.s4 %v3798_v37 }
   0x2   :  { %2049 = vmatprep.subr.bf16.mxu0 %v3261_v0  ;;  %v3266_v3 = vld [vmem:[%s4961_s1 + $0x8] ss:$16 sps:$4 sm:$0xff]   ;;  %2254 = vmatprep.subr.bf16.mxu1 %v3263_v1  ;;  %v3267_v4 = vld [vmem:[%s4961_s1 + $0x24] ss:$16 sps:$4 sm:$0xff]   ;;  %v3269_v5 = vld [vmem:[%s4961_s1 + $0x2c] ss:$16 sps:$4 sm:$0xff]  }
   0x3   :  { %2050 = vmatpush1.bf16.msra.mxu0 %v3265_v2  ;;  %2255 = vmatpush1.bf16.msra.mxu1 %v3266_v3  ;;  %v3271_v6 = vld [vmem:[%s4961_s1 + $0x20] ss:$16 sps:$4 sm:$0xff]   ;;  %v3272_v7 = vld [vmem:[%s4961_s1 + $0x28] ss:$16 sps:$4 sm:$0xff]   ;;  %v3273_v8 = vld [vmem:[%s4961_s1 + $0x44] ss:$16 sps:$4 sm:$0xff]   ;;  %v371_v43 = vunpack.c.0.s8 %v370_v38 }
   0x4   :  { %2051 = vmatprep.subr.bf16.mxu0 %v3267_v4  ;;  %2256 = vmatprep.subr.bf16.mxu1 %v3269_v5  ;;  %v3275_v9 = vld [vmem:[%s4961_s1 + $0x4c] ss:$16 sps:$4 sm:$0xff]   ;;  %v3277_v10 = vld [vmem:[%s4961_s1 + $0x40] ss:$16 sps:$4 sm:$0xff]   ;;  %v3278_v11 = vld [vmem:[%s4961_s1 + $0x48] ss:$16 sps:$4 sm:$0xff]  }
   0x5   :  { %v3279_v12 = vld [vmem:[%s4961_s1 + $0x64] ss:$16 sps:$4 sm:$0xff]   ;;  %v3281_v13 = vld [vmem:[%s4961_s1 + $0x6c] ss:$16 sps:$4 sm:$0xff]   ;;  %v3283_v14 = vld [vmem:[%s4961_s1 + $0x60] ss:$16 sps:$4 sm:$0xff]  }
   0x6   :  { %v3284_v15 = vld [vmem:[%s4961_s1 + $0x68] ss:$16 sps:$4 sm:$0xff]   ;;  %v3285_v16 = vld [vmem:[%s4961_s1 + $0x84] ss:$16 sps:$4 sm:$0xff]   ;;  %v3287_v17 = vld [vmem:[%s4961_s1 + $0x8c] ss:$16 sps:$4 sm:$0xff]  }
   0x7   :  { %2052 = vmatpush1.bf16.msra.mxu0 %v3271_v6  ;;  %2257 = vmatpush1.bf16.msra.mxu1 %v3272_v7  ;;  %v3289_v18 = vld [vmem:[%s4961_s1 + $0x80] ss:$16 sps:$4 sm:$0xff]   ;;  %v3290_v19 = vld [vmem:[%s4961_s1 + $0x88] ss:$16 sps:$4 sm:$0xff]   ;;  %v3291_v20 = vld [vmem:[%s4961_s1 + $0xa4] ss:$16 sps:$4 sm:$0xff]  }
   0x8   :  { %2053 = vmatprep.subr.bf16.mxu0 %v3273_v8  ;;  %2258 = vmatprep.subr.bf16.mxu1 %v3275_v9  ;;  %v3293_v21 = vld [vmem:[%s4961_s1 + $0xac] ss:$16 sps:$4 sm:$0xff]   ;;  %v3295_v22 = vld [vmem:[%s4961_s1 + $0xa0] ss:$16 sps:$4 sm:$0xff]   ;;  %v3296_v23 = vld [vmem:[%s4961_s1 + $0xa8] ss:$16 sps:$4 sm:$0xff]  }
   0x9   :  { %v3297_v24 = vld [vmem:[%s4961_s1 + $0xc4] ss:$16 sps:$4 sm:$0xff]   ;;  %v3299_v25 = vld [vmem:[%s4961_s1 + $0xcc] ss:$16 sps:$4 sm:$0xff]   ;;  %v3301_v26 = vld [vmem:[%s4961_s1 + $0xc0] ss:$16 sps:$4 sm:$0xff]  }
   0xa   :  { %v3302_v27 = vld [vmem:[%s4961_s1 + $0xc8] ss:$16 sps:$4 sm:$0xff]   ;;  %v3303_v28 = vld [vmem:[%s4961_s1 + $0xe4] ss:$16 sps:$4 sm:$0xff]   ;;  %v3305_v29 = vld [vmem:[%s4961_s1 + $0xec] ss:$16 sps:$4 sm:$0xff]  }
   0xb   :  { %2054 = vmatpush1.bf16.msra.mxu0 %v3277_v10  ;;  %2259 = vmatpush1.bf16.msra.mxu1 %v3278_v11  ;;  %v3307_v30 = vld [vmem:[%s4961_s1 + $0xe0] ss:$16 sps:$4 sm:$0xff]   ;;  %v3308_v31 = vld [vmem:[%s4961_s1 + $0xe8] ss:$16 sps:$4 sm:$0xff]   ;;  %v3309_v32 = vld [vmem:[%s4961_s1 + $0x104] ss:$16 sps:$4 sm:$0xff]  }
   0xc   :  { %2055 = vmatprep.subr.bf16.mxu0 %v3279_v12  ;;  %2260 = vmatprep.subr.bf16.mxu1 %v3281_v13  ;;  %v3311_v33 = vld [vmem:[%s4961_s1 + $0x10c] ss:$16 sps:$4 sm:$0xff]   ;;  %v3313_v34 = vld [vmem:[%s4961_s1 + $0x100] ss:$16 sps:$4 sm:$0xff]   ;;  %v3314_v35 = vld [vmem:[%s4961_s1 + $0x108] ss:$16 sps:$4 sm:$0xff]  }
   0xd   :  { %v3315_v39 = vld [vmem:[%s4961_s1 + $0x124] ss:$16 sps:$4 sm:$0xff]   ;;  %v3317_v40 = vld [vmem:[%s4961_s1 + $0x12c] ss:$16 sps:$4 sm:$0xff]   ;;  %v3319_v41 = vld [vmem:[%s4961_s1 + $0x120] ss:$16 sps:$4 sm:$0xff]  }
   0xe   :  { %v3947_v42 = vshrl.u32 %v346_v36, 7  ;;  %v3320_v44 = vld [vmem:[%s4961_s1 + $0x128] ss:$16 sps:$4 sm:$0xff]   ;;  %v3321_v45 = vld [vmem:[%s4961_s1 + $0x144] ss:$16 sps:$4 sm:$0xff]  }
   0xf   :  { %2056 = vmatpush1.bf16.msra.mxu0 %v3283_v14  ;;  %2261 = vmatpush1.bf16.msra.mxu1 %v3284_v15  ;;  %v3323_v46 = vld [vmem:[%s4961_s1 + $0x14c] ss:$16 sps:$4 sm:$0xff]   ;;  %v3325_v47 = vld [vmem:[%s4961_s1 + $0x140] ss:$16 sps:$4 sm:$0xff]   ;;  %v3326_v48 = vld [vmem:[%s4961_s1 + $0x148] ss:$16 sps:$4 sm:$0xff]  }
  0x10   :  { %2057 = vmatprep.subr.bf16.mxu0 %v3285_v16  ;;  %2262 = vmatprep.subr.bf16.mxu1 %v3287_v17  ;;  %v3965_v49 = vsub.s32 %v371_v43, %v3947_v42  ;;  %v3327_v50 = vld [vmem:[%s4961_s1 + $0x164] ss:$16 sps:$4 sm:$0xff]   ;;  %v3329_v51 = vld [vmem:[%s4961_s1 + $0x16c] ss:$16 sps:$4 sm:$0xff]   ;;  %v3331_v53 = vld [vmem:[%s4961_s1 + $0x160] ss:$16 sps:$4 sm:$0xff]  }
  0x11   :  { %v3976_v52 = vld [vmem:[%s4960_s0] sm:$0xff]  ;;  %v3332_v55 = vld [vmem:[%s4961_s1 + $0x168] ss:$16 sps:$4 sm:$0xff]   ;;  %v3335_v57 = vld [vmem:[%s4961_s1 + $0x18c] ss:$16 sps:$4 sm:$0xff]  }
  0x12   :  { %v375_v54 = vrot.slane %v3976_v52, %v3965_v49  ;;  %v3333_v56 = vld [vmem:[%s4961_s1 + $0x184] ss:$16 sps:$4 sm:$0xff]   ;;  %v3337_v59 = vld [vmem:[%s4961_s1 + $0x180] ss:$16 sps:$4 sm:$0xff]   ;;  %v3338_v61 = vld [vmem:[%s4961_s1 + $0x188] ss:$16 sps:$4 sm:$0xff]  }
  0x13   :  { %2058 = vmatpush1.bf16.msra.mxu0 %v3289_v18  ;;  %2263 = vmatpush1.bf16.msra.mxu1 %v3290_v19  ;;  %v3339_v62 = vld [vmem:[%s4961_s1 + $0x1a4] ss:$16 sps:$4 sm:$0xff]   ;;  %v3341_v63 = vld [vmem:[%s4961_s1 + $0x1ac] ss:$16 sps:$4 sm:$0xff]   ;;  %v3343_v0 = vld [vmem:[%s4961_s1 + $0x1a0] ss:$16 sps:$4 sm:$0xff]  }
  0x14   :  { %2059 = vmatprep.subr.bf16.mxu0 %v3291_v20  ;;  %2264 = vmatprep.subr.bf16.mxu1 %v3293_v21  ;;  %v383_v58 = vcombine.high %v375_v54, %v375_v54  ;;  %v3344_v1 = vld [vmem:[%s4961_s1 + $0x1a8] ss:$16 sps:$4 sm:$0xff]   ;;  %v3345_v2 = vld [vmem:[%s4961_s1 + $0x1c4] ss:$16 sps:$4 sm:$0xff]   ;;  %v3347_v3 = vld [vmem:[%s4961_s1 + $0x1cc] ss:$16 sps:$4 sm:$0xff]   ;;  %v4045_v13 = vrot.slane %v375_v54, %v3965_v49 }
  0x15   :  { %v3349_v4 = vld [vmem:[%s4961_s1 + $0x1c0] ss:$16 sps:$4 sm:$0xff]   ;;  %v3350_v5 = vld [vmem:[%s4961_s1 + $0x1c8] ss:$16 sps:$4 sm:$0xff]   ;;  %v3351_v6 = vld [vmem:[%s4961_s1 + $0x1e4] ss:$16 sps:$4 sm:$0xff]  }
  0x16   :  { %v405_v60 = vrot.slane %v383_v58, %v3965_v49  ;;  %v3353_v7 = vld [vmem:[%s4961_s1 + $0x1ec] ss:$16 sps:$4 sm:$0xff]   ;;  %v3355_v8 = vld [vmem:[%s4961_s1 + $0x1e0] ss:$16 sps:$4 sm:$0xff]   ;;  %v3356_v9 = vld [vmem:[%s4961_s1 + $0x1e8] ss:$16 sps:$4 sm:$0xff]  }
  0x17   :  { %2060 = vmatpush1.bf16.msra.mxu0 %v3295_v22  ;;  %2265 = vmatpush1.bf16.msra.mxu1 %v3296_v23  ;;  %v3359_v10 = vld [vmem:[%s4961_s1 + $0x204] ss:$16 sps:$4 sm:$0xff]   ;;  %v3362_v11 = vld [vmem:[%s4961_s1 + $0x20c] ss:$16 sps:$4 sm:$0xff]   ;;  %v3357_v12 = vld [vmem:[%s4961_s1 + $0x200] ss:$16 sps:$4 sm:$0xff]  }
  0x18   :  { %2061 = vmatprep.subr.bf16.mxu0 %v3297_v24  ;;  %2266 = vmatprep.subr.bf16.mxu1 %v3299_v25  ;;  %v3360_v14 = vld [vmem:[%s4961_s1 + $0x208] ss:$16 sps:$4 sm:$0xff]   ;;  %v3365_v15 = vld [vmem:[%s4961_s1 + $0x224] ss:$16 sps:$4 sm:$0xff]   ;;  %v3368_v16 = vld [vmem:[%s4961_s1 + $0x22c] ss:$16 sps:$4 sm:$0xff]   ;;  %v415_v17 = vcombine.high %v405_v60, %v405_v60 }
  0x19   :  { %2081 = vmatprep.mubr.bf16.mxu0 %v405_v60  ;;  %2286 = vmatprep.mubr.bf16.mxu1 %v405_v60  ;;  %v3363_v18 = vld [vmem:[%s4961_s1 + $0x220] ss:$16 sps:$4 sm:$0xff]   ;;  %v3366_v19 = vld [vmem:[%s4961_s1 + $0x228] ss:$16 sps:$4 sm:$0xff]   ;;  %v3371_v20 = vld [vmem:[%s4961_s1 + $0x244] ss:$16 sps:$4 sm:$0xff]  }
  0x1a   :  { %v3374_v21 = vld [vmem:[%s4961_s1 + $0x24c] ss:$16 sps:$4 sm:$0xff]   ;;  %v3369_v22 = vld [vmem:[%s4961_s1 + $0x240] ss:$16 sps:$4 sm:$0xff]   ;;  %v3372_v23 = vld [vmem:[%s4961_s1 + $0x248] ss:$16 sps:$4 sm:$0xff]  }
  0x1b   :  { %2062 = vmatpush1.bf16.msra.mxu0 %v3301_v26  ;;  %2267 = vmatpush1.bf16.msra.mxu1 %v3302_v27  ;;  %v3377_v24 = vld [vmem:[%s4961_s1 + $0x264] ss:$16 sps:$4 sm:$0xff]   ;;  %v3380_v25 = vld [vmem:[%s4961_s1 + $0x26c] ss:$16 sps:$4 sm:$0xff]   ;;  %v3375_v26 = vld [vmem:[%s4961_s1 + $0x260] ss:$16 sps:$4 sm:$0xff]  }
  0x1c   :  { %2063 = vmatprep.subr.bf16.mxu0 %v3303_v28  ;;  %2268 = vmatprep.subr.bf16.mxu1 %v3305_v29  ;;  %v3378_v27 = vld [vmem:[%s4961_s1 + $0x268] ss:$16 sps:$4 sm:$0xff]   ;;  %v3383_v28 = vld [vmem:[%s4961_s1 + $0x284] ss:$16 sps:$4 sm:$0xff]   ;;  %v3386_v29 = vld [vmem:[%s4961_s1 + $0x28c] ss:$16 sps:$4 sm:$0xff]  }
  0x1d   :  { %v3395_v36 = vld [vmem:[%s4961_s1 + $0x2c4] ss:$16 sps:$4 sm:$0xff]   ;;  %v3398_v37 = vld [vmem:[%s4961_s1 + $0x2cc] ss:$16 sps:$4 sm:$0xff]   ;;  %v3393_v38 = vld [vmem:[%s4961_s1 + $0x2c0] ss:$16 sps:$4 sm:$0xff]  }
  0x1e   :  { %v3399_v43 = vld [vmem:[%s4961_s1 + $0x2e0] ss:$16 sps:$4 sm:$0xff]   ;;  %v3414_v54 = vld [vmem:[%s4961_s1 + $0x328] ss:$16 sps:$4 sm:$0xff]   ;;  %v3428_v60 = vld [vmem:[%s4961_s1 + $0x36c] ss:$16 sps:$4 sm:$0xff]  }
  0x1f   :  { %2064 = vmatpush1.bf16.msra.mxu0 %v3307_v30  ;;  %2269 = vmatpush1.bf16.msra.mxu1 %v3308_v31  ;;  %v3381_v30 = vld [vmem:[%s4961_s1 + $0x280] ss:$16 sps:$4 sm:$0xff]   ;;  %v3384_v31 = vld [vmem:[%s4961_s1 + $0x288] ss:$16 sps:$4 sm:$0xff]  }
  0x20   :  { %2065 = vmatprep.subr.bf16.mxu0 %v3309_v32  ;;  %2270 = vmatprep.subr.bf16.mxu1 %v3311_v33  ;;  %v3389_v32 = vld [vmem:[%s4961_s1 + $0x2a4] ss:$16 sps:$4 sm:$0xff]   ;;  %v3392_v33 = vld [vmem:[%s4961_s1 + $0x2ac] ss:$16 sps:$4 sm:$0xff]   ;;  %v3420_v58 = vld [vmem:[%s4961_s1 + $0x348] ss:$16 sps:$4 sm:$0xff]  }
  0x23   :  { %2066 = vmatpush1.bf16.msra.mxu0 %v3313_v34  ;;  %2271 = vmatpush1.bf16.msra.mxu1 %v3314_v35  ;;  %v3387_v34 = vld [vmem:[%s4961_s1 + $0x2a0] ss:$16 sps:$4 sm:$0xff]   ;;  %v3390_v35 = vld [vmem:[%s4961_s1 + $0x2a8] ss:$16 sps:$4 sm:$0xff]  }
  0x24   :  { %2067 = vmatprep.subr.bf16.mxu0 %v3315_v39  ;;  %2272 = vmatprep.subr.bf16.mxu1 %v3317_v40  ;;  %v3396_v39 = vld [vmem:[%s4961_s1 + $0x2c8] ss:$16 sps:$4 sm:$0xff]   ;;  %v3401_v40 = vld [vmem:[%s4961_s1 + $0x2e4] ss:$16 sps:$4 sm:$0xff]  }
  0x27   :  { %2068 = vmatpush1.bf16.msra.mxu0 %v3319_v41  ;;  %2273 = vmatpush1.bf16.msra.mxu1 %v3320_v44  ;;  %v3404_v41 = vld [vmem:[%s4961_s1 + $0x2ec] ss:$16 sps:$4 sm:$0xff]   ;;  %v3402_v44 = vld [vmem:[%s4961_s1 + $0x2e8] ss:$16 sps:$4 sm:$0xff]  }
  0x28   :  { %2069 = vmatprep.subr.bf16.mxu0 %v3321_v45  ;;  %2274 = vmatprep.subr.bf16.mxu1 %v3323_v46  ;;  %v3407_v45 = vld [vmem:[%s4961_s1 + $0x304] ss:$16 sps:$4 sm:$0xff]   ;;  %v3410_v46 = vld [vmem:[%s4961_s1 + $0x30c] ss:$16 sps:$4 sm:$0xff]  }
  0x2b   :  { %2070 = vmatpush1.bf16.msra.mxu0 %v3325_v47  ;;  %2275 = vmatpush1.bf16.msra.mxu1 %v3326_v48  ;;  %v3405_v47 = vld [vmem:[%s4961_s1 + $0x300] ss:$16 sps:$4 sm:$0xff]   ;;  %v3408_v48 = vld [vmem:[%s4961_s1 + $0x308] ss:$16 sps:$4 sm:$0xff]  }
  0x2c   :  { %2071 = vmatprep.subr.bf16.mxu0 %v3327_v50  ;;  %2276 = vmatprep.subr.bf16.mxu1 %v3329_v51  ;;  %v3413_v50 = vld [vmem:[%s4961_s1 + $0x324] ss:$16 sps:$4 sm:$0xff]   ;;  %v3416_v51 = vld [vmem:[%s4961_s1 + $0x32c] ss:$16 sps:$4 sm:$0xff]  }
  0x2f   :  { %2072 = vmatpush1.bf16.msra.mxu0 %v3331_v53  ;;  %2277 = vmatpush1.bf16.msra.mxu1 %v3332_v55  ;;  %v3411_v53 = vld [vmem:[%s4961_s1 + $0x320] ss:$16 sps:$4 sm:$0xff]   ;;  %v3419_v55 = vld [vmem:[%s4961_s1 + $0x344] ss:$16 sps:$4 sm:$0xff]  }
  0x30   :  { %2073 = vmatprep.subr.bf16.mxu0 %v3333_v56  ;;  %2278 = vmatprep.subr.bf16.mxu1 %v3335_v57  ;;  %v3422_v56 = vld [vmem:[%s4961_s1 + $0x34c] ss:$16 sps:$4 sm:$0xff]   ;;  %v3417_v57 = vld [vmem:[%s4961_s1 + $0x340] ss:$16 sps:$4 sm:$0xff]  }
  0x33   :  { %2074 = vmatpush1.bf16.msra.mxu0 %v3337_v59  ;;  %2279 = vmatpush1.bf16.msra.mxu1 %v3338_v61  ;;  %v3425_v59 = vld [vmem:[%s4961_s1 + $0x364] ss:$16 sps:$4 sm:$0xff]   ;;  %v3423_v61 = vld [vmem:[%s4961_s1 + $0x360] ss:$16 sps:$4 sm:$0xff]  }
  0x34   :  { %2075 = vmatprep.subr.bf16.mxu0 %v3339_v62  ;;  %2280 = vmatprep.subr.bf16.mxu1 %v3341_v63  ;;  %v3426_v62 = vld [vmem:[%s4961_s1 + $0x368] ss:$16 sps:$4 sm:$0xff]   ;;  %v3431_v63 = vld [vmem:[%s4961_s1 + $0x384] ss:$16 sps:$4 sm:$0xff]  }
  0x37   :  { %2076 = vmatpush1.bf16.msra.mxu0 %v3343_v0  ;;  %2281 = vmatpush1.bf16.msra.mxu1 %v3344_v1  ;;  %v3434_v0 = vld [vmem:[%s4961_s1 + $0x38c] ss:$16 sps:$4 sm:$0xff]   ;;  %v3429_v1 = vld [vmem:[%s4961_s1 + $0x380] ss:$16 sps:$4 sm:$0xff]  }
  0x38   :  { %2077 = vmatprep.subr.bf16.mxu0 %v3345_v2  ;;  %2282 = vmatprep.subr.bf16.mxu1 %v3347_v3  ;;  %v3432_v2 = vld [vmem:[%s4961_s1 + $0x388] ss:$16 sps:$4 sm:$0xff]   ;;  %v3437_v3 = vld [vmem:[%s4961_s1 + $0x3a4] ss:$16 sps:$4 sm:$0xff]  }
  0x3b   :  { %2078 = vmatpush1.bf16.msra.mxu0 %v3349_v4  ;;  %2283 = vmatpush1.bf16.msra.mxu1 %v3350_v5  ;;  %v3440_v4 = vld [vmem:[%s4961_s1 + $0x3ac] ss:$16 sps:$4 sm:$0xff]   ;;  %v3435_v5 = vld [vmem:[%s4961_s1 + $0x3a0] ss:$16 sps:$4 sm:$0xff]  }
  0x3c   :  { %2079 = vmatprep.subr.bf16.mxu0 %v3351_v6  ;;  %2284 = vmatprep.subr.bf16.mxu1 %v3353_v7  ;;  %v3438_v6 = vld [vmem:[%s4961_s1 + $0x3a8] ss:$16 sps:$4 sm:$0xff]   ;;  %v3443_v7 = vld [vmem:[%s4961_s1 + $0x3c4] ss:$16 sps:$4 sm:$0xff]  }
  0x3f   :  { %2080 = vmatpush1.bf16.msra.mxu0 %v3355_v8  ;;  %2285 = vmatpush1.bf16.msra.mxu1 %v3356_v9  ;;  %v3446_v8 = vld [vmem:[%s4961_s1 + $0x3cc] ss:$16 sps:$4 sm:$0xff]   ;;  %v368_v9 = vcombine.high %v3976_v52, %v3976_v52 }
  0x40   :  { %2090 = vmatprep.subr.bf16.mxu0 %v3359_v10  ;;  %2295 = vmatprep.subr.bf16.mxu1 %v3362_v11  ;;  %v3441_v10 = vld [vmem:[%s4961_s1 + $0x3c0] ss:$16 sps:$4 sm:$0xff]   ;;  %v3444_v11 = vld [vmem:[%s4961_s1 + $0x3c8] ss:$16 sps:$4 sm:$0xff]   ;;  %v3452_v52 = vld [vmem:[%s4961_s1 + $0x3ec] ss:$16 sps:$4 sm:$0xff]  }
  0x42   :  { %2082 = vmatmul.mubr.bf16.vlgmr.msra.gmra.mrb[0].mxu0 %v4045_v13  ;;  %2287 = vmatmul.mubr.bf16.vlgmr.msra.gmra.mrb[0].mxu1 %v4045_v13 }
  0x43   :  { %2091 = vmatpush1.bf16.msra.mxu0 %v3357_v12  ;;  %2296 = vmatpush1.bf16.msra.mxu1 %v3360_v14  ;;  %v3449_v12 = vld [vmem:[%s4961_s1 + $0x3e4] ss:$16 sps:$4 sm:$0xff]   ;;  %v4229_v14 = vrot.slane %v368_v9, %v3965_v49  ;;  %v3528_v9 = vld [vmem:[%s4961_s1 + $0x588] ss:$16 sps:$4 sm:$0xff]  }
  0x44   :  { %2092 = vmatprep.subr.bf16.mxu0 %v3365_v15  ;;  %2297 = vmatprep.subr.bf16.mxu1 %v3368_v16  ;;  %v3447_v15 = vld [vmem:[%s4961_s1 + $0x3e0] ss:$16 sps:$4 sm:$0xff]   ;;  %v3450_v16 = vld [vmem:[%s4961_s1 + $0x3e8] ss:$16 sps:$4 sm:$0xff]  }
  0x45   :  { %2122 = vmatprep.mubr.bf16.mxu0 %v415_v17  ;;  %2327 = vmatprep.mubr.bf16.mxu1 %v415_v17  ;;  %v3455_v17 = vld [vmem:[%s4961_s1 + $0x404] ss:$16 sps:$4 sm:$0xff]  }
  0x47   :  { %2093 = vmatpush1.bf16.msra.mxu0 %v3363_v18  ;;  %2298 = vmatpush1.bf16.msra.mxu1 %v3366_v19  ;;  %v3458_v18 = vld [vmem:[%s4961_s1 + $0x40c] ss:$16 sps:$4 sm:$0xff]   ;;  %v384_v19 = vcombine.high %v4229_v14, %v4229_v14 }
  0x48   :  { %2094 = vmatprep.subr.bf16.mxu0 %v3371_v20  ;;  %2299 = vmatprep.subr.bf16.mxu1 %v3374_v21  ;;  %v3453_v20 = vld [vmem:[%s4961_s1 + $0x400] ss:$16 sps:$4 sm:$0xff]   ;;  %v413_v21 = vcombine.high %v4045_v13, %v4045_v13 }
  0x49   :  { %v3459_v13 = vld [vmem:[%s4961_s1 + $0x420] ss:$16 sps:$4 sm:$0xff]  }
  0x4b   :  { %2095 = vmatpush1.bf16.msra.mxu0 %v3369_v22  ;;  %2300 = vmatpush1.bf16.msra.mxu1 %v3372_v23  ;;  %v3456_v22 = vld [vmem:[%s4961_s1 + $0x408] ss:$16 sps:$4 sm:$0xff]   ;;  %v3461_v23 = vld [vmem:[%s4961_s1 + $0x424] ss:$16 sps:$4 sm:$0xff]  }
  0x4c   :  { %2096 = vmatprep.subr.bf16.mxu0 %v3377_v24  ;;  %2301 = vmatprep.subr.bf16.mxu1 %v3380_v25  ;;  %v3464_v24 = vld [vmem:[%s4961_s1 + $0x42c] ss:$16 sps:$4 sm:$0xff]   ;;  %v4260_v25 = vrot.slane %v384_v19, %v3965_v49  ;;  %v3545_v19 = vld [vmem:[%s4961_s1 + $0x5e4] ss:$16 sps:$4 sm:$0xff]  }
  0x4f   :  { %2097 = vmatpush1.bf16.msra.mxu0 %v3375_v26  ;;  %2302 = vmatpush1.bf16.msra.mxu1 %v3378_v27  ;;  %v3462_v26 = vld [vmem:[%s4961_s1 + $0x428] ss:$16 sps:$4 sm:$0xff]   ;;  %v3467_v27 = vld [vmem:[%s4961_s1 + $0x444] ss:$16 sps:$4 sm:$0xff]  }
  0x50   :  { %2098 = vmatprep.subr.bf16.mxu0 %v3383_v28  ;;  %2303 = vmatprep.subr.bf16.mxu1 %v3386_v29  ;;  %v3470_v28 = vld [vmem:[%s4961_s1 + $0x44c] ss:$16 sps:$4 sm:$0xff]   ;;  %v3465_v29 = vld [vmem:[%s4961_s1 + $0x440] ss:$16 sps:$4 sm:$0xff]  }
  0x53   :  { %2099 = vmatpush1.bf16.msra.mxu0 %v3381_v30  ;;  %2304 = vmatpush1.bf16.msra.mxu1 %v3384_v31  ;;  %v3468_v30 = vld [vmem:[%s4961_s1 + $0x448] ss:$16 sps:$4 sm:$0xff]   ;;  %v3473_v31 = vld [vmem:[%s4961_s1 + $0x464] ss:$16 sps:$4 sm:$0xff]  }
  0x54   :  { %2100 = vmatprep.subr.bf16.mxu0 %v3389_v32  ;;  %2305 = vmatprep.subr.bf16.mxu1 %v3392_v33  ;;  %v3476_v32 = vld [vmem:[%s4961_s1 + $0x46c] ss:$16 sps:$4 sm:$0xff]   ;;  %v3471_v33 = vld [vmem:[%s4961_s1 + $0x460] ss:$16 sps:$4 sm:$0xff]  }
  0x57   :  { %2101 = vmatpush1.bf16.msra.mxu0 %v3387_v34  ;;  %2306 = vmatpush1.bf16.msra.mxu1 %v3390_v35  ;;  %v3474_v34 = vld [vmem:[%s4961_s1 + $0x468] ss:$16 sps:$4 sm:$0xff]   ;;  %v3479_v35 = vld [vmem:[%s4961_s1 + $0x484] ss:$16 sps:$4 sm:$0xff]  }
  0x58   :  { %2102 = vmatprep.subr.bf16.mxu0 %v3395_v36  ;;  %2307 = vmatprep.subr.bf16.mxu1 %v3398_v37  ;;  %v3482_v36 = vld [vmem:[%s4961_s1 + $0x48c] ss:$16 sps:$4 sm:$0xff]   ;;  %v3477_v37 = vld [vmem:[%s4961_s1 + $0x480] ss:$16 sps:$4 sm:$0xff]  }
  0x5b   :  { %2103 = vmatpush1.bf16.msra.mxu0 %v3393_v38  ;;  %2308 = vmatpush1.bf16.msra.mxu1 %v3396_v39  ;;  %v3480_v38 = vld [vmem:[%s4961_s1 + $0x488] ss:$16 sps:$4 sm:$0xff]   ;;  %v3485_v39 = vld [vmem:[%s4961_s1 + $0x4a4] ss:$16 sps:$4 sm:$0xff]  }
  0x5c   :  { %2104 = vmatprep.subr.bf16.mxu0 %v3401_v40  ;;  %2309 = vmatprep.subr.bf16.mxu1 %v3404_v41  ;;  %v3488_v40 = vld [vmem:[%s4961_s1 + $0x4ac] ss:$16 sps:$4 sm:$0xff]   ;;  %v3483_v41 = vld [vmem:[%s4961_s1 + $0x4a0] ss:$16 sps:$4 sm:$0xff]  }
  0x5f   :  { %2105 = vmatpush1.bf16.msra.mxu0 %v3399_v43  ;;  %2310 = vmatpush1.bf16.msra.mxu1 %v3402_v44  ;;  %v3486_v43 = vld [vmem:[%s4961_s1 + $0x4a8] ss:$16 sps:$4 sm:$0xff]   ;;  %v3491_v44 = vld [vmem:[%s4961_s1 + $0x4c4] ss:$16 sps:$4 sm:$0xff]  }
  0x60   :  { %2106 = vmatprep.subr.bf16.mxu0 %v3407_v45  ;;  %2311 = vmatprep.subr.bf16.mxu1 %v3410_v46  ;;  %v3494_v45 = vld [vmem:[%s4961_s1 + $0x4cc] ss:$16 sps:$4 sm:$0xff]   ;;  %v3489_v46 = vld [vmem:[%s4961_s1 + $0x4c0] ss:$16 sps:$4 sm:$0xff]  }
  0x63   :  { %2107 = vmatpush1.bf16.msra.mxu0 %v3405_v47  ;;  %2312 = vmatpush1.bf16.msra.mxu1 %v3408_v48  ;;  %v3492_v47 = vld [vmem:[%s4961_s1 + $0x4c8] ss:$16 sps:$4 sm:$0xff]   ;;  %v3497_v48 = vld [vmem:[%s4961_s1 + $0x4e4] ss:$16 sps:$4 sm:$0xff]  }
  0x64   :  { %2108 = vmatprep.subr.bf16.mxu0 %v3413_v50  ;;  %2313 = vmatprep.subr.bf16.mxu1 %v3416_v51  ;;  %v3500_v50 = vld [vmem:[%s4961_s1 + $0x4ec] ss:$16 sps:$4 sm:$0xff]   ;;  %v3495_v51 = vld [vmem:[%s4961_s1 + $0x4e0] ss:$16 sps:$4 sm:$0xff]  }
  0x67   :  { %2109 = vmatpush1.bf16.msra.mxu0 %v3411_v53  ;;  %2314 = vmatpush1.bf16.msra.mxu1 %v3414_v54  ;;  %v3498_v53 = vld [vmem:[%s4961_s1 + $0x4e8] ss:$16 sps:$4 sm:$0xff]   ;;  %v3503_v54 = vld [vmem:[%s4961_s1 + $0x504] ss:$16 sps:$4 sm:$0xff]  }
  0x68   :  { %2110 = vmatprep.subr.bf16.mxu0 %v3419_v55  ;;  %2315 = vmatprep.subr.bf16.mxu1 %v3422_v56  ;;  %v3506_v55 = vld [vmem:[%s4961_s1 + $0x50c] ss:$16 sps:$4 sm:$0xff]   ;;  %v3501_v56 = vld [vmem:[%s4961_s1 + $0x500] ss:$16 sps:$4 sm:$0xff]  }
  0x6b   :  { %2111 = vmatpush1.bf16.msra.mxu0 %v3417_v57  ;;  %2316 = vmatpush1.bf16.msra.mxu1 %v3420_v58  ;;  %v3504_v57 = vld [vmem:[%s4961_s1 + $0x508] ss:$16 sps:$4 sm:$0xff]   ;;  %v3509_v58 = vld [vmem:[%s4961_s1 + $0x524] ss:$16 sps:$4 sm:$0xff]  }
  0x6c   :  { %2112 = vmatprep.subr.bf16.mxu0 %v3425_v59  ;;  %2317 = vmatprep.subr.bf16.mxu1 %v3428_v60  ;;  %v3512_v59 = vld [vmem:[%s4961_s1 + $0x52c] ss:$16 sps:$4 sm:$0xff]   ;;  %v3507_v60 = vld [vmem:[%s4961_s1 + $0x520] ss:$16 sps:$4 sm:$0xff]  }
  0x6f   :  { %2113 = vmatpush1.bf16.msra.mxu0 %v3423_v61  ;;  %2318 = vmatpush1.bf16.msra.mxu1 %v3426_v62  ;;  %v3510_v61 = vld [vmem:[%s4961_s1 + $0x528] ss:$16 sps:$4 sm:$0xff]   ;;  %v3515_v62 = vld [vmem:[%s4961_s1 + $0x544] ss:$16 sps:$4 sm:$0xff]  }
  0x70   :  { %2114 = vmatprep.subr.bf16.mxu0 %v3431_v63  ;;  %2319 = vmatprep.subr.bf16.mxu1 %v3434_v0  ;;  %v3518_v63 = vld [vmem:[%s4961_s1 + $0x54c] ss:$16 sps:$4 sm:$0xff]   ;;  %v3513_v0 = vld [vmem:[%s4961_s1 + $0x540] ss:$16 sps:$4 sm:$0xff]  }
  0x73   :  { %2115 = vmatpush1.bf16.msra.mxu0 %v3429_v1  ;;  %2320 = vmatpush1.bf16.msra.mxu1 %v3432_v2  ;;  %v3516_v1 = vld [vmem:[%s4961_s1 + $0x548] ss:$16 sps:$4 sm:$0xff]   ;;  %v3521_v2 = vld [vmem:[%s4961_s1 + $0x564] ss:$16 sps:$4 sm:$0xff]  }
  0x74   :  { %2116 = vmatprep.subr.bf16.mxu0 %v3437_v3  ;;  %2321 = vmatprep.subr.bf16.mxu1 %v3440_v4  ;;  %v3524_v3 = vld [vmem:[%s4961_s1 + $0x56c] ss:$16 sps:$4 sm:$0xff]   ;;  %v3519_v4 = vld [vmem:[%s4961_s1 + $0x560] ss:$16 sps:$4 sm:$0xff]  }
  0x77   :  { %2117 = vmatpush1.bf16.msra.mxu0 %v3435_v5  ;;  %2322 = vmatpush1.bf16.msra.mxu1 %v3438_v6  ;;  %v3522_v5 = vld [vmem:[%s4961_s1 + $0x568] ss:$16 sps:$4 sm:$0xff]   ;;  %v3527_v6 = vld [vmem:[%s4961_s1 + $0x584] ss:$16 sps:$4 sm:$0xff]  }
  0x78   :  { %2118 = vmatprep.subr.bf16.mxu0 %v3443_v7  ;;  %2323 = vmatprep.subr.bf16.mxu1 %v3446_v8  ;;  %v3530_v7 = vld [vmem:[%s4961_s1 + $0x58c] ss:$16 sps:$4 sm:$0xff]   ;;  %v3525_v8 = vld [vmem:[%s4961_s1 + $0x580] ss:$16 sps:$4 sm:$0xff]  }
  0x7b   :  { %2119 = vmatpush1.bf16.msra.mxu0 %v3441_v10  ;;  %2324 = vmatpush1.bf16.msra.mxu1 %v3444_v11  ;;  %v3533_v10 = vld [vmem:[%s4961_s1 + $0x5a4] ss:$16 sps:$4 sm:$0xff]   ;;  %v3536_v11 = vld [vmem:[%s4961_s1 + $0x5ac] ss:$16 sps:$4 sm:$0xff]  }
  0x7c   :  { %2120 = vmatprep.subr.bf16.mxu0 %v3449_v12  ;;  %2325 = vmatprep.subr.bf16.mxu1 %v3452_v52  ;;  %v3531_v12 = vld [vmem:[%s4961_s1 + $0x5a0] ss:$16 sps:$4 sm:$0xff]   ;;  %v3534_v52 = vld [vmem:[%s4961_s1 + $0x5a8] ss:$16 sps:$4 sm:$0xff]  }
  0x7f   :  { %2121 = vmatpush1.bf16.msra.mxu0 %v3447_v15  ;;  %2326 = vmatpush1.bf16.msra.mxu1 %v3450_v16  ;;  %v3539_v15 = vld [vmem:[%s4961_s1 + $0x5c4] ss:$16 sps:$4 sm:$0xff]   ;;  %v3542_v16 = vld [vmem:[%s4961_s1 + $0x5cc] ss:$16 sps:$4 sm:$0xff]  }
  0x80   :  { %2131 = vmatprep.subr.bf16.mxu0 %v3455_v17  ;;  %2336 = vmatprep.subr.bf16.mxu1 %v3458_v18  ;;  %v3537_v17 = vld [vmem:[%s4961_s1 + $0x5c0] ss:$16 sps:$4 sm:$0xff]   ;;  %v3540_v18 = vld [vmem:[%s4961_s1 + $0x5c8] ss:$16 sps:$4 sm:$0xff]  }
  0x82   :  { %2123 = vmatmul.mubr.bf16.vlgmr.msra.gmra.mrb[0].mxu0 %v413_v21  ;;  %2328 = vmatmul.mubr.bf16.vlgmr.msra.gmra.mrb[0].mxu1 %v413_v21  ;;  %v3543_v21 = vld [vmem:[%s4961_s1 + $0x5e0] ss:$16 sps:$4 sm:$0xff]  }
  0x83   :  { %2132 = vmatpush1.bf16.msra.mxu0 %v3453_v20  ;;  %2337 = vmatpush1.bf16.msra.mxu1 %v3456_v22  ;;  %v3548_v20 = vld [vmem:[%s4961_s1 + $0x5ec] ss:$16 sps:$4 sm:$0xff]   ;;  %v3546_v22 = vld [vmem:[%s4961_s1 + $0x5e8] ss:$16 sps:$4 sm:$0xff]  }
  0x84   :  { %2133 = vmatprep.subr.bf16.mxu0 %v3461_v23  ;;  %2338 = vmatprep.subr.bf16.mxu1 %v3464_v24  ;;  %v3552_v23 = vld [vmem:[%s4961_s1 + $0x604] ss:$16 sps:$4 sm:$0xff]   ;;  %v3555_v24 = vld [vmem:[%s4961_s1 + $0x60c] ss:$16 sps:$4 sm:$0xff]  }
  0x85   :  { %2163 = vmatprep.mubr.bf16.mxu0 %v4260_v25  ;;  %2368 = vmatprep.mubr.bf16.mxu1 %v4260_v25 }
  0x87   :  { %2134 = vmatpush1.bf16.msra.mxu0 %v3459_v13  ;;  %2339 = vmatpush1.bf16.msra.mxu1 %v3462_v26  ;;  %v3550_v13 = vld [vmem:[%s4961_s1 + $0x600] ss:$16 sps:$4 sm:$0xff]   ;;  %v4449_v26 = vrot.slane %v4229_v14, %v3965_v49  ;;  %v416_v14 = vcombine.high %v4260_v25, %v4260_v25  ;;  %v3564_v25 = vld [vmem:[%s4961_s1 + $0x644] ss:$16 sps:$4 sm:$0xff]  }
  0x88   :  { %2135 = vmatprep.subr.bf16.mxu0 %v3467_v27  ;;  %2340 = vmatprep.subr.bf16.mxu1 %v3470_v28  ;;  %v3553_v27 = vld [vmem:[%s4961_s1 + $0x608] ss:$16 sps:$4 sm:$0xff]   ;;  %v3558_v28 = vld [vmem:[%s4961_s1 + $0x624] ss:$16 sps:$4 sm:$0xff]  }
  0x8b   :  { %2136 = vmatpush1.bf16.msra.mxu0 %v3465_v29  ;;  %2341 = vmatpush1.bf16.msra.mxu1 %v3468_v30  ;;  %v3561_v29 = vld [vmem:[%s4961_s1 + $0x62c] ss:$16 sps:$4 sm:$0xff]   ;;  %v3556_v30 = vld [vmem:[%s4961_s1 + $0x620] ss:$16 sps:$4 sm:$0xff]  }
  0x8c   :  { %2137 = vmatprep.subr.bf16.mxu0 %v3473_v31  ;;  %2342 = vmatprep.subr.bf16.mxu1 %v3476_v32  ;;  %v3559_v31 = vld [vmem:[%s4961_s1 + $0x628] ss:$16 sps:$4 sm:$0xff]   ;;  %v3567_v32 = vld [vmem:[%s4961_s1 + $0x64c] ss:$16 sps:$4 sm:$0xff]  }
  0x8f   :  { %2138 = vmatpush1.bf16.msra.mxu0 %v3471_v33  ;;  %2343 = vmatpush1.bf16.msra.mxu1 %v3474_v34  ;;  %v3562_v33 = vld [vmem:[%s4961_s1 + $0x640] ss:$16 sps:$4 sm:$0xff]   ;;  %v3565_v34 = vld [vmem:[%s4961_s1 + $0x648] ss:$16 sps:$4 sm:$0xff]  }
  0x90   :  { %2139 = vmatprep.subr.bf16.mxu0 %v3479_v35  ;;  %2344 = vmatprep.subr.bf16.mxu1 %v3482_v36  ;;  %v3570_v35 = vld [vmem:[%s4961_s1 + $0x664] ss:$16 sps:$4 sm:$0xff]   ;;  %v3573_v36 = vld [vmem:[%s4961_s1 + $0x66c] ss:$16 sps:$4 sm:$0xff]  }
  0x93   :  { %2140 = vmatpush1.bf16.msra.mxu0 %v3477_v37  ;;  %2345 = vmatpush1.bf16.msra.mxu1 %v3480_v38  ;;  %v3568_v37 = vld [vmem:[%s4961_s1 + $0x660] ss:$16 sps:$4 sm:$0xff]   ;;  %v3571_v38 = vld [vmem:[%s4961_s1 + $0x668] ss:$16 sps:$4 sm:$0xff]  }
  0x94   :  { %2141 = vmatprep.subr.bf16.mxu0 %v3485_v39  ;;  %2346 = vmatprep.subr.bf16.mxu1 %v3488_v40  ;;  %v3576_v39 = vld [vmem:[%s4961_s1 + $0x684] ss:$16 sps:$4 sm:$0xff]   ;;  %v3579_v40 = vld [vmem:[%s4961_s1 + $0x68c] ss:$16 sps:$4 sm:$0xff]  }
  0x97   :  { %2142 = vmatpush1.bf16.msra.mxu0 %v3483_v41  ;;  %2347 = vmatpush1.bf16.msra.mxu1 %v3486_v43  ;;  %v3574_v41 = vld [vmem:[%s4961_s1 + $0x680] ss:$16 sps:$4 sm:$0xff]   ;;  %v3577_v43 = vld [vmem:[%s4961_s1 + $0x688] ss:$16 sps:$4 sm:$0xff]  }
  0x98   :  { %2143 = vmatprep.subr.bf16.mxu0 %v3491_v44  ;;  %2348 = vmatprep.subr.bf16.mxu1 %v3494_v45  ;;  %v3582_v44 = vld [vmem:[%s4961_s1 + $0x6a4] ss:$16 sps:$4 sm:$0xff]   ;;  %v3585_v45 = vld [vmem:[%s4961_s1 + $0x6ac] ss:$16 sps:$4 sm:$0xff]  }
  0x9b   :  { %2144 = vmatpush1.bf16.msra.mxu0 %v3489_v46  ;;  %2349 = vmatpush1.bf16.msra.mxu1 %v3492_v47  ;;  %v3580_v46 = vld [vmem:[%s4961_s1 + $0x6a0] ss:$16 sps:$4 sm:$0xff]   ;;  %v3583_v47 = vld [vmem:[%s4961_s1 + $0x6a8] ss:$16 sps:$4 sm:$0xff]  }
  0x9c   :  { %2145 = vmatprep.subr.bf16.mxu0 %v3497_v48  ;;  %2350 = vmatprep.subr.bf16.mxu1 %v3500_v50  ;;  %v3588_v48 = vld [vmem:[%s4961_s1 + $0x6c4] ss:$16 sps:$4 sm:$0xff]   ;;  %v3591_v50 = vld [vmem:[%s4961_s1 + $0x6cc] ss:$16 sps:$4 sm:$0xff]  }
  0x9f   :  { %2146 = vmatpush1.bf16.msra.mxu0 %v3495_v51  ;;  %2351 = vmatpush1.bf16.msra.mxu1 %v3498_v53  ;;  %v3586_v51 = vld [vmem:[%s4961_s1 + $0x6c0] ss:$16 sps:$4 sm:$0xff]   ;;  %v3589_v53 = vld [vmem:[%s4961_s1 + $0x6c8] ss:$16 sps:$4 sm:$0xff]  }
  0xa0   :  { %2147 = vmatprep.subr.bf16.mxu0 %v3503_v54  ;;  %2352 = vmatprep.subr.bf16.mxu1 %v3506_v55  ;;  %v3594_v54 = vld [vmem:[%s4961_s1 + $0x6e4] ss:$16 sps:$4 sm:$0xff]   ;;  %v3597_v55 = vld [vmem:[%s4961_s1 + $0x6ec] ss:$16 sps:$4 sm:$0xff]  }
  0xa3   :  { %2148 = vmatpush1.bf16.msra.mxu0 %v3501_v56  ;;  %2353 = vmatpush1.bf16.msra.mxu1 %v3504_v57  ;;  %v3592_v56 = vld [vmem:[%s4961_s1 + $0x6e0] ss:$16 sps:$4 sm:$0xff]   ;;  %v3595_v57 = vld [vmem:[%s4961_s1 + $0x6e8] ss:$16 sps:$4 sm:$0xff]  }
  0xa4   :  { %2149 = vmatprep.subr.bf16.mxu0 %v3509_v58  ;;  %2354 = vmatprep.subr.bf16.mxu1 %v3512_v59  ;;  %v3600_v58 = vld [vmem:[%s4961_s1 + $0x704] ss:$16 sps:$4 sm:$0xff]   ;;  %v3603_v59 = vld [vmem:[%s4961_s1 + $0x70c] ss:$16 sps:$4 sm:$0xff]  }
  0xa7   :  { %2150 = vmatpush1.bf16.msra.mxu0 %v3507_v60  ;;  %2355 = vmatpush1.bf16.msra.mxu1 %v3510_v61  ;;  %v3598_v60 = vld [vmem:[%s4961_s1 + $0x700] ss:$16 sps:$4 sm:$0xff]   ;;  %v3601_v61 = vld [vmem:[%s4961_s1 + $0x708] ss:$16 sps:$4 sm:$0xff]  }
  0xa8   :  { %2151 = vmatprep.subr.bf16.mxu0 %v3515_v62  ;;  %2356 = vmatprep.subr.bf16.mxu1 %v3518_v63  ;;  %v3606_v62 = vld [vmem:[%s4961_s1 + $0x724] ss:$16 sps:$4 sm:$0xff]   ;;  %v3609_v63 = vld [vmem:[%s4961_s1 + $0x72c] ss:$16 sps:$4 sm:$0xff]  }
  0xab   :  { %2152 = vmatpush1.bf16.msra.mxu0 %v3513_v0  ;;  %2357 = vmatpush1.bf16.msra.mxu1 %v3516_v1  ;;  %v3604_v0 = vld [vmem:[%s4961_s1 + $0x720] ss:$16 sps:$4 sm:$0xff]   ;;  %v3607_v1 = vld [vmem:[%s4961_s1 + $0x728] ss:$16 sps:$4 sm:$0xff]  }
  0xac   :  { %2153 = vmatprep.subr.bf16.mxu0 %v3521_v2  ;;  %2358 = vmatprep.subr.bf16.mxu1 %v3524_v3  ;;  %v3612_v2 = vld [vmem:[%s4961_s1 + $0x744] ss:$16 sps:$4 sm:$0xff]   ;;  %v3615_v3 = vld [vmem:[%s4961_s1 + $0x74c] ss:$16 sps:$4 sm:$0xff]  }
  0xaf   :  { %2154 = vmatpush1.bf16.msra.mxu0 %v3519_v4  ;;  %2359 = vmatpush1.bf16.msra.mxu1 %v3522_v5  ;;  %v3610_v4 = vld [vmem:[%s4961_s1 + $0x740] ss:$16 sps:$4 sm:$0xff]   ;;  %v3613_v5 = vld [vmem:[%s4961_s1 + $0x748] ss:$16 sps:$4 sm:$0xff]  }
  0xb0   :  { %2155 = vmatprep.subr.bf16.mxu0 %v3527_v6  ;;  %2360 = vmatprep.subr.bf16.mxu1 %v3530_v7  ;;  %v3618_v6 = vld [vmem:[%s4961_s1 + $0x764] ss:$16 sps:$4 sm:$0xff]   ;;  %v3621_v7 = vld [vmem:[%s4961_s1 + $0x76c] ss:$16 sps:$4 sm:$0xff]  }
  0xb3   :  { %2156 = vmatpush1.bf16.msra.mxu0 %v3525_v8  ;;  %2361 = vmatpush1.bf16.msra.mxu1 %v3528_v9  ;;  %v3616_v8 = vld [vmem:[%s4961_s1 + $0x760] ss:$16 sps:$4 sm:$0xff]   ;;  %v3619_v9 = vld [vmem:[%s4961_s1 + $0x768] ss:$16 sps:$4 sm:$0xff]  }
  0xb4   :  { %2157 = vmatprep.subr.bf16.mxu0 %v3533_v10  ;;  %2362 = vmatprep.subr.bf16.mxu1 %v3536_v11  ;;  %v3624_v10 = vld [vmem:[%s4961_s1 + $0x784] ss:$16 sps:$4 sm:$0xff]   ;;  %v3627_v11 = vld [vmem:[%s4961_s1 + $0x78c] ss:$16 sps:$4 sm:$0xff]  }
  0xb7   :  { %2158 = vmatpush1.bf16.msra.mxu0 %v3531_v12  ;;  %2363 = vmatpush1.bf16.msra.mxu1 %v3534_v52  ;;  %v3622_v12 = vld [vmem:[%s4961_s1 + $0x780] ss:$16 sps:$4 sm:$0xff]   ;;  %v3625_v52 = vld [vmem:[%s4961_s1 + $0x788] ss:$16 sps:$4 sm:$0xff]  }
  0xb8   :  { %2159 = vmatprep.subr.bf16.mxu0 %v3539_v15  ;;  %2364 = vmatprep.subr.bf16.mxu1 %v3542_v16  ;;  %v3630_v15 = vld [vmem:[%s4961_s1 + $0x7a4] ss:$16 sps:$4 sm:$0xff]   ;;  %v3633_v16 = vld [vmem:[%s4961_s1 + $0x7ac] ss:$16 sps:$4 sm:$0xff]  }
  0xbb   :  { %2160 = vmatpush1.bf16.msra.mxu0 %v3537_v17  ;;  %2365 = vmatpush1.bf16.msra.mxu1 %v3540_v18  ;;  %v3628_v17 = vld [vmem:[%s4961_s1 + $0x7a0] ss:$16 sps:$4 sm:$0xff]   ;;  %v3631_v18 = vld [vmem:[%s4961_s1 + $0x7a8] ss:$16 sps:$4 sm:$0xff]  }
  0xbc   :  { %2161 = vmatprep.subr.bf16.mxu0 %v3545_v19  ;;  %2366 = vmatprep.subr.bf16.mxu1 %v3548_v20 }
  0xbf   :  { %2162 = vmatpush1.bf16.msra.mxu0 %v3543_v21  ;;  %2367 = vmatpush1.bf16.msra.mxu1 %v3546_v22 }
  0xc0   :  { %2172 = vmatprep.subr.bf16.mxu0 %v3552_v23  ;;  %2377 = vmatprep.subr.bf16.mxu1 %v3555_v24 }
  0xc2   :  { %2164 = vmatmul.mubr.bf16.vlgmr.msra.gmra.mrb[0].mxu0 %v4449_v26  ;;  %2369 = vmatmul.mubr.bf16.vlgmr.msra.gmra.mrb[0].mxu1 %v4449_v26 }
  0xc3   :  { %2173 = vmatpush1.bf16.msra.mxu0 %v3550_v13  ;;  %2378 = vmatpush1.bf16.msra.mxu1 %v3553_v27 }
  0xc4   :  { %2174 = vmatprep.subr.bf16.mxu0 %v3558_v28  ;;  %2379 = vmatprep.subr.bf16.mxu1 %v3561_v29 }
  0xc5   :  { %2204 = vmatprep.mubr.bf16.mxu0 %v416_v14  ;;  %2409 = vmatprep.mubr.bf16.mxu1 %v416_v14 }
  0xc7   :  { %2175 = vmatpush1.bf16.msra.mxu0 %v3556_v30  ;;  %2380 = vmatpush1.bf16.msra.mxu1 %v3559_v31 }
  0xc8   :  { %2176 = vmatprep.subr.bf16.mxu0 %v3564_v25  ;;  %2381 = vmatprep.subr.bf16.mxu1 %v3567_v32 }
  0xcb   :  { %2177 = vmatpush1.bf16.msra.mxu0 %v3562_v33  ;;  %2382 = vmatpush1.bf16.msra.mxu1 %v3565_v34 }
  0xcc   :  { %2178 = vmatprep.subr.bf16.mxu0 %v3570_v35  ;;  %2383 = vmatprep.subr.bf16.mxu1 %v3573_v36 }
  0xcf   :  { %2179 = vmatpush1.bf16.msra.mxu0 %v3568_v37  ;;  %2384 = vmatpush1.bf16.msra.mxu1 %v3571_v38 }
  0xd0   :  { %2180 = vmatprep.subr.bf16.mxu0 %v3576_v39  ;;  %2385 = vmatprep.subr.bf16.mxu1 %v3579_v40 }
  0xd3   :  { %2181 = vmatpush1.bf16.msra.mxu0 %v3574_v41  ;;  %2386 = vmatpush1.bf16.msra.mxu1 %v3577_v43 }
  0xd4   :  { %2182 = vmatprep.subr.bf16.mxu0 %v3582_v44  ;;  %2387 = vmatprep.subr.bf16.mxu1 %v3585_v45 }
  0xd7   :  { %2183 = vmatpush1.bf16.msra.mxu0 %v3580_v46  ;;  %2388 = vmatpush1.bf16.msra.mxu1 %v3583_v47 }
  0xd8   :  { %2184 = vmatprep.subr.bf16.mxu0 %v3588_v48  ;;  %2389 = vmatprep.subr.bf16.mxu1 %v3591_v50 }
  0xdb   :  { %2185 = vmatpush1.bf16.msra.mxu0 %v3586_v51  ;;  %2390 = vmatpush1.bf16.msra.mxu1 %v3589_v53 }
  0xdc   :  { %2186 = vmatprep.subr.bf16.mxu0 %v3594_v54  ;;  %2391 = vmatprep.subr.bf16.mxu1 %v3597_v55 }
  0xdf   :  { %2187 = vmatpush1.bf16.msra.mxu0 %v3592_v56  ;;  %2392 = vmatpush1.bf16.msra.mxu1 %v3595_v57 }
  0xe0   :  { %2188 = vmatprep.subr.bf16.mxu0 %v3600_v58  ;;  %2393 = vmatprep.subr.bf16.mxu1 %v3603_v59 }
  0xe3   :  { %2189 = vmatpush1.bf16.msra.mxu0 %v3598_v60  ;;  %2394 = vmatpush1.bf16.msra.mxu1 %v3601_v61 }
  0xe4   :  { %2190 = vmatprep.subr.bf16.mxu0 %v3606_v62  ;;  %2395 = vmatprep.subr.bf16.mxu1 %v3609_v63 }
  0xe7   :  { %2191 = vmatpush1.bf16.msra.mxu0 %v3604_v0  ;;  %2396 = vmatpush1.bf16.msra.mxu1 %v3607_v1 }
  0xe8   :  { %2192 = vmatprep.subr.bf16.mxu0 %v3612_v2  ;;  %2397 = vmatprep.subr.bf16.mxu1 %v3615_v3 }
  0xeb   :  { %2193 = vmatpush1.bf16.msra.mxu0 %v3610_v4  ;;  %2398 = vmatpush1.bf16.msra.mxu1 %v3613_v5 }
  0xec   :  { %2194 = vmatprep.subr.bf16.mxu0 %v3618_v6  ;;  %2399 = vmatprep.subr.bf16.mxu1 %v3621_v7 }
  0xef   :  { %2195 = vmatpush1.bf16.msra.mxu0 %v3616_v8  ;;  %2400 = vmatpush1.bf16.msra.mxu1 %v3619_v9 }
  0xf0   :  { %2196 = vmatprep.subr.bf16.mxu0 %v3624_v10  ;;  %2401 = vmatprep.subr.bf16.mxu1 %v3627_v11 }
  0xf3   :  { %2197 = vmatpush1.bf16.msra.mxu0 %v3622_v12  ;;  %2402 = vmatpush1.bf16.msra.mxu1 %v3625_v52 }
  0xf4   :  { %10 = vsyncpa [#allocation3], 0  ;;  %2198 = vmatprep.subr.bf16.mxu0 %v3630_v15  ;;  %2403 = vmatprep.subr.bf16.mxu1 %v3633_v16  ;;  %v3636_v19 = vld [vmem:[%s4961_s1 + $0x7c4] ss:$16 sps:$4 sm:$0xff]   ;;  %v3639_v20 = vld [vmem:[%s4961_s1 + $0x7cc] ss:$16 sps:$4 sm:$0xff]   ;;  %v414_v31 = vcombine.high %v4449_v26, %v4449_v26 }
  0xf5   :  { %v3634_v21 = vld [vmem:[%s4961_s1 + $0x7c0] ss:$16 sps:$4 sm:$0xff]   ;;  %v3637_v22 = vld [vmem:[%s4961_s1 + $0x7c8] ss:$16 sps:$4 sm:$0xff]   ;;  %v3642_v23 = vld [vmem:[%s4961_s1 + $0x7e4] ss:$16 sps:$4 sm:$0xff]  }
  0xf6   :  { %v3645_v24 = vld [vmem:[%s4961_s1 + $0x7ec] ss:$16 sps:$4 sm:$0xff]   ;;  %v4635_v13 = vld.sshfl [vmem:[%s4960_s0 + $0x8] sm:$0x11 pattern:$0x75316420] }
  0xf7   :  { %2199 = vmatpush1.bf16.msra.mxu0 %v3628_v17  ;;  %2404 = vmatpush1.bf16.msra.mxu1 %v3631_v18  ;;  %v3640_v27 = vld [vmem:[%s4961_s1 + $0x7e0] ss:$16 sps:$4 sm:$0xff]   ;;  %v3643_v28 = vld [vmem:[%s4961_s1 + $0x7e8] ss:$16 sps:$4 sm:$0xff]   ;;  %v3648_v29 = vld [vmem:[%s4961_s1 + $0x804] ss:$16 sps:$4 sm:$0xff]   ;;  %v424_v30 = vcombine.high %v4635_v13, %v4635_v13 }
  0xf8   :  { %2200 = vmatprep.subr.bf16.mxu0 %v3636_v19  ;;  %2405 = vmatprep.subr.bf16.mxu1 %v3639_v20  ;;  %v3651_v14 = vld [vmem:[%s4961_s1 + $0x80c] ss:$16 sps:$4 sm:$0xff]   ;;  %v3646_v25 = vld [vmem:[%s4961_s1 + $0x800] ss:$16 sps:$4 sm:$0xff]   ;;  %v3649_v32 = vld [vmem:[%s4961_s1 + $0x808] ss:$16 sps:$4 sm:$0xff]  }
  0xf9   :  { %v3654_v33 = vld [vmem:[%s4961_s1 + $0x824] ss:$16 sps:$4 sm:$0xff]   ;;  %v3657_v26 = vld [vmem:[%s4961_s1 + $0x82c] ss:$16 sps:$4 sm:$0xff]   ;;  %v438_v34 = vrot.slane %v424_v30, %v3965_v49  ;;  %v3652_v35 = vld [vmem:[%s4961_s1 + $0x820] ss:$16 sps:$4 sm:$0xff]  }
  0xfa   :  { %v3655_v36 = vld [vmem:[%s4961_s1 + $0x828] ss:$16 sps:$4 sm:$0xff]   ;;  %v3660_v37 = vld [vmem:[%s4961_s1 + $0x844] ss:$16 sps:$4 sm:$0xff]   ;;  %v3663_v38 = vld [vmem:[%s4961_s1 + $0x84c] ss:$16 sps:$4 sm:$0xff]  }
  0xfb   :  { %2201 = vmatpush1.bf16.msra.mxu0 %v3634_v21  ;;  %2406 = vmatpush1.bf16.msra.mxu1 %v3637_v22  ;;  %v3658_v39 = vld [vmem:[%s4961_s1 + $0x840] ss:$16 sps:$4 sm:$0xff]   ;;  %v3661_v40 = vld [vmem:[%s4961_s1 + $0x848] ss:$16 sps:$4 sm:$0xff]   ;;  %v3666_v41 = vld [vmem:[%s4961_s1 + $0x864] ss:$16 sps:$4 sm:$0xff]  }
  0xfc   :  { %2202 = vmatprep.subr.bf16.mxu0 %v3642_v23  ;;  %2407 = vmatprep.subr.bf16.mxu1 %v3645_v24  ;;  %v3669_v43 = vld [vmem:[%s4961_s1 + $0x86c] ss:$16 sps:$4 sm:$0xff]   ;;  %v3664_v44 = vld [vmem:[%s4961_s1 + $0x860] ss:$16 sps:$4 sm:$0xff]   ;;  %v3667_v45 = vld [vmem:[%s4961_s1 + $0x868] ss:$16 sps:$4 sm:$0xff]  }
  0xfd   :  { %v3672_v46 = vld [vmem:[%s4961_s1 + $0x884] ss:$16 sps:$4 sm:$0xff]   ;;  %v3675_v47 = vld [vmem:[%s4961_s1 + $0x88c] ss:$16 sps:$4 sm:$0xff]   ;;  %v3670_v48 = vld [vmem:[%s4961_s1 + $0x880] ss:$16 sps:$4 sm:$0xff]  }
  0xfe   :  { %v3673_v50 = vld [vmem:[%s4961_s1 + $0x888] ss:$16 sps:$4 sm:$0xff]   ;;  %v3678_v51 = vld [vmem:[%s4961_s1 + $0x8a4] ss:$16 sps:$4 sm:$0xff]   ;;  %v3681_v53 = vld [vmem:[%s4961_s1 + $0x8ac] ss:$16 sps:$4 sm:$0xff]  }
  0xff   :  { %2203 = vmatpush1.bf16.msra.mxu0 %v3640_v27  ;;  %2408 = vmatpush1.bf16.msra.mxu1 %v3643_v28  ;;  %v3676_v54 = vld [vmem:[%s4961_s1 + $0x8a0] ss:$16 sps:$4 sm:$0xff]   ;;  %v3679_v55 = vld [vmem:[%s4961_s1 + $0x8a8] ss:$16 sps:$4 sm:$0xff]   ;;  %v3684_v56 = vld [vmem:[%s4961_s1 + $0x8c4] ss:$16 sps:$4 sm:$0xff]  }
 0x100   :  { %2213 = vmatprep.subr.bf16.mxu0 %v3648_v29  ;;  %2418 = vmatprep.subr.bf16.mxu1 %v3651_v14  ;;  %v3687_v57 = vld [vmem:[%s4961_s1 + $0x8cc] ss:$16 sps:$4 sm:$0xff]   ;;  %v3682_v58 = vld [vmem:[%s4961_s1 + $0x8c0] ss:$16 sps:$4 sm:$0xff]   ;;  %v3685_v59 = vld [vmem:[%s4961_s1 + $0x8c8] ss:$16 sps:$4 sm:$0xff]  }
 0x101   :  { %v3690_v60 = vld [vmem:[%s4961_s1 + $0x8e4] ss:$16 sps:$4 sm:$0xff]   ;;  %v3693_v61 = vld [vmem:[%s4961_s1 + $0x8ec] ss:$16 sps:$4 sm:$0xff]   ;;  %v3688_v62 = vld [vmem:[%s4961_s1 + $0x8e0] ss:$16 sps:$4 sm:$0xff]  }
 0x102   :  { %2205 = vmatmul.mubr.bf16.vlgmr.msra.gmra.mrb[0].mxu0 %v414_v31  ;;  %2410 = vmatmul.mubr.bf16.vlgmr.msra.gmra.mrb[0].mxu1 %v414_v31  ;;  %v3691_v63 = vld [vmem:[%s4961_s1 + $0x8e8] ss:$16 sps:$4 sm:$0xff]   ;;  %v3696_v0 = vld [vmem:[%s4961_s1 + $0x904] ss:$16 sps:$4 sm:$0xff]   ;;  %v3699_v1 = vld [vmem:[%s4961_s1 + $0x90c] ss:$16 sps:$4 sm:$0xff]  }
 0x103   :  { %2214 = vmatpush1.bf16.msra.mxu0 %v3646_v25  ;;  %2419 = vmatpush1.bf16.msra.mxu1 %v3649_v32  ;;  %v3694_v2 = vld [vmem:[%s4961_s1 + $0x900] ss:$16 sps:$4 sm:$0xff]   ;;  %v3697_v3 = vld [vmem:[%s4961_s1 + $0x908] ss:$16 sps:$4 sm:$0xff]   ;;  %v3702_v4 = vld [vmem:[%s4961_s1 + $0x924] ss:$16 sps:$4 sm:$0xff]  }
 0x104   :  { %2215 = vmatprep.subr.bf16.mxu0 %v3654_v33  ;;  %2420 = vmatprep.subr.bf16.mxu1 %v3657_v26  ;;  %v3705_v5 = vld [vmem:[%s4961_s1 + $0x92c] ss:$16 sps:$4 sm:$0xff]   ;;  %v3700_v6 = vld [vmem:[%s4961_s1 + $0x920] ss:$16 sps:$4 sm:$0xff]   ;;  %v3703_v7 = vld [vmem:[%s4961_s1 + $0x928] ss:$16 sps:$4 sm:$0xff]  }
 0x105   :  { %2245 = vmatprep.mubr.bf16.mxu0 %v438_v34  ;;  %2450 = vmatprep.mubr.bf16.mxu1 %v438_v34  ;;  %v3708_v8 = vld [vmem:[%s4961_s1 + $0x944] ss:$16 sps:$4 sm:$0xff]   ;;  %v3711_v9 = vld [vmem:[%s4961_s1 + $0x94c] ss:$16 sps:$4 sm:$0xff]   ;;  %v3706_v10 = vld [vmem:[%s4961_s1 + $0x940] ss:$16 sps:$4 sm:$0xff]   ;;  %v431_v34 = vrot.slane %v4635_v13, %v3965_v49 }
 0x106   :  { %v3709_v11 = vld [vmem:[%s4961_s1 + $0x948] ss:$16 sps:$4 sm:$0xff]   ;;  %v3714_v12 = vld [vmem:[%s4961_s1 + $0x964] ss:$16 sps:$4 sm:$0xff]   ;;  %v3717_v52 = vld [vmem:[%s4961_s1 + $0x96c] ss:$16 sps:$4 sm:$0xff]  }
 0x107   :  { %2216 = vmatpush1.bf16.msra.mxu0 %v3652_v35  ;;  %2421 = vmatpush1.bf16.msra.mxu1 %v3655_v36  ;;  %v3712_v15 = vld [vmem:[%s4961_s1 + $0x960] ss:$16 sps:$4 sm:$0xff]   ;;  %v3715_v16 = vld [vmem:[%s4961_s1 + $0x968] ss:$16 sps:$4 sm:$0xff]   ;;  %v3720_v17 = vld [vmem:[%s4961_s1 + $0x984] ss:$16 sps:$4 sm:$0xff]  }
 0x108   :  { %2217 = vmatprep.subr.bf16.mxu0 %v3660_v37  ;;  %2422 = vmatprep.subr.bf16.mxu1 %v3663_v38  ;;  %v3723_v18 = vld [vmem:[%s4961_s1 + $0x98c] ss:$16 sps:$4 sm:$0xff]   ;;  %v3718_v19 = vld [vmem:[%s4961_s1 + $0x980] ss:$16 sps:$4 sm:$0xff]   ;;  %v3721_v20 = vld [vmem:[%s4961_s1 + $0x988] ss:$16 sps:$4 sm:$0xff]  }
 0x109   :  { %v3726_v21 = vld [vmem:[%s4961_s1 + $0x9a4] ss:$16 sps:$4 sm:$0xff]   ;;  %v3729_v22 = vld [vmem:[%s4961_s1 + $0x9ac] ss:$16 sps:$4 sm:$0xff]   ;;  %v3724_v23 = vld [vmem:[%s4961_s1 + $0x9a0] ss:$16 sps:$4 sm:$0xff]  }
 0x10a   :  { %v3727_v24 = vld [vmem:[%s4961_s1 + $0x9a8] ss:$16 sps:$4 sm:$0xff]   ;;  %v3732_v27 = vld [vmem:[%s4961_s1 + $0x9c4] ss:$16 sps:$4 sm:$0xff]   ;;  %v3735_v28 = vld [vmem:[%s4961_s1 + $0x9cc] ss:$16 sps:$4 sm:$0xff]  }
 0x10b   :  { %2218 = vmatpush1.bf16.msra.mxu0 %v3658_v39  ;;  %2423 = vmatpush1.bf16.msra.mxu1 %v3661_v40  ;;  %v3730_v29 = vld [vmem:[%s4961_s1 + $0x9c0] ss:$16 sps:$4 sm:$0xff]   ;;  %v3733_v14 = vld [vmem:[%s4961_s1 + $0x9c8] ss:$16 sps:$4 sm:$0xff]   ;;  %v3738_v30 = vld [vmem:[%s4961_s1 + $0x9e4] ss:$16 sps:$4 sm:$0xff]  }
 0x10c   :  { %2219 = vmatprep.subr.bf16.mxu0 %v3666_v41  ;;  %2424 = vmatprep.subr.bf16.mxu1 %v3669_v43  ;;  %v3741_v31 = vld [vmem:[%s4961_s1 + $0x9ec] ss:$16 sps:$4 sm:$0xff]   ;;  %v3736_v25 = vld [vmem:[%s4961_s1 + $0x9e0] ss:$16 sps:$4 sm:$0xff]   ;;  %v3739_v32 = vld [vmem:[%s4961_s1 + $0x9e8] ss:$16 sps:$4 sm:$0xff]  }
 0x10d   :  { %v3742_v33 = vld [vmem:[%s4963_s3 + $0x40] sm:$0xff]   ;;  %v3746_v37 = vld [vmem:[%s4963_s3 + $0x48] sm:$0xff]   ;;  %v3750_v39 = vld [vmem:[%s4963_s3 + $0x50] sm:$0xff]   ;;  %s3799_s17 = smov [#allocation2]  }
 0x10e   :  { %v3743_v26 = vld [vmem:[%s4963_s3 + $0xc0] sm:$0xff]   ;;  %v3747_v49 = vld [vmem:[%s4963_s3 + $0xc8] sm:$0xff]   ;;  %v3751_v40 = vld [vmem:[%s4963_s3 + $0xd0] sm:$0xff]   ;;  %s2817_s18 = sshll.u32 %s3799_s17, 4  ;;  %s2818_s18 = int_to_ptr.vmem [resolvable:$true] %s2817_s18 }
 0x10f   :  { %2220 = vmatpush1.bf16.msra.mxu0 %v3664_v44  ;;  %2425 = vmatpush1.bf16.msra.mxu1 %v3667_v45  ;;  %v3744_v35 = vld [vmem:[%s4963_s3] sm:$0xff]   ;;  %v3748_v13 = vld [vmem:[%s4963_s3 + $0x8] sm:$0xff]   ;;  %v3752_v41 = vld [vmem:[%s4963_s3 + $0x10] sm:$0xff]   ;;  %s3774_s19 = scalar_lea.vmem %s2818_s18, 32  ;;  %p3779_p1 = scmp.lt.s32.totalorder %s2818_s18, %s2818_s18 }
 0x110   :  { %2221 = vmatprep.subr.bf16.mxu0 %v3672_v46  ;;  %2426 = vmatprep.subr.bf16.mxu1 %v3675_v47  ;;  %v3745_v36 = vld [vmem:[%s4963_s3 + $0x80] sm:$0xff]   ;;  %v3749_v38 = vld [vmem:[%s4963_s3 + $0x88] sm:$0xff]   ;;  %v3753_v43 = vld [vmem:[%s4963_s3 + $0x90] sm:$0xff]   ;;  %p3775_p0 = scmp.ne.s32.totalorder %s2818_s18, %s3774_s19  ;;  %p3780_p2 = scmp.lt.s32.totalorder %s3774_s19, %s3774_s19 }
 0x111   :  { %v3754_v44 = vld [vmem:[%s4963_s3 + $0x58] sm:$0xff]  }
 0x112   :  { %v3755_v45 = vld [vmem:[%s4963_s3 + $0xd8] sm:$0xff]   ;;  %p3781_p3 = por %p3780_p2, %p3779_p1 }
 0x113   :  { %2222 = vmatpush1.bf16.msra.mxu0 %v3670_v48  ;;  %2427 = vmatpush1.bf16.msra.mxu1 %v3673_v50  ;;  %v3756_v46 = vld [vmem:[%s4963_s3 + $0x18] sm:$0xff]   ;;  %v3758_v48 = vld [vmem:[%s4963_s3 + $0x60] sm:$0xff]  }
 0x114   :  { %2223 = vmatprep.subr.bf16.mxu0 %v3678_v51  ;;  %2428 = vmatprep.subr.bf16.mxu1 %v3681_v53  ;;  %v3757_v47 = vld [vmem:[%s4963_s3 + $0x98] sm:$0xff]   ;;  %v3759_v50 = vld [vmem:[%s4963_s3 + $0xe0] sm:$0xff]   ;;  %p3782_p4 = pnand %p3781_p3, %p3775_p0 }
 0x115   :  { %v3760_v51 = vld [vmem:[%s4963_s3 + $0x20] sm:$0xff]  }
 0x116   :  { %v3761_v53 = vld [vmem:[%s4963_s3 + $0xa0] sm:$0xff]  }
 0x117   :  { %2224 = vmatpush1.bf16.msra.mxu0 %v3676_v54  ;;  %2429 = vmatpush1.bf16.msra.mxu1 %v3679_v55  ;;  %v3762_v54 = vld [vmem:[%s4963_s3 + $0x68] sm:$0xff]  }
 0x118   :  { %2225 = vmatprep.subr.bf16.mxu0 %v3684_v56  ;;  %2430 = vmatprep.subr.bf16.mxu1 %v3687_v57  ;;  %v3763_v55 = vld [vmem:[%s4963_s3 + $0xe8] sm:$0xff]  }
 0x119   :  { %v3764_v56 = vld [vmem:[%s4963_s3 + $0x28] sm:$0xff]  }
 0x11a   :  { %v3765_v57 = vld [vmem:[%s4963_s3 + $0xa8] sm:$0xff]  }
 0x11b   :  { %2226 = vmatpush1.bf16.msra.mxu0 %v3682_v58  ;;  %2431 = vmatpush1.bf16.msra.mxu1 %v3685_v59  ;;  %v3766_v58 = vld [vmem:[%s4963_s3 + $0x70] sm:$0xff]  }
 0x11c   :  { %2227 = vmatprep.subr.bf16.mxu0 %v3690_v60  ;;  %2432 = vmatprep.subr.bf16.mxu1 %v3693_v61  ;;  %v3767_v59 = vld [vmem:[%s4963_s3 + $0xf0] sm:$0xff]  }
 0x11d   :  { %v3768_v60 = vld [vmem:[%s4963_s3 + $0x30] sm:$0xff]  }
 0x11e   :  { %v3769_v61 = vld [vmem:[%s4963_s3 + $0xb0] sm:$0xff]  }
 0x11f   :  { %2228 = vmatpush1.bf16.msra.mxu0 %v3688_v62  ;;  %2433 = vmatpush1.bf16.msra.mxu1 %v3691_v63  ;;  %v3770_v62 = vld [vmem:[%s4963_s3 + $0x78] sm:$0xff]  }
 0x120   :  { %2229 = vmatprep.subr.bf16.mxu0 %v3696_v0  ;;  %2434 = vmatprep.subr.bf16.mxu1 %v3699_v1  ;;  %v3771_v63 = vld [vmem:[%s4963_s3 + $0xf8] sm:$0xff]  }
 0x121   :  { %v3772_v0 = vld [vmem:[%s4963_s3 + $0x38] sm:$0xff]  }
 0x122   :  { %v3773_v1 = vld [vmem:[%s4963_s3 + $0xb8] sm:$0xff]  }
 0x123   :  { %2230 = vmatpush1.bf16.msra.mxu0 %v3694_v2  ;;  %2435 = vmatpush1.bf16.msra.mxu1 %v3697_v3  ;;  %v348_v2 = vsub.s32 0, %v3947_v42  ;;  %v356_v3 = vsub.s32 2, %v3947_v42 }
 0x124   :  { %2231 = vmatprep.subr.bf16.mxu0 %v3702_v4  ;;  %2436 = vmatprep.subr.bf16.mxu1 %v3705_v5  ;;  %v344_v4 = vld [vmem:[%s4962_s2] sm:$0xf]  ;;  %v352_v5 = vsub.s32 1, %v3947_v42 }
 0x127   :  { %2232 = vmatpush1.bf16.msra.mxu0 %v3700_v6  ;;  %2437 = vmatpush1.bf16.msra.mxu1 %v3703_v7  ;;  %v360_v6 = vsub.s32 3, %v3947_v42  ;;  %v349_v7 = vrot.slane %v344_v4, %v348_v2 }
 0x128   :  { %2233 = vmatprep.subr.bf16.mxu0 %v3708_v8  ;;  %2438 = vmatprep.subr.bf16.mxu1 %v3711_v9  ;;  %v357_v8 = vrot.slane %v344_v4, %v356_v3  ;;  %v353_v9 = vrot.slane %v344_v4, %v352_v5 }
 0x12b   :  { %2234 = vmatpush1.bf16.msra.mxu0 %v3706_v10  ;;  %2439 = vmatpush1.bf16.msra.mxu1 %v3709_v11  ;;  %v361_v10 = vrot.slane %v344_v4, %v360_v6 }
 0x12c   :  { %2235 = vmatprep.subr.bf16.mxu0 %v3714_v12  ;;  %2440 = vmatprep.subr.bf16.mxu1 %v3717_v52 }
 0x12f   :  { %2236 = vmatpush1.bf16.msra.mxu0 %v3712_v15  ;;  %2441 = vmatpush1.bf16.msra.mxu1 %v3715_v16 }
 0x130   :  { %2237 = vmatprep.subr.bf16.mxu0 %v3720_v17  ;;  %2442 = vmatprep.subr.bf16.mxu1 %v3723_v18 }
 0x133   :  { %2238 = vmatpush1.bf16.msra.mxu0 %v3718_v19  ;;  %2443 = vmatpush1.bf16.msra.mxu1 %v3721_v20 }
 0x134   :  { %2239 = vmatprep.subr.bf16.mxu0 %v3726_v21  ;;  %2444 = vmatprep.subr.bf16.mxu1 %v3729_v22 }
 0x137   :  { %2240 = vmatpush1.bf16.msra.mxu0 %v3724_v23  ;;  %2445 = vmatpush1.bf16.msra.mxu1 %v3727_v24 }
 0x138   :  { %2241 = vmatprep.subr.bf16.mxu0 %v3732_v27  ;;  %2446 = vmatprep.subr.bf16.mxu1 %v3735_v28 }
 0x13b   :  { %2242 = vmatpush1.bf16.msra.mxu0 %v3730_v29  ;;  %2447 = vmatpush1.bf16.msra.mxu1 %v3733_v14 }
 0x13c   :  { %2243 = vmatprep.subr.bf16.mxu0 %v3738_v30  ;;  %2448 = vmatprep.subr.bf16.mxu1 %v3741_v31 }
 0x13f   :  { %2244 = vmatpush1.bf16.msra.mxu0 %v3736_v25  ;;  %2449 = vmatpush1.bf16.msra.mxu1 %v3739_v32 }
 0x140   :  { %3179 = vmatprep.subr.bf16.mxu0 %v3742_v33  ;;  %3201 = vmatprep.subr.bf16.mxu1 %v3743_v26  ;;  %v3146_v33 = vld [vmem:[%s4964_s4] ss:$0 sm:$0xff] }
 0x142   :  { %2246 = vmatmul.mubr.bf16.vlgmr.msra.gmra.mrb[0].mxu0 %v431_v34  ;;  %2451 = vmatmul.mubr.bf16.vlgmr.msra.gmra.mrb[0].mxu1 %v431_v34 }
 0x143   :  { %3180 = vmatpush3.bf16.msra.mxu0 %v3744_v35  ;;  %3202 = vmatpush3.bf16.msra.mxu1 %v3745_v36 }
 0x144   :  { %3181 = vmatprep.subr.bf16.mxu0 %v3746_v37  ;;  %3203 = vmatprep.subr.bf16.mxu1 %v3747_v49 }
 0x147   :  { %3182 = vmatpush3.bf16.msra.mxu0 %v3748_v13  ;;  %3204 = vmatpush3.bf16.msra.mxu1 %v3749_v38 }
 0x148   :  { %3183 = vmatprep.subr.bf16.mxu0 %v3750_v39  ;;  %3205 = vmatprep.subr.bf16.mxu1 %v3751_v40 }
 0x14b   :  { %3184 = vmatpush3.bf16.msra.mxu0 %v3752_v41  ;;  %3206 = vmatpush3.bf16.msra.mxu1 %v3753_v43 }
 0x14c   :  { %3185 = vmatprep.subr.bf16.mxu0 %v3754_v44  ;;  %3207 = vmatprep.subr.bf16.mxu1 %v3755_v45 }
 0x14f   :  { %3186 = vmatpush3.bf16.msra.mxu0 %v3756_v46  ;;  %3208 = vmatpush3.bf16.msra.mxu1 %v3757_v47 }
 0x150   :  { %3187 = vmatprep.subr.bf16.mxu0 %v3758_v48  ;;  %3209 = vmatprep.subr.bf16.mxu1 %v3759_v50 }
 0x153   :  { %3188 = vmatpush3.bf16.msra.mxu0 %v3760_v51  ;;  %3210 = vmatpush3.bf16.msra.mxu1 %v3761_v53 }
 0x154   :  { %3189 = vmatprep.subr.bf16.mxu0 %v3762_v54  ;;  %3211 = vmatprep.subr.bf16.mxu1 %v3763_v55 }
 0x157   :  { %3190 = vmatpush3.bf16.msra.mxu0 %v3764_v56  ;;  %3212 = vmatpush3.bf16.msra.mxu1 %v3765_v57 }
 0x158   :  { %3191 = vmatprep.subr.bf16.mxu0 %v3766_v58  ;;  %3213 = vmatprep.subr.bf16.mxu1 %v3767_v59 }
 0x15b   :  { %3192 = vmatpush3.bf16.msra.mxu0 %v3768_v60  ;;  %3214 = vmatpush3.bf16.msra.mxu1 %v3769_v61 }
 0x15c   :  { %3193 = vmatprep.subr.bf16.mxu0 %v3770_v62  ;;  %3215 = vmatprep.subr.bf16.mxu1 %v3771_v63 }
 0x15f   :  { %3194 = vmatpush3.bf16.msra.mxu0 %v3772_v0  ;;  %3216 = vmatpush3.bf16.msra.mxu1 %v3773_v1 }
 0x215   :  { %v2247_v11 = vpop.f32.mrb[0].mxu0  ;;  %v2452_v12 = vpop.f32.mrb[0].mxu1 }
 0x216   :  { %v3223_v52 = vadd.f32 %v2247_v11, %v349_v7  ;;  %v3225_v15 = vadd.f32 %v2452_v12, %v357_v8  ;;  %v2249_v16 = vpop.f32.mrb[1].mxu0  ;;  %v2454_v17 = vpop.f32.mrb[1].mxu1 }
 0x217   :  { %v3224_v18 = vadd.f32 %v2249_v16, %v353_v9  ;;  %v3226_v19 = vadd.f32 %v2454_v17, %v361_v10  ;;  %v2251_v20 = vpop.f32.mrb[2].mxu0  ;;  %v2456_v21 = vpop.f32.mrb[2].mxu1 }
 0x218   :  { %v2459_v22 = vmax.f32 %v3223_v52, 0.0  ;;  %v2461_v23 = vmax.f32 %v3225_v15, 0.0  ;;  %v2252_v24 = vpop.f32.mrb[3].mxu0  ;;  %v2457_v27 = vpop.f32.mrb[3].mxu1 }
 0x219   :  { %v2460_v28 = vmax.f32 %v3224_v18, 0.0  ;;  %v2462_v42 = vmax.f32 %v3226_v19, 0.0 }
 0x21a   :  { %v2463_v30 = vpack.c.bf16 %v2459_v22, %v2459_v22  ;;  %v2465_v31 = vpack.c.bf16 %v2461_v23, %v2461_v23 }
 0x21b   :  { %v2464_v29 = vpack.c.bf16 %v2460_v28, %v2460_v28  ;;  %v2466_v14 = vpack.c.bf16 %v2462_v42, %v2462_v42 }
 0x21d   :  { %2762 = vmatprep.mubr.bf16.mxu0 %v2464_v29  ;;  %2802 = vmatprep.mubr.bf16.mxu1 %v2466_v14 }
 0x21e   :  { %2763 = vmatmul.mubr.bf16.vlgmr.msra.gmra.mrb[4].mxu0 %v2463_v30  ;;  %2803 = vmatmul.mubr.bf16.vlgmr.msra.gmra.mrb[4].mxu1 %v2465_v31 }
 0x2f1   :  { %v3195_v25 = vpop.f32.mrb[4].mxu0  ;;  %v3217_v32 = vpop.f32.mrb[4].mxu1 }
 0x2f2   :  { %v3196_v26 = vpop.f32.mrb[5].mxu0  ;;  %v3218_v34 = vpop.f32.mrb[5].mxu1 }
 0x2f3   :  { %v3197_v35 = vadd.f32 %v3196_v26, %v3195_v25  ;;  %v3219_v36 = vadd.f32 %v3218_v34, %v3217_v32  ;;  %v3198_v37 = vpop.f32.mrb[6].mxu0  ;;  %v3220_v49 = vpop.f32.mrb[6].mxu1 }
 0x2f4   :  { %v3199_v13 = vpop.f32.mrb[7].mxu0  ;;  %v3221_v38 = vpop.f32.mrb[7].mxu1 }
 0x2f5   :  { %v2765_v39 = vadd.f32 %v3197_v35, %v3146_v33 }
 0x2f7   :  { %v2805_v40 = vadd.f32 %v3219_v36, %v2765_v39 }
 0x2f9   :  { %2810 = vst [vmem:[#allocation2] sm:$0x3] %v2805_v40 }
 0x2fa   :  { %3785 = shalt.err (!%p3782_p4)
}
 0x2fb   :  { %s3786_s21 = scalar_lea.hbm %s4965_s5, 32 }
 0x2fc   :  { %p3787_p5 = scmp.ne.s32.totalorder %s4965_s5, %s3786_s21  ;;  %p3790_p6 = scmp.lt.u32.totalorder %s3786_s21, %s4965_s5 }
 0x2fe   :  { %p3792_p7 = pnand %p3790_p6, %p3787_p5 }
 0x300   :  { %3795 = shalt.err (!%p3792_p7)
}
 0x301   :  { %2820 = dma.vmem_to_hbm [thread:$0]  %s2818_s18, 32, %s4965_s5, [#allocation3]  }
 0x302   :  { %3796 = dma.done.wait [#allocation3], 32  }
 0x303   :  { %3797 = vsyncadd [#allocation3], 4294967264 }
 0x304   :  { %2824 = vsyncpa [#allocation3], 1 }

</bundles_post_ra>
